<compile_context>
chip_gen: v7x
topology: tpu7x:2x2x1
jax: 0.10.0
libtpu: 0.0.40
codegen_flags: <defaults>
</compile_context>

<pallas_src>
import functools

import jax
import jax.numpy as jnp
from jax.experimental import pallas as pl
from jax.experimental.pallas import tpu as pltpu


# Padded sizes chosen so every in-kernel slice / concat is (8,128) aligned.
CIN1P = 8            # conv1 in-channels padded 3 -> 8
K1 = 16 * CIN1P      # 4*4*8 = 128 (conv1 contraction width)
C1P = 128            # conv1 out-channels padded 16 -> 128
C2P = 128            # conv2 out-channels padded 32 -> 128
K2 = 16 * C1P        # 4*4*128 = 2048 (conv2 weight rows, tap-major)


# ----------------------------------------------------------------------------
# Fused Pallas kernel: conv1 -> conv2 -> fc, all intermediates in VMEM
# ----------------------------------------------------------------------------
def _encoder_kernel(p1_ref, w1_ref, b1_ref, w2_ref, b2_ref, wfc_ref, bfc_ref,
                    o_ref, h1p_ref, *, B):
    """p1_ref rows are ordered (row_parity, col_parity, b, i, j), i.e. the
    conv1-output pixel (r, c) = (2*i + 1 - pr, 2*j + 1 - pc).  h1p_ref is a
    (4*B, 9, 9, C1P) zero-padded parity-block scratch of the conv1 output so
    that every stride-2 conv2 tap is a contiguous 8x8 window."""
    # ---- conv1: single MXU matmul, bias + ReLU in f32 ----------------------
    h1 = jnp.dot(p1_ref[...], w1_ref[...], preferred_element_type=jnp.float32)
    h1 = jnp.maximum(h1 + b1_ref[...], 0.0)                  # (4*B*64, C1P) f32

    # ---- scatter conv1 output into zero-padded parity blocks ---------------
    h1p_ref[...] = jnp.zeros(h1p_ref.shape, h1p_ref.dtype)
    for pr in range(2):
        for pc in range(2):
            k = pr * 2 + pc
            blk = h1[k * B * 64:(k + 1) * B * 64, :].reshape(B, 8, 8, C1P)
            h1p_ref[k * B:(k + 1) * B, 1 - pr:9 - pr, 1 - pc:9 - pc, :] = blk

    # ---- conv2: 16 accumulated matmuls, one per 4x4 tap --------------------
    acc = jnp.zeros((B * 64, C2P), jnp.float32)
    for ki in range(4):
        for kj in range(4):
            pr, di = ki % 2, ki // 2
            pc, dj = kj % 2, kj // 2
            k = pr * 2 + pc
            piece = h1p_ref[k * B:(k + 1) * B, di:di + 8, dj:dj + 8, :]
            piece = piece.reshape(B * 64, C1P).astype(jnp.bfloat16)
            wk = w2_ref[(ki * 4 + kj) * C1P:(ki * 4 + kj + 1) * C1P, :]
            acc = acc + jnp.dot(piece, wk, preferred_element_type=jnp.float32)
    h2 = jnp.maximum(acc + b2_ref[...], 0.0).astype(jnp.bfloat16)  # (B*64, C2P)

    # ---- flatten pixels into lanes (128-lane aligned pieces) + fused FC ----
    h2b = h2.reshape(B, 64, C2P)
    flat = jnp.concatenate([h2b[:, p, :] for p in range(64)], axis=1)  # (B, 8192)
    out = jnp.dot(flat, wfc_ref[...], preferred_element_type=jnp.float32)
    o_ref[...] = out + bfc_ref[...]


def encoder_pallas(prepped, patches1, B, latent_dim):
    kernel = functools.partial(_encoder_kernel, B=B)
    return pl.pallas_call(
        kernel,
        out_shape=jax.ShapeDtypeStruct((B, 2 * latent_dim), jnp.float32),
        in_specs=[
            pl.BlockSpec((4 * B * 64, K1), lambda: (0, 0)),       # patches1
            pl.BlockSpec((K1, C1P), lambda: (0, 0)),              # w1
            pl.BlockSpec((1, C1P), lambda: (0, 0)),               # b1
            pl.BlockSpec((K2, C2P), lambda: (0, 0)),              # w2
            pl.BlockSpec((1, C2P), lambda: (0, 0)),               # b2
            pl.BlockSpec((64 * C2P, 2 * latent_dim), lambda: (0, 0)),  # wfc
            pl.BlockSpec((1, 2 * latent_dim), lambda: (0, 0)),    # bfc
        ],
        out_specs=pl.BlockSpec((B, 2 * latent_dim), lambda: (0, 0)),
        scratch_shapes=[pltpu.VMEM((4 * B, 9, 9, C1P), jnp.float32)],
    )(patches1, prepped["w1p"], prepped["b1p"], prepped["w2p"], prepped["b2p"],
      prepped["wfcp"], prepped["bfcp"])


# ----------------------------------------------------------------------------
# Glue: conv1 im2col (only the model input; conv2 im2col lives in the kernel)
# ----------------------------------------------------------------------------
def _conv1_patches(x_nchw):
    """Conv1 im2col (k=4, s=2, p=1) + parity reorder.  Returns (4*B*64, 128)
    bf16, rows ordered (pr, pc, b, i, j) with pixel (2i+1-pr, 2j+1-pc)."""
    B, cin = x_nchw.shape[0], x_nchw.shape[1]
    assert x_nchw.shape[2] == 32 and x_nchw.shape[3] == 32 and cin <= CIN1P
    x = jnp.transpose(x_nchw, (0, 2, 3, 1))                         # NHWC
    x = jnp.pad(x, ((0, 0), (1, 1), (1, 1), (0, CIN1P - cin)))      # (B,34,34,8)
    taps = []
    for ki in range(4):
        for kj in range(4):
            taps.append(x[:, ki:ki + 32:2, kj:kj + 32:2, :])        # (B,16,16,8)
    p = jnp.stack(taps, axis=3).reshape(B, 16, 16, K1)              # cols (ki,kj,cin)
    p = p.reshape(B, 8, 2, 8, 2, K1)[:, :, ::-1, :, ::-1, :]        # ar -> pr = 1-ar
    p = jnp.transpose(p, (2, 4, 0, 1, 3, 5))                        # (2,2,B,8,8,K1)
    return p.reshape(4 * B * 64, K1).astype(jnp.bfloat16)


# ----------------------------------------------------------------------------
# One-time parameter prep (layout / padding / bf16 cast, outside the forward)
# ----------------------------------------------------------------------------
def prepare_params(params):
    w1 = params["w1"]                                   # (16, cin, 4, 4)
    cout1, cin1 = w1.shape[0], w1.shape[1]
    w1t = jnp.transpose(w1, (2, 3, 1, 0))               # (ki,kj,cin,cout)
    w1t = jnp.pad(w1t, ((0, 0), (0, 0), (0, CIN1P - cin1), (0, C1P - cout1)))
    w1p = w1t.reshape(K1, C1P).astype(jnp.bfloat16)
    b1p = jnp.pad(params["b1"], (0, C1P - cout1)).reshape(1, C1P).astype(jnp.float32)

    w2 = params["w2"]                                   # (32, 16, 4, 4)
    cout2, cin2 = w2.shape[0], w2.shape[1]
    w2t = jnp.transpose(w2, (2, 3, 1, 0))               # (ki,kj,cin,cout)
    w2t = jnp.pad(w2t, ((0, 0), (0, 0), (0, C1P - cin2), (0, C2P - cout2)))
    w2p = w2t.reshape(K2, C2P).astype(jnp.bfloat16)
    b2p = jnp.pad(params["b2"], (0, C2P - cout2)).reshape(1, C2P).astype(jnp.float32)

    def fc_rows(w):                                     # (L, 32*8*8), NCHW cols
        L = w.shape[0]
        wr = w.reshape(L, cout2, 8, 8)                  # (L, c, oh, ow)
        wr = jnp.transpose(wr, (2, 3, 1, 0))            # (oh, ow, c, L)
        wr = jnp.pad(wr, ((0, 0), (0, 0), (0, C2P - cout2), (0, 0)))
        return wr.reshape(64 * C2P, L)                  # rows = (oh, ow, c_pad)

    wfcp = jnp.concatenate([fc_rows(params["w_mu"]), fc_rows(params["w_lv"])],
                           axis=1).astype(jnp.bfloat16)                 # (8192, 2L)
    bfcp = jnp.concatenate([params["b_mu"], params["b_lv"]]).reshape(1, -1).astype(jnp.float32)
    return {"w1p": w1p, "b1p": b1p, "w2p": w2p, "b2p": b2p,
            "wfcp": wfcp, "bfcp": bfcp}


# ----------------------------------------------------------------------------
# Encoder forward
# ----------------------------------------------------------------------------
def init_encoder_params(key, in_channels=3, latent_dim=16):
    ks = jax.random.split(key, 8)
    s = 0.05
    return {
        "w1": s * jax.random.normal(ks[0], (16, in_channels, 4, 4), jnp.float32),
        "b1": s * jax.random.normal(ks[1], (16,), jnp.float32),
        "w2": s * jax.random.normal(ks[2], (32, 16, 4, 4), jnp.float32),
        "b2": s * jax.random.normal(ks[3], (32,), jnp.float32),
        "w_mu": s * jax.random.normal(ks[4], (latent_dim, 32 * 8 * 8), jnp.float32),
        "b_mu": s * jax.random.normal(ks[5], (latent_dim,), jnp.float32),
        "w_lv": s * jax.random.normal(ks[6], (latent_dim, 32 * 8 * 8), jnp.float32),
        "b_lv": s * jax.random.normal(ks[7], (latent_dim,), jnp.float32),
    }


def encoder_forward(prepped, x_nchw, latent_dim=16):
    """x_nchw: (B, 3, 32, 32) f32 -> (mu, logvar), each (B, latent_dim)."""
    B = x_nchw.shape[0]
    patches1 = _conv1_patches(x_nchw)
    out = encoder_pallas(prepped, patches1, B, latent_dim)
    return out[:, :latent_dim], out[:, latent_dim:]


# ----------------------------------------------------------------------------
# Pure JAX / XLA reference for the correctness check
# ----------------------------------------------------------------------------
def _reference_forward(params, x_nchw):
    dn = jax.lax.conv_dimension_numbers(x_nchw.shape, params["w1"].shape,
                                        ("NCHW", "OIHW", "NCHW"))
    h1 = jax.lax.conv_general_dilated(x_nchw, params["w1"], (2, 2),
                                      [(1, 1), (1, 1)], dimension_numbers=dn)
    h1 = jax.nn.relu(h1 + params["b1"][None, :, None, None])
    dn2 = jax.lax.conv_dimension_numbers(h1.shape, params["w2"].shape,
                                         ("NCHW", "OIHW", "NCHW"))
    h2 = jax.lax.conv_general_dilated(h1, params["w2"], (2, 2),
                                      [(1, 1), (1, 1)], dimension_numbers=dn2)
    h2 = jax.nn.relu(h2 + params["b2"][None, :, None, None])
    flat = h2.reshape(h2.shape[0], -1)
    mu = flat @ params["w_mu"].T + params["b_mu"]
    lv = flat @ params["w_lv"].T + params["b_lv"]
    return mu, lv


if __name__ == "__main__":
    key = jax.random.PRNGKey(0)
    k_x, k_p = jax.random.split(key)
    # fc_mu expects 32*8*8 features => spatial must be 32x32.
    x = jax.random.normal(k_x, (2, 3, 32, 32), jnp.float32)
    params = init_encoder_params(k_p, in_channels=3, latent_dim=16)
    prepped = prepare_params(params)            # one-time layout prep

    fwd = jax.jit(encoder_forward)
    mu, logvar = fwd(prepped, x)
    jax.block_until_ready((mu, logvar))

    mu_ref, lv_ref = _reference_forward(params, x)
    assert mu.shape == (2, 16) and logvar.shape == (2, 16)
    # bf16 matmul operands with f32 accumulation -> loosened tolerance.
    assert jnp.allclose(mu, mu_ref, atol=3e-2, rtol=3e-2), \
        float(jnp.max(jnp.abs(mu - mu_ref)))
    assert jnp.allclose(logvar, lv_ref, atol=3e-2, rtol=3e-2), \
        float(jnp.max(jnp.abs(logvar - lv_ref)))

    print("KERNEL_OK")
</pallas_src>

<mosaic_0001>
module attributes {stable_mosaic.version = 11 : i64} {
  func.func @_encoder_kernel(%arg0: memref<512x128xbf16, #tpu.memory_space<vmem>>, %arg1: memref<128x128xbf16, #tpu.memory_space<vmem>>, %arg2: memref<1x128xf32, #tpu.memory_space<vmem>>, %arg3: memref<2048x128xbf16, #tpu.memory_space<vmem>>, %arg4: memref<1x128xf32, #tpu.memory_space<vmem>>, %arg5: memref<8192x32xbf16, #tpu.memory_space<vmem>>, %arg6: memref<1x32xf32, #tpu.memory_space<vmem>>, %arg7: memref<2x32xf32, #tpu.memory_space<vmem>>, %arg8: memref<8x9x9x128xf32, #tpu.memory_space<vmem>>) attributes {dimension_semantics = [], scalar_prefetch = 0 : i64, scratch_operands = 1 : i64, tpu.core_type = #tpu.core_type<tc>} {
    %c0 = arith.constant 0 : index
    %c0_0 = arith.constant 0 : index
    %0 = vector.load %arg0[%c0, %c0_0] : memref<512x128xbf16, #tpu.memory_space<vmem>>, vector<512x128xbf16>
    %c0_1 = arith.constant 0 : index
    %c0_2 = arith.constant 0 : index
    %1 = vector.load %arg1[%c0_1, %c0_2] : memref<128x128xbf16, #tpu.memory_space<vmem>>, vector<128x128xbf16>
    %cst = arith.constant dense<0.000000e+00> : vector<512x128xf32>
    %2 = tpu.matmul %0, %1, %cst {dimension_numbers = #tpu.dot_dimension_numbers<[1], [0], [0], [1], [0, 0, 1, 1], [], []>} : vector<512x128xbf16>, vector<128x128xbf16>, vector<512x128xf32> -> vector<512x128xf32>
    %c0_3 = arith.constant 0 : index
    %c0_4 = arith.constant 0 : index
    %3 = vector.load %arg2[%c0_3, %c0_4] : memref<1x128xf32, #tpu.memory_space<vmem>>, vector<1x128xf32>
    %4 = vector.broadcast %3 : vector<1x128xf32> to vector<512x128xf32>
    %5 = arith.addf %2, %4 : vector<512x128xf32>
    %cst_5 = arith.constant 0.000000e+00 : f32
    %6 = vector.broadcast %cst_5 : f32 to vector<512x128xf32>
    %7 = arith.maximumf %5, %6 : vector<512x128xf32>
    %cst_6 = arith.constant 0.000000e+00 : f32
    %8 = vector.broadcast %cst_6 : f32 to vector<8x9x9x128xf32>
    %c0_7 = arith.constant 0 : index
    %c0_8 = arith.constant 0 : index
    %c0_9 = arith.constant 0 : index
    %c0_10 = arith.constant 0 : index
    %9 = vector.load %arg8[%c0_7, %c0_8, %c0_9, %c0_10] : memref<8x9x9x128xf32, #tpu.memory_space<vmem>>, vector<8x9x9x128xf32>
    tpu.vector_store %arg8[%c0_7, %c0_8, %c0_9, %c0_10], %8 {strides = array<i32>} : memref<8x9x9x128xf32, #tpu.memory_space<vmem>>, vector<8x9x9x128xf32>,
    %10 = vector.extract_strided_slice %7 {offsets = [0, 0], sizes = [128, 128], strides = [1, 1]} : vector<512x128xf32> to vector<128x128xf32>
    %11 = vector.shape_cast %10 : vector<128x128xf32> to vector<2x8x8x128xf32>
    %c0_11 = arith.constant 0 : index
    %c1 = arith.constant 1 : index
    %c1_12 = arith.constant 1 : index
    %c0_13 = arith.constant 0 : index
    %12 = vector.load %arg8[%c0_11, %c1, %c1_12, %c0_13] : memref<8x9x9x128xf32, #tpu.memory_space<vmem>>, vector<2x8x8x128xf32>
    tpu.vector_store %arg8[%c0_11, %c1, %c1_12, %c0_13], %11 {strides = array<i32>} : memref<8x9x9x128xf32, #tpu.memory_space<vmem>>, vector<2x8x8x128xf32>,
    %13 = vector.extract_strided_slice %7 {offsets = [128, 0], sizes = [128, 128], strides = [1, 1]} : vector<512x128xf32> to vector<128x128xf32>
    %14 = vector.shape_cast %13 : vector<128x128xf32> to vector<2x8x8x128xf32>
    %c2 = arith.constant 2 : index
    %c1_14 = arith.constant 1 : index
    %c0_15 = arith.constant 0 : index
    %c0_16 = arith.constant 0 : index
    %15 = vector.load %arg8[%c2, %c1_14, %c0_15, %c0_16] : memref<8x9x9x128xf32, #tpu.memory_space<vmem>>, vector<2x8x8x128xf32>
    tpu.vector_store %arg8[%c2, %c1_14, %c0_15, %c0_16], %14 {strides = array<i32>} : memref<8x9x9x128xf32, #tpu.memory_space<vmem>>, vector<2x8x8x128xf32>,
    %16 = vector.extract_strided_slice %7 {offsets = [256, 0], sizes = [128, 128], strides = [1, 1]} : vector<512x128xf32> to vector<128x128xf32>
    %17 = vector.shape_cast %16 : vector<128x128xf32> to vector<2x8x8x128xf32>
    %c4 = arith.constant 4 : index
    %c0_17 = arith.constant 0 : index
    %c1_18 = arith.constant 1 : index
    %c0_19 = arith.constant 0 : index
    %18 = vector.load %arg8[%c4, %c0_17, %c1_18, %c0_19] : memref<8x9x9x128xf32, #tpu.memory_space<vmem>>, vector<2x8x8x128xf32>
    tpu.vector_store %arg8[%c4, %c0_17, %c1_18, %c0_19], %17 {strides = array<i32>} : memref<8x9x9x128xf32, #tpu.memory_space<vmem>>, vector<2x8x8x128xf32>,
    %19 = vector.extract_strided_slice %7 {offsets = [384, 0], sizes = [128, 128], strides = [1, 1]} : vector<512x128xf32> to vector<128x128xf32>
    %20 = vector.shape_cast %19 : vector<128x128xf32> to vector<2x8x8x128xf32>
    %c6 = arith.constant 6 : index
    %c0_20 = arith.constant 0 : index
    %c0_21 = arith.constant 0 : index
    %c0_22 = arith.constant 0 : index
    %21 = vector.load %arg8[%c6, %c0_20, %c0_21, %c0_22] : memref<8x9x9x128xf32, #tpu.memory_space<vmem>>, vector<2x8x8x128xf32>
    tpu.vector_store %arg8[%c6, %c0_20, %c0_21, %c0_22], %20 {strides = array<i32>} : memref<8x9x9x128xf32, #tpu.memory_space<vmem>>, vector<2x8x8x128xf32>,
    %cst_23 = arith.constant 0.000000e+00 : f32
    %22 = vector.broadcast %cst_23 : f32 to vector<128x128xf32>
    %c0_24 = arith.constant 0 : index
    %c0_25 = arith.constant 0 : index
    %c0_26 = arith.constant 0 : index
    %c0_27 = arith.constant 0 : index
    %23 = vector.load %arg8[%c0_24, %c0_25, %c0_26, %c0_27] : memref<8x9x9x128xf32, #tpu.memory_space<vmem>>, vector<2x8x8x128xf32>
    %24 = vector.shape_cast %23 : vector<2x8x8x128xf32> to vector<128x128xf32>
    %25 = arith.truncf %24 : vector<128x128xf32> to vector<128x128xbf16>
    %c0_28 = arith.constant 0 : index
    %c0_29 = arith.constant 0 : index
    %26 = vector.load %arg3[%c0_28, %c0_29] : memref<2048x128xbf16, #tpu.memory_space<vmem>>, vector<128x128xbf16>
    %cst_30 = arith.constant dense<0.000000e+00> : vector<128x128xf32>
    %27 = tpu.matmul %25, %26, %cst_30 {dimension_numbers = #tpu.dot_dimension_numbers<[1], [0], [0], [1], [0, 0, 1, 1], [], []>} : vector<128x128xbf16>, vector<128x128xbf16>, vector<128x128xf32> -> vector<128x128xf32>
    %28 = arith.addf %22, %27 : vector<128x128xf32>
    %c2_31 = arith.constant 2 : index
    %c0_32 = arith.constant 0 : index
    %c0_33 = arith.constant 0 : index
    %c0_34 = arith.constant 0 : index
    %29 = vector.load %arg8[%c2_31, %c0_32, %c0_33, %c0_34] : memref<8x9x9x128xf32, #tpu.memory_space<vmem>>, vector<2x8x8x128xf32>
    %30 = vector.shape_cast %29 : vector<2x8x8x128xf32> to vector<128x128xf32>
    %31 = arith.truncf %30 : vector<128x128xf32> to vector<128x128xbf16>
    %c128 = arith.constant 128 : index
    %c0_35 = arith.constant 0 : index
    %32 = vector.load %arg3[%c128, %c0_35] : memref<2048x128xbf16, #tpu.memory_space<vmem>>, vector<128x128xbf16>
    %cst_36 = arith.constant dense<0.000000e+00> : vector<128x128xf32>
    %33 = tpu.matmul %31, %32, %cst_36 {dimension_numbers = #tpu.dot_dimension_numbers<[1], [0], [0], [1], [0, 0, 1, 1], [], []>} : vector<128x128xbf16>, vector<128x128xbf16>, vector<128x128xf32> -> vector<128x128xf32>
    %34 = arith.addf %28, %33 : vector<128x128xf32>
    %c0_37 = arith.constant 0 : index
    %c0_38 = arith.constant 0 : index
    %c1_39 = arith.constant 1 : index
    %c0_40 = arith.constant 0 : index
    %35 = vector.load %arg8[%c0_37, %c0_38, %c1_39, %c0_40] : memref<8x9x9x128xf32, #tpu.memory_space<vmem>>, vector<2x8x8x128xf32>
    %36 = vector.shape_cast %35 : vector<2x8x8x128xf32> to vector<128x128xf32>
    %37 = arith.truncf %36 : vector<128x128xf32> to vector<128x128xbf16>
    %c256 = arith.constant 256 : index
    %c0_41 = arith.constant 0 : index
    %38 = vector.load %arg3[%c256, %c0_41] : memref<2048x128xbf16, #tpu.memory_space<vmem>>, vector<128x128xbf16>
    %cst_42 = arith.constant dense<0.000000e+00> : vector<128x128xf32>
    %39 = tpu.matmul %37, %38, %cst_42 {dimension_numbers = #tpu.dot_dimension_numbers<[1], [0], [0], [1], [0, 0, 1, 1], [], []>} : vector<128x128xbf16>, vector<128x128xbf16>, vector<128x128xf32> -> vector<128x128xf32>
    %40 = arith.addf %34, %39 : vector<128x128xf32>
    %c2_43 = arith.constant 2 : index
    %c0_44 = arith.constant 0 : index
    %c1_45 = arith.constant 1 : index
    %c0_46 = arith.constant 0 : index
    %41 = vector.load %arg8[%c2_43, %c0_44, %c1_45, %c0_46] : memref<8x9x9x128xf32, #tpu.memory_space<vmem>>, vector<2x8x8x128xf32>
    %42 = vector.shape_cast %41 : vector<2x8x8x128xf32> to vector<128x128xf32>
    %43 = arith.truncf %42 : vector<128x128xf32> to vector<128x128xbf16>
    %c384 = arith.constant 384 : index
    %c0_47 = arith.constant 0 : index
    %44 = vector.load %arg3[%c384, %c0_47] : memref<2048x128xbf16, #tpu.memory_space<vmem>>, vector<128x128xbf16>
    %cst_48 = arith.constant dense<0.000000e+00> : vector<128x128xf32>
    %45 = tpu.matmul %43, %44, %cst_48 {dimension_numbers = #tpu.dot_dimension_numbers<[1], [0], [0], [1], [0, 0, 1, 1], [], []>} : vector<128x128xbf16>, vector<128x128xbf16>, vector<128x128xf32> -> vector<128x128xf32>
    %46 = arith.addf %40, %45 : vector<128x128xf32>
    %c4_49 = arith.constant 4 : index
    %c0_50 = arith.constant 0 : index
    %c0_51 = arith.constant 0 : index
    %c0_52 = arith.constant 0 : index
    %47 = vector.load %arg8[%c4_49, %c0_50, %c0_51, %c0_52] : memref<8x9x9x128xf32, #tpu.memory_space<vmem>>, vector<2x8x8x128xf32>
    %48 = vector.shape_cast %47 : vector<2x8x8x128xf32> to vector<128x128xf32>
    %49 = arith.truncf %48 : vector<128x128xf32> to vector<128x128xbf16>
    %c512 = arith.constant 512 : index
    %c0_53 = arith.constant 0 : index
    %50 = vector.load %arg3[%c512, %c0_53] : memref<2048x128xbf16, #tpu.memory_space<vmem>>, vector<128x128xbf16>
    %cst_54 = arith.constant dense<0.000000e+00> : vector<128x128xf32>
    %51 = tpu.matmul %49, %50, %cst_54 {dimension_numbers = #tpu.dot_dimension_numbers<[1], [0], [0], [1], [0, 0, 1, 1], [], []>} : vector<128x128xbf16>, vector<128x128xbf16>, vector<128x128xf32> -> vector<128x128xf32>
    %52 = arith.addf %46, %51 : vector<128x128xf32>
    %c6_55 = arith.constant 6 : index
    %c0_56 = arith.constant 0 : index
    %c0_57 = arith.constant 0 : index
    %c0_58 = arith.constant 0 : index
    %53 = vector.load %arg8[%c6_55, %c0_56, %c0_57, %c0_58] : memref<8x9x9x128xf32, #tpu.memory_space<vmem>>, vector<2x8x8x128xf32>
    %54 = vector.shape_cast %53 : vector<2x8x8x128xf32> to vector<128x128xf32>
    %55 = arith.truncf %54 : vector<128x128xf32> to vector<128x128xbf16>
    %c640 = arith.constant 640 : index
    %c0_59 = arith.constant 0 : index
    %56 = vector.load %arg3[%c640, %c0_59] : memref<2048x128xbf16, #tpu.memory_space<vmem>>, vector<128x128xbf16>
    %cst_60 = arith.constant dense<0.000000e+00> : vector<128x128xf32>
    %57 = tpu.matmul %55, %56, %cst_60 {dimension_numbers = #tpu.dot_dimension_numbers<[1], [0], [0], [1], [0, 0, 1, 1], [], []>} : vector<128x128xbf16>, vector<128x128xbf16>, vector<128x128xf32> -> vector<128x128xf32>
    %58 = arith.addf %52, %57 : vector<128x128xf32>
    %c4_61 = arith.constant 4 : index
    %c0_62 = arith.constant 0 : index
    %c1_63 = arith.constant 1 : index
    %c0_64 = arith.constant 0 : index
    %59 = vector.load %arg8[%c4_61, %c0_62, %c1_63, %c0_64] : memref<8x9x9x128xf32, #tpu.memory_space<vmem>>, vector<2x8x8x128xf32>
    %60 = vector.shape_cast %59 : vector<2x8x8x128xf32> to vector<128x128xf32>
    %61 = arith.truncf %60 : vector<128x128xf32> to vector<128x128xbf16>
    %c768 = arith.constant 768 : index
    %c0_65 = arith.constant 0 : index
    %62 = vector.load %arg3[%c768, %c0_65] : memref<2048x128xbf16, #tpu.memory_space<vmem>>, vector<128x128xbf16>
    %cst_66 = arith.constant dense<0.000000e+00> : vector<128x128xf32>
    %63 = tpu.matmul %61, %62, %cst_66 {dimension_numbers = #tpu.dot_dimension_numbers<[1], [0], [0], [1], [0, 0, 1, 1], [], []>} : vector<128x128xbf16>, vector<128x128xbf16>, vector<128x128xf32> -> vector<128x128xf32>
    %64 = arith.addf %58, %63 : vector<128x128xf32>
    %c6_67 = arith.constant 6 : index
    %c0_68 = arith.constant 0 : index
    %c1_69 = arith.constant 1 : index
    %c0_70 = arith.constant 0 : index
    %65 = vector.load %arg8[%c6_67, %c0_68, %c1_69, %c0_70] : memref<8x9x9x128xf32, #tpu.memory_space<vmem>>, vector<2x8x8x128xf32>
    %66 = vector.shape_cast %65 : vector<2x8x8x128xf32> to vector<128x128xf32>
    %67 = arith.truncf %66 : vector<128x128xf32> to vector<128x128xbf16>
    %c896 = arith.constant 896 : index
    %c0_71 = arith.constant 0 : index
    %68 = vector.load %arg3[%c896, %c0_71] : memref<2048x128xbf16, #tpu.memory_space<vmem>>, vector<128x128xbf16>
    %cst_72 = arith.constant dense<0.000000e+00> : vector<128x128xf32>
    %69 = tpu.matmul %67, %68, %cst_72 {dimension_numbers = #tpu.dot_dimension_numbers<[1], [0], [0], [1], [0, 0, 1, 1], [], []>} : vector<128x128xbf16>, vector<128x128xbf16>, vector<128x128xf32> -> vector<128x128xf32>
    %70 = arith.addf %64, %69 : vector<128x128xf32>
    %c0_73 = arith.constant 0 : index
    %c1_74 = arith.constant 1 : index
    %c0_75 = arith.constant 0 : index
    %c0_76 = arith.constant 0 : index
    %71 = vector.load %arg8[%c0_73, %c1_74, %c0_75, %c0_76] : memref<8x9x9x128xf32, #tpu.memory_space<vmem>>, vector<2x8x8x128xf32>
    %72 = vector.shape_cast %71 : vector<2x8x8x128xf32> to vector<128x128xf32>
    %73 = arith.truncf %72 : vector<128x128xf32> to vector<128x128xbf16>
    %c1024 = arith.constant 1024 : index
    %c0_77 = arith.constant 0 : index
    %74 = vector.load %arg3[%c1024, %c0_77] : memref<2048x128xbf16, #tpu.memory_space<vmem>>, vector<128x128xbf16>
    %cst_78 = arith.constant dense<0.000000e+00> : vector<128x128xf32>
    %75 = tpu.matmul %73, %74, %cst_78 {dimension_numbers = #tpu.dot_dimension_numbers<[1], [0], [0], [1], [0, 0, 1, 1], [], []>} : vector<128x128xbf16>, vector<128x128xbf16>, vector<128x128xf32> -> vector<128x128xf32>
    %76 = arith.addf %70, %75 : vector<128x128xf32>
    %c2_79 = arith.constant 2 : index
    %c1_80 = arith.constant 1 : index
    %c0_81 = arith.constant 0 : index
    %c0_82 = arith.constant 0 : index
    %77 = vector.load %arg8[%c2_79, %c1_80, %c0_81, %c0_82] : memref<8x9x9x128xf32, #tpu.memory_space<vmem>>, vector<2x8x8x128xf32>
    %78 = vector.shape_cast %77 : vector<2x8x8x128xf32> to vector<128x128xf32>
    %79 = arith.truncf %78 : vector<128x128xf32> to vector<128x128xbf16>
    %c1152 = arith.constant 1152 : index
    %c0_83 = arith.constant 0 : index
    %80 = vector.load %arg3[%c1152, %c0_83] : memref<2048x128xbf16, #tpu.memory_space<vmem>>, vector<128x128xbf16>
    %cst_84 = arith.constant dense<0.000000e+00> : vector<128x128xf32>
    %81 = tpu.matmul %79, %80, %cst_84 {dimension_numbers = #tpu.dot_dimension_numbers<[1], [0], [0], [1], [0, 0, 1, 1], [], []>} : vector<128x128xbf16>, vector<128x128xbf16>, vector<128x128xf32> -> vector<128x128xf32>
    %82 = arith.addf %76, %81 : vector<128x128xf32>
    %c0_85 = arith.constant 0 : index
    %c1_86 = arith.constant 1 : index
    %c1_87 = arith.constant 1 : index
    %c0_88 = arith.constant 0 : index
    %83 = vector.load %arg8[%c0_85, %c1_86, %c1_87, %c0_88] : memref<8x9x9x128xf32, #tpu.memory_space<vmem>>, vector<2x8x8x128xf32>
    %84 = vector.shape_cast %83 : vector<2x8x8x128xf32> to vector<128x128xf32>
    %85 = arith.truncf %84 : vector<128x128xf32> to vector<128x128xbf16>
    %c1280 = arith.constant 1280 : index
    %c0_89 = arith.constant 0 : index
    %86 = vector.load %arg3[%c1280, %c0_89] : memref<2048x128xbf16, #tpu.memory_space<vmem>>, vector<128x128xbf16>
    %cst_90 = arith.constant dense<0.000000e+00> : vector<128x128xf32>
    %87 = tpu.matmul %85, %86, %cst_90 {dimension_numbers = #tpu.dot_dimension_numbers<[1], [0], [0], [1], [0, 0, 1, 1], [], []>} : vector<128x128xbf16>, vector<128x128xbf16>, vector<128x128xf32> -> vector<128x128xf32>
    %88 = arith.addf %82, %87 : vector<128x128xf32>
    %c2_91 = arith.constant 2 : index
    %c1_92 = arith.constant 1 : index
    %c1_93 = arith.constant 1 : index
    %c0_94 = arith.constant 0 : index
    %89 = vector.load %arg8[%c2_91, %c1_92, %c1_93, %c0_94] : memref<8x9x9x128xf32, #tpu.memory_space<vmem>>, vector<2x8x8x128xf32>
    %90 = vector.shape_cast %89 : vector<2x8x8x128xf32> to vector<128x128xf32>
    %91 = arith.truncf %90 : vector<128x128xf32> to vector<128x128xbf16>
    %c1408 = arith.constant 1408 : index
    %c0_95 = arith.constant 0 : index
    %92 = vector.load %arg3[%c1408, %c0_95] : memref<2048x128xbf16, #tpu.memory_space<vmem>>, vector<128x128xbf16>
    %cst_96 = arith.constant dense<0.000000e+00> : vector<128x128xf32>
    %93 = tpu.matmul %91, %92, %cst_96 {dimension_numbers = #tpu.dot_dimension_numbers<[1], [0], [0], [1], [0, 0, 1, 1], [], []>} : vector<128x128xbf16>, vector<128x128xbf16>, vector<128x128xf32> -> vector<128x128xf32>
    %94 = arith.addf %88, %93 : vector<128x128xf32>
    %c4_97 = arith.constant 4 : index
    %c1_98 = arith.constant 1 : index
    %c0_99 = arith.constant 0 : index
    %c0_100 = arith.constant 0 : index
    %95 = vector.load %arg8[%c4_97, %c1_98, %c0_99, %c0_100] : memref<8x9x9x128xf32, #tpu.memory_space<vmem>>, vector<2x8x8x128xf32>
    %96 = vector.shape_cast %95 : vector<2x8x8x128xf32> to vector<128x128xf32>
    %97 = arith.truncf %96 : vector<128x128xf32> to vector<128x128xbf16>
    %c1536 = arith.constant 1536 : index
    %c0_101 = arith.constant 0 : index
    %98 = vector.load %arg3[%c1536, %c0_101] : memref<2048x128xbf16, #tpu.memory_space<vmem>>, vector<128x128xbf16>
    %cst_102 = arith.constant dense<0.000000e+00> : vector<128x128xf32>
    %99 = tpu.matmul %97, %98, %cst_102 {dimension_numbers = #tpu.dot_dimension_numbers<[1], [0], [0], [1], [0, 0, 1, 1], [], []>} : vector<128x128xbf16>, vector<128x128xbf16>, vector<128x128xf32> -> vector<128x128xf32>
    %100 = arith.addf %94, %99 : vector<128x128xf32>
    %c6_103 = arith.constant 6 : index
    %c1_104 = arith.constant 1 : index
    %c0_105 = arith.constant 0 : index
    %c0_106 = arith.constant 0 : index
    %101 = vector.load %arg8[%c6_103, %c1_104, %c0_105, %c0_106] : memref<8x9x9x128xf32, #tpu.memory_space<vmem>>, vector<2x8x8x128xf32>
    %102 = vector.shape_cast %101 : vector<2x8x8x128xf32> to vector<128x128xf32>
    %103 = arith.truncf %102 : vector<128x128xf32> to vector<128x128xbf16>
    %c1664 = arith.constant 1664 : index
    %c0_107 = arith.constant 0 : index
    %104 = vector.load %arg3[%c1664, %c0_107] : memref<2048x128xbf16, #tpu.memory_space<vmem>>, vector<128x128xbf16>
    %cst_108 = arith.constant dense<0.000000e+00> : vector<128x128xf32>
    %105 = tpu.matmul %103, %104, %cst_108 {dimension_numbers = #tpu.dot_dimension_numbers<[1], [0], [0], [1], [0, 0, 1, 1], [], []>} : vector<128x128xbf16>, vector<128x128xbf16>, vector<128x128xf32> -> vector<128x128xf32>
    %106 = arith.addf %100, %105 : vector<128x128xf32>
    %c4_109 = arith.constant 4 : index
    %c1_110 = arith.constant 1 : index
    %c1_111 = arith.constant 1 : index
    %c0_112 = arith.constant 0 : index
    %107 = vector.load %arg8[%c4_109, %c1_110, %c1_111, %c0_112] : memref<8x9x9x128xf32, #tpu.memory_space<vmem>>, vector<2x8x8x128xf32>
    %108 = vector.shape_cast %107 : vector<2x8x8x128xf32> to vector<128x128xf32>
    %109 = arith.truncf %108 : vector<128x128xf32> to vector<128x128xbf16>
    %c1792 = arith.constant 1792 : index
    %c0_113 = arith.constant 0 : index
    %110 = vector.load %arg3[%c1792, %c0_113] : memref<2048x128xbf16, #tpu.memory_space<vmem>>, vector<128x128xbf16>
    %cst_114 = arith.constant dense<0.000000e+00> : vector<128x128xf32>
    %111 = tpu.matmul %109, %110, %cst_114 {dimension_numbers = #tpu.dot_dimension_numbers<[1], [0], [0], [1], [0, 0, 1, 1], [], []>} : vector<128x128xbf16>, vector<128x128xbf16>, vector<128x128xf32> -> vector<128x128xf32>
    %112 = arith.addf %106, %111 : vector<128x128xf32>
    %c6_115 = arith.constant 6 : index
    %c1_116 = arith.constant 1 : index
    %c1_117 = arith.constant 1 : index
    %c0_118 = arith.constant 0 : index
    %113 = vector.load %arg8[%c6_115, %c1_116, %c1_117, %c0_118] : memref<8x9x9x128xf32, #tpu.memory_space<vmem>>, vector<2x8x8x128xf32>
    %114 = vector.shape_cast %113 : vector<2x8x8x128xf32> to vector<128x128xf32>
    %115 = arith.truncf %114 : vector<128x128xf32> to vector<128x128xbf16>
    %c1920 = arith.constant 1920 : index
    %c0_119 = arith.constant 0 : index
    %116 = vector.load %arg3[%c1920, %c0_119] : memref<2048x128xbf16, #tpu.memory_space<vmem>>, vector<128x128xbf16>
    %cst_120 = arith.constant dense<0.000000e+00> : vector<128x128xf32>
    %117 = tpu.matmul %115, %116, %cst_120 {dimension_numbers = #tpu.dot_dimension_numbers<[1], [0], [0], [1], [0, 0, 1, 1], [], []>} : vector<128x128xbf16>, vector<128x128xbf16>, vector<128x128xf32> -> vector<128x128xf32>
    %118 = arith.addf %112, %117 : vector<128x128xf32>
    %c0_121 = arith.constant 0 : index
    %c0_122 = arith.constant 0 : index
    %119 = vector.load %arg4[%c0_121, %c0_122] : memref<1x128xf32, #tpu.memory_space<vmem>>, vector<1x128xf32>
    %120 = vector.broadcast %119 : vector<1x128xf32> to vector<128x128xf32>
    %121 = arith.addf %118, %120 : vector<128x128xf32>
    %cst_123 = arith.constant 0.000000e+00 : f32
    %122 = vector.broadcast %cst_123 : f32 to vector<128x128xf32>
    %123 = arith.maximumf %121, %122 : vector<128x128xf32>
    %124 = arith.truncf %123 : vector<128x128xf32> to vector<128x128xbf16>
    %125 = vector.shape_cast %124 : vector<128x128xbf16> to vector<2x64x128xbf16>
    %126 = vector.extract_strided_slice %125 {offsets = [0, 0, 0], sizes = [2, 1, 128], strides = [1, 1, 1]} : vector<2x64x128xbf16> to vector<2x1x128xbf16>
    %127 = vector.shape_cast %126 : vector<2x1x128xbf16> to vector<2x128xbf16>
    %128 = vector.extract_strided_slice %125 {offsets = [0, 1, 0], sizes = [2, 1, 128], strides = [1, 1, 1]} : vector<2x64x128xbf16> to vector<2x1x128xbf16>
    %129 = vector.shape_cast %128 : vector<2x1x128xbf16> to vector<2x128xbf16>
    %130 = vector.extract_strided_slice %125 {offsets = [0, 2, 0], sizes = [2, 1, 128], strides = [1, 1, 1]} : vector<2x64x128xbf16> to vector<2x1x128xbf16>
    %131 = vector.shape_cast %130 : vector<2x1x128xbf16> to vector<2x128xbf16>
    %132 = vector.extract_strided_slice %125 {offsets = [0, 3, 0], sizes = [2, 1, 128], strides = [1, 1, 1]} : vector<2x64x128xbf16> to vector<2x1x128xbf16>
    %133 = vector.shape_cast %132 : vector<2x1x128xbf16> to vector<2x128xbf16>
    %134 = vector.extract_strided_slice %125 {offsets = [0, 4, 0], sizes = [2, 1, 128], strides = [1, 1, 1]} : vector<2x64x128xbf16> to vector<2x1x128xbf16>
    %135 = vector.shape_cast %134 : vector<2x1x128xbf16> to vector<2x128xbf16>
    %136 = vector.extract_strided_slice %125 {offsets = [0, 5, 0], sizes = [2, 1, 128], strides = [1, 1, 1]} : vector<2x64x128xbf16> to vector<2x1x128xbf16>
    %137 = vector.shape_cast %136 : vector<2x1x128xbf16> to vector<2x128xbf16>
    %138 = vector.extract_strided_slice %125 {offsets = [0, 6, 0], sizes = [2, 1, 128], strides = [1, 1, 1]} : vector<2x64x128xbf16> to vector<2x1x128xbf16>
    %139 = vector.shape_cast %138 : vector<2x1x128xbf16> to vector<2x128xbf16>
    %140 = vector.extract_strided_slice %125 {offsets = [0, 7, 0], sizes = [2, 1, 128], strides = [1, 1, 1]} : vector<2x64x128xbf16> to vector<2x1x128xbf16>
    %141 = vector.shape_cast %140 : vector<2x1x128xbf16> to vector<2x128xbf16>
    %142 = vector.extract_strided_slice %125 {offsets = [0, 8, 0], sizes = [2, 1, 128], strides = [1, 1, 1]} : vector<2x64x128xbf16> to vector<2x1x128xbf16>
    %143 = vector.shape_cast %142 : vector<2x1x128xbf16> to vector<2x128xbf16>
    %144 = vector.extract_strided_slice %125 {offsets = [0, 9, 0], sizes = [2, 1, 128], strides = [1, 1, 1]} : vector<2x64x128xbf16> to vector<2x1x128xbf16>
    %145 = vector.shape_cast %144 : vector<2x1x128xbf16> to vector<2x128xbf16>
    %146 = vector.extract_strided_slice %125 {offsets = [0, 10, 0], sizes = [2, 1, 128], strides = [1, 1, 1]} : vector<2x64x128xbf16> to vector<2x1x128xbf16>
    %147 = vector.shape_cast %146 : vector<2x1x128xbf16> to vector<2x128xbf16>
    %148 = vector.extract_strided_slice %125 {offsets = [0, 11, 0], sizes = [2, 1, 128], strides = [1, 1, 1]} : vector<2x64x128xbf16> to vector<2x1x128xbf16>
    %149 = vector.shape_cast %148 : vector<2x1x128xbf16> to vector<2x128xbf16>
    %150 = vector.extract_strided_slice %125 {offsets = [0, 12, 0], sizes = [2, 1, 128], strides = [1, 1, 1]} : vector<2x64x128xbf16> to vector<2x1x128xbf16>
    %151 = vector.shape_cast %150 : vector<2x1x128xbf16> to vector<2x128xbf16>
    %152 = vector.extract_strided_slice %125 {offsets = [0, 13, 0], sizes = [2, 1, 128], strides = [1, 1, 1]} : vector<2x64x128xbf16> to vector<2x1x128xbf16>
    %153 = vector.shape_cast %152 : vector<2x1x128xbf16> to vector<2x128xbf16>
    %154 = vector.extract_strided_slice %125 {offsets = [0, 14, 0], sizes = [2, 1, 128], strides = [1, 1, 1]} : vector<2x64x128xbf16> to vector<2x1x128xbf16>
    %155 = vector.shape_cast %154 : vector<2x1x128xbf16> to vector<2x128xbf16>
    %156 = vector.extract_strided_slice %125 {offsets = [0, 15, 0], sizes = [2, 1, 128], strides = [1, 1, 1]} : vector<2x64x128xbf16> to vector<2x1x128xbf16>
    %157 = vector.shape_cast %156 : vector<2x1x128xbf16> to vector<2x128xbf16>
    %158 = vector.extract_strided_slice %125 {offsets = [0, 16, 0], sizes = [2, 1, 128], strides = [1, 1, 1]} : vector<2x64x128xbf16> to vector<2x1x128xbf16>
    %159 = vector.shape_cast %158 : vector<2x1x128xbf16> to vector<2x128xbf16>
    %160 = vector.extract_strided_slice %125 {offsets = [0, 17, 0], sizes = [2, 1, 128], strides = [1, 1, 1]} : vector<2x64x128xbf16> to vector<2x1x128xbf16>
    %161 = vector.shape_cast %160 : vector<2x1x128xbf16> to vector<2x128xbf16>
    %162 = vector.extract_strided_slice %125 {offsets = [0, 18, 0], sizes = [2, 1, 128], strides = [1, 1, 1]} : vector<2x64x128xbf16> to vector<2x1x128xbf16>
    %163 = vector.shape_cast %162 : vector<2x1x128xbf16> to vector<2x128xbf16>
    %164 = vector.extract_strided_slice %125 {offsets = [0, 19, 0], sizes = [2, 1, 128], strides = [1, 1, 1]} : vector<2x64x128xbf16> to vector<2x1x128xbf16>
    %165 = vector.shape_cast %164 : vector<2x1x128xbf16> to vector<2x128xbf16>
    %166 = vector.extract_strided_slice %125 {offsets = [0, 20, 0], sizes = [2, 1, 128], strides = [1, 1, 1]} : vector<2x64x128xbf16> to vector<2x1x128xbf16>
    %167 = vector.shape_cast %166 : vector<2x1x128xbf16> to vector<2x128xbf16>
    %168 = vector.extract_strided_slice %125 {offsets = [0, 21, 0], sizes = [2, 1, 128], strides = [1, 1, 1]} : vector<2x64x128xbf16> to vector<2x1x128xbf16>
    %169 = vector.shape_cast %168 : vector<2x1x128xbf16> to vector<2x128xbf16>
    %170 = vector.extract_strided_slice %125 {offsets = [0, 22, 0], sizes = [2, 1, 128], strides = [1, 1, 1]} : vector<2x64x128xbf16> to vector<2x1x128xbf16>
    %171 = vector.shape_cast %170 : vector<2x1x128xbf16> to vector<2x128xbf16>
    %172 = vector.extract_strided_slice %125 {offsets = [0, 23, 0], sizes = [2, 1, 128], strides = [1, 1, 1]} : vector<2x64x128xbf16> to vector<2x1x128xbf16>
    %173 = vector.shape_cast %172 : vector<2x1x128xbf16> to vector<2x128xbf16>
    %174 = vector.extract_strided_slice %125 {offsets = [0, 24, 0], sizes = [2, 1, 128], strides = [1, 1, 1]} : vector<2x64x128xbf16> to vector<2x1x128xbf16>
    %175 = vector.shape_cast %174 : vector<2x1x128xbf16> to vector<2x128xbf16>
    %176 = vector.extract_strided_slice %125 {offsets = [0, 25, 0], sizes = [2, 1, 128], strides = [1, 1, 1]} : vector<2x64x128xbf16> to vector<2x1x128xbf16>
    %177 = vector.shape_cast %176 : vector<2x1x128xbf16> to vector<2x128xbf16>
    %178 = vector.extract_strided_slice %125 {offsets = [0, 26, 0], sizes = [2, 1, 128], strides = [1, 1, 1]} : vector<2x64x128xbf16> to vector<2x1x128xbf16>
    %179 = vector.shape_cast %178 : vector<2x1x128xbf16> to vector<2x128xbf16>
    %180 = vector.extract_strided_slice %125 {offsets = [0, 27, 0], sizes = [2, 1, 128], strides = [1, 1, 1]} : vector<2x64x128xbf16> to vector<2x1x128xbf16>
    %181 = vector.shape_cast %180 : vector<2x1x128xbf16> to vector<2x128xbf16>
    %182 = vector.extract_strided_slice %125 {offsets = [0, 28, 0], sizes = [2, 1, 128], strides = [1, 1, 1]} : vector<2x64x128xbf16> to vector<2x1x128xbf16>
    %183 = vector.shape_cast %182 : vector<2x1x128xbf16> to vector<2x128xbf16>
    %184 = vector.extract_strided_slice %125 {offsets = [0, 29, 0], sizes = [2, 1, 128], strides = [1, 1, 1]} : vector<2x64x128xbf16> to vector<2x1x128xbf16>
    %185 = vector.shape_cast %184 : vector<2x1x128xbf16> to vector<2x128xbf16>
    %186 = vector.extract_strided_slice %125 {offsets = [0, 30, 0], sizes = [2, 1, 128], strides = [1, 1, 1]} : vector<2x64x128xbf16> to vector<2x1x128xbf16>
    %187 = vector.shape_cast %186 : vector<2x1x128xbf16> to vector<2x128xbf16>
    %188 = vector.extract_strided_slice %125 {offsets = [0, 31, 0], sizes = [2, 1, 128], strides = [1, 1, 1]} : vector<2x64x128xbf16> to vector<2x1x128xbf16>
    %189 = vector.shape_cast %188 : vector<2x1x128xbf16> to vector<2x128xbf16>
    %190 = vector.extract_strided_slice %125 {offsets = [0, 32, 0], sizes = [2, 1, 128], strides = [1, 1, 1]} : vector<2x64x128xbf16> to vector<2x1x128xbf16>
    %191 = vector.shape_cast %190 : vector<2x1x128xbf16> to vector<2x128xbf16>
    %192 = vector.extract_strided_slice %125 {offsets = [0, 33, 0], sizes = [2, 1, 128], strides = [1, 1, 1]} : vector<2x64x128xbf16> to vector<2x1x128xbf16>
    %193 = vector.shape_cast %192 : vector<2x1x128xbf16> to vector<2x128xbf16>
    %194 = vector.extract_strided_slice %125 {offsets = [0, 34, 0], sizes = [2, 1, 128], strides = [1, 1, 1]} : vector<2x64x128xbf16> to vector<2x1x128xbf16>
    %195 = vector.shape_cast %194 : vector<2x1x128xbf16> to vector<2x128xbf16>
    %196 = vector.extract_strided_slice %125 {offsets = [0, 35, 0], sizes = [2, 1, 128], strides = [1, 1, 1]} : vector<2x64x128xbf16> to vector<2x1x128xbf16>
    %197 = vector.shape_cast %196 : vector<2x1x128xbf16> to vector<2x128xbf16>
    %198 = vector.extract_strided_slice %125 {offsets = [0, 36, 0], sizes = [2, 1, 128], strides = [1, 1, 1]} : vector<2x64x128xbf16> to vector<2x1x128xbf16>
    %199 = vector.shape_cast %198 : vector<2x1x128xbf16> to vector<2x128xbf16>
    %200 = vector.extract_strided_slice %125 {offsets = [0, 37, 0], sizes = [2, 1, 128], strides = [1, 1, 1]} : vector<2x64x128xbf16> to vector<2x1x128xbf16>
    %201 = vector.shape_cast %200 : vector<2x1x128xbf16> to vector<2x128xbf16>
    %202 = vector.extract_strided_slice %125 {offsets = [0, 38, 0], sizes = [2, 1, 128], strides = [1, 1, 1]} : vector<2x64x128xbf16> to vector<2x1x128xbf16>
    %203 = vector.shape_cast %202 : vector<2x1x128xbf16> to vector<2x128xbf16>
    %204 = vector.extract_strided_slice %125 {offsets = [0, 39, 0], sizes = [2, 1, 128], strides = [1, 1, 1]} : vector<2x64x128xbf16> to vector<2x1x128xbf16>
    %205 = vector.shape_cast %204 : vector<2x1x128xbf16> to vector<2x128xbf16>
    %206 = vector.extract_strided_slice %125 {offsets = [0, 40, 0], sizes = [2, 1, 128], strides = [1, 1, 1]} : vector<2x64x128xbf16> to vector<2x1x128xbf16>
    %207 = vector.shape_cast %206 : vector<2x1x128xbf16> to vector<2x128xbf16>
    %208 = vector.extract_strided_slice %125 {offsets = [0, 41, 0], sizes = [2, 1, 128], strides = [1, 1, 1]} : vector<2x64x128xbf16> to vector<2x1x128xbf16>
    %209 = vector.shape_cast %208 : vector<2x1x128xbf16> to vector<2x128xbf16>
    %210 = vector.extract_strided_slice %125 {offsets = [0, 42, 0], sizes = [2, 1, 128], strides = [1, 1, 1]} : vector<2x64x128xbf16> to vector<2x1x128xbf16>
    %211 = vector.shape_cast %210 : vector<2x1x128xbf16> to vector<2x128xbf16>
    %212 = vector.extract_strided_slice %125 {offsets = [0, 43, 0], sizes = [2, 1, 128], strides = [1, 1, 1]} : vector<2x64x128xbf16> to vector<2x1x128xbf16>
    %213 = vector.shape_cast %212 : vector<2x1x128xbf16> to vector<2x128xbf16>
    %214 = vector.extract_strided_slice %125 {offsets = [0, 44, 0], sizes = [2, 1, 128], strides = [1, 1, 1]} : vector<2x64x128xbf16> to vector<2x1x128xbf16>
    %215 = vector.shape_cast %214 : vector<2x1x128xbf16> to vector<2x128xbf16>
    %216 = vector.extract_strided_slice %125 {offsets = [0, 45, 0], sizes = [2, 1, 128], strides = [1, 1, 1]} : vector<2x64x128xbf16> to vector<2x1x128xbf16>
    %217 = vector.shape_cast %216 : vector<2x1x128xbf16> to vector<2x128xbf16>
    %218 = vector.extract_strided_slice %125 {offsets = [0, 46, 0], sizes = [2, 1, 128], strides = [1, 1, 1]} : vector<2x64x128xbf16> to vector<2x1x128xbf16>
    %219 = vector.shape_cast %218 : vector<2x1x128xbf16> to vector<2x128xbf16>
    %220 = vector.extract_strided_slice %125 {offsets = [0, 47, 0], sizes = [2, 1, 128], strides = [1, 1, 1]} : vector<2x64x128xbf16> to vector<2x1x128xbf16>
    %221 = vector.shape_cast %220 : vector<2x1x128xbf16> to vector<2x128xbf16>
    %222 = vector.extract_strided_slice %125 {offsets = [0, 48, 0], sizes = [2, 1, 128], strides = [1, 1, 1]} : vector<2x64x128xbf16> to vector<2x1x128xbf16>
    %223 = vector.shape_cast %222 : vector<2x1x128xbf16> to vector<2x128xbf16>
    %224 = vector.extract_strided_slice %125 {offsets = [0, 49, 0], sizes = [2, 1, 128], strides = [1, 1, 1]} : vector<2x64x128xbf16> to vector<2x1x128xbf16>
    %225 = vector.shape_cast %224 : vector<2x1x128xbf16> to vector<2x128xbf16>
    %226 = vector.extract_strided_slice %125 {offsets = [0, 50, 0], sizes = [2, 1, 128], strides = [1, 1, 1]} : vector<2x64x128xbf16> to vector<2x1x128xbf16>
    %227 = vector.shape_cast %226 : vector<2x1x128xbf16> to vector<2x128xbf16>
    %228 = vector.extract_strided_slice %125 {offsets = [0, 51, 0], sizes = [2, 1, 128], strides = [1, 1, 1]} : vector<2x64x128xbf16> to vector<2x1x128xbf16>
    %229 = vector.shape_cast %228 : vector<2x1x128xbf16> to vector<2x128xbf16>
    %230 = vector.extract_strided_slice %125 {offsets = [0, 52, 0], sizes = [2, 1, 128], strides = [1, 1, 1]} : vector<2x64x128xbf16> to vector<2x1x128xbf16>
    %231 = vector.shape_cast %230 : vector<2x1x128xbf16> to vector<2x128xbf16>
    %232 = vector.extract_strided_slice %125 {offsets = [0, 53, 0], sizes = [2, 1, 128], strides = [1, 1, 1]} : vector<2x64x128xbf16> to vector<2x1x128xbf16>
    %233 = vector.shape_cast %232 : vector<2x1x128xbf16> to vector<2x128xbf16>
    %234 = vector.extract_strided_slice %125 {offsets = [0, 54, 0], sizes = [2, 1, 128], strides = [1, 1, 1]} : vector<2x64x128xbf16> to vector<2x1x128xbf16>
    %235 = vector.shape_cast %234 : vector<2x1x128xbf16> to vector<2x128xbf16>
    %236 = vector.extract_strided_slice %125 {offsets = [0, 55, 0], sizes = [2, 1, 128], strides = [1, 1, 1]} : vector<2x64x128xbf16> to vector<2x1x128xbf16>
    %237 = vector.shape_cast %236 : vector<2x1x128xbf16> to vector<2x128xbf16>
    %238 = vector.extract_strided_slice %125 {offsets = [0, 56, 0], sizes = [2, 1, 128], strides = [1, 1, 1]} : vector<2x64x128xbf16> to vector<2x1x128xbf16>
    %239 = vector.shape_cast %238 : vector<2x1x128xbf16> to vector<2x128xbf16>
    %240 = vector.extract_strided_slice %125 {offsets = [0, 57, 0], sizes = [2, 1, 128], strides = [1, 1, 1]} : vector<2x64x128xbf16> to vector<2x1x128xbf16>
    %241 = vector.shape_cast %240 : vector<2x1x128xbf16> to vector<2x128xbf16>
    %242 = vector.extract_strided_slice %125 {offsets = [0, 58, 0], sizes = [2, 1, 128], strides = [1, 1, 1]} : vector<2x64x128xbf16> to vector<2x1x128xbf16>
    %243 = vector.shape_cast %242 : vector<2x1x128xbf16> to vector<2x128xbf16>
    %244 = vector.extract_strided_slice %125 {offsets = [0, 59, 0], sizes = [2, 1, 128], strides = [1, 1, 1]} : vector<2x64x128xbf16> to vector<2x1x128xbf16>
    %245 = vector.shape_cast %244 : vector<2x1x128xbf16> to vector<2x128xbf16>
    %246 = vector.extract_strided_slice %125 {offsets = [0, 60, 0], sizes = [2, 1, 128], strides = [1, 1, 1]} : vector<2x64x128xbf16> to vector<2x1x128xbf16>
    %247 = vector.shape_cast %246 : vector<2x1x128xbf16> to vector<2x128xbf16>
    %248 = vector.extract_strided_slice %125 {offsets = [0, 61, 0], sizes = [2, 1, 128], strides = [1, 1, 1]} : vector<2x64x128xbf16> to vector<2x1x128xbf16>
    %249 = vector.shape_cast %248 : vector<2x1x128xbf16> to vector<2x128xbf16>
    %250 = vector.extract_strided_slice %125 {offsets = [0, 62, 0], sizes = [2, 1, 128], strides = [1, 1, 1]} : vector<2x64x128xbf16> to vector<2x1x128xbf16>
    %251 = vector.shape_cast %250 : vector<2x1x128xbf16> to vector<2x128xbf16>
    %252 = vector.extract_strided_slice %125 {offsets = [0, 63, 0], sizes = [2, 1, 128], strides = [1, 1, 1]} : vector<2x64x128xbf16> to vector<2x1x128xbf16>
    %253 = vector.shape_cast %252 : vector<2x1x128xbf16> to vector<2x128xbf16>
    %254 = tpu.concatenate %127, %129, %131, %133, %135, %137, %139, %141, %143, %145, %147, %149, %151, %153, %155, %157 in 1 : vector<2x128xbf16>, vector<2x128xbf16>, vector<2x128xbf16>, vector<2x128xbf16>, vector<2x128xbf16>, vector<2x128xbf16>, vector<2x128xbf16>, vector<2x128xbf16>, vector<2x128xbf16>, vector<2x128xbf16>, vector<2x128xbf16>, vector<2x128xbf16>, vector<2x128xbf16>, vector<2x128xbf16>, vector<2x128xbf16>, vector<2x128xbf16> -> vector<2x2048xbf16>
    %255 = tpu.concatenate %159, %161, %163, %165, %167, %169, %171, %173, %175, %177, %179, %181, %183, %185, %187, %189 in 1 : vector<2x128xbf16>, vector<2x128xbf16>, vector<2x128xbf16>, vector<2x128xbf16>, vector<2x128xbf16>, vector<2x128xbf16>, vector<2x128xbf16>, vector<2x128xbf16>, vector<2x128xbf16>, vector<2x128xbf16>, vector<2x128xbf16>, vector<2x128xbf16>, vector<2x128xbf16>, vector<2x128xbf16>, vector<2x128xbf16>, vector<2x128xbf16> -> vector<2x2048xbf16>
    %256 = tpu.concatenate %191, %193, %195, %197, %199, %201, %203, %205, %207, %209, %211, %213, %215, %217, %219, %221 in 1 : vector<2x128xbf16>, vector<2x128xbf16>, vector<2x128xbf16>, vector<2x128xbf16>, vector<2x128xbf16>, vector<2x128xbf16>, vector<2x128xbf16>, vector<2x128xbf16>, vector<2x128xbf16>, vector<2x128xbf16>, vector<2x128xbf16>, vector<2x128xbf16>, vector<2x128xbf16>, vector<2x128xbf16>, vector<2x128xbf16>, vector<2x128xbf16> -> vector<2x2048xbf16>
    %257 = tpu.concatenate %223, %225, %227, %229, %231, %233, %235, %237, %239, %241, %243, %245, %247, %249, %251, %253 in 1 : vector<2x128xbf16>, vector<2x128xbf16>, vector<2x128xbf16>, vector<2x128xbf16>, vector<2x128xbf16>, vector<2x128xbf16>, vector<2x128xbf16>, vector<2x128xbf16>, vector<2x128xbf16>, vector<2x128xbf16>, vector<2x128xbf16>, vector<2x128xbf16>, vector<2x128xbf16>, vector<2x128xbf16>, vector<2x128xbf16>, vector<2x128xbf16> -> vector<2x2048xbf16>
    %258 = tpu.concatenate %254, %255, %256, %257 in 1 : vector<2x2048xbf16>, vector<2x2048xbf16>, vector<2x2048xbf16>, vector<2x2048xbf16> -> vector<2x8192xbf16>
    %c0_124 = arith.constant 0 : index
    %c0_125 = arith.constant 0 : index
    %259 = vector.load %arg5[%c0_124, %c0_125] : memref<8192x32xbf16, #tpu.memory_space<vmem>>, vector<8192x32xbf16>
    %cst_126 = arith.constant dense<0.000000e+00> : vector<2x32xf32>
    %260 = tpu.matmul %258, %259, %cst_126 {dimension_numbers = #tpu.dot_dimension_numbers<[1], [0], [0], [1], [0, 0, 1, 1], [], []>} : vector<2x8192xbf16>, vector<8192x32xbf16>, vector<2x32xf32> -> vector<2x32xf32>
    %c0_127 = arith.constant 0 : index
    %c0_128 = arith.constant 0 : index
    %261 = vector.load %arg6[%c0_127, %c0_128] : memref<1x32xf32, #tpu.memory_space<vmem>>, vector<1x32xf32>
    %262 = vector.broadcast %261 : vector<1x32xf32> to vector<2x32xf32>
    %263 = arith.addf %260, %262 : vector<2x32xf32>
    %c0_129 = arith.constant 0 : index
    %c0_130 = arith.constant 0 : index
    %264 = vector.load %arg7[%c0_129, %c0_130] : memref<2x32xf32, #tpu.memory_space<vmem>>, vector<2x32xf32>
    tpu.vector_store %arg7[%c0_129, %c0_130], %263 {strides = array<i32>} : memref<2x32xf32, #tpu.memory_space<vmem>>, vector<2x32xf32>,
    return
  }
}

</mosaic_0001>

<bundles_post_ra>
// kernel: encoder_forward.1
= control target key start
LH: loop header
LB: loop body
LE: loop exit
PB: predicated region body
PF: predicated region fallthrough
CT: control target
= control target key end

     0   :  { %v13069_v31 = vmov 0.0   ;;  %vm4158_vm0 = vcmask 1041409   ;;  %vm9865_vm1 = vcmask 254976   ;;  %s15998_s1 = inlined_call_operand.vmem [shape: bf16[128,128], index: 1, kind: input, shape index: {}]   ;;  %s15999_s0 = inlined_call_operand.vmem [shape: bf16[512,128], index: 0, kind: input, shape index: {}]   ;;  %s16000_s3 = inlined_call_operand.vmem [shape: bf16[2048,128], index: 3, kind: input, shape index: {}]   ;;  %s16001_s2 = inlined_call_operand.vmem [shape: f32[1,128], index: 2, kind: input, shape index: {}]   ;;  %s16002_s5 = inlined_call_operand.vmem [shape: bf16[8192,32], index: 5, kind: input, shape index: {}]   ;;  %s16003_s4 = inlined_call_operand.vmem [shape: f32[1,128], index: 4, kind: input, shape index: {}]   ;;  %s16004_s6 = inlined_call_operand.vmem [shape: f32[1,32], index: 6, kind: input, shape index: {}]   ;;  %s16005_s7 = inlined_call_operand.vmem [shape: f32[2,32], index: 7, kind: output, shape index: {}]  }
   0x1   :  { %v12387_v0 = vld [vmem:[%s15998_s1] sm:$0xff]   ;;  %v12388_v1 = vld [vmem:[%s15998_s1 + $0x8] sm:$0xff]   ;;  %v12389_v2 = vld [vmem:[%s15998_s1 + $0x10] sm:$0xff]   ;;  %713 = vst [vmem:[#allocation2 + $0x30] sm:$0xff] %v13069_v31 }
   0x2   :  { %11554 = vmatprep.subr.bf16.mxu0 %v12387_v0  ;;  %v12390_v3 = vld [vmem:[%s15998_s1 + $0x18] sm:$0xff]   ;;  %v12395_v4 = vld [vmem:[%s15999_s0] sm:$0xff]   ;;  %v12392_v6 = vld [vmem:[%s15998_s1 + $0x28] sm:$0xff]   ;;  %714 = vst [vmem:[#allocation2 + $0x38] sm:$0x1] %v13069_v31 }
   0x3   :  { %11555 = vmatpush3.bf16.msra.mxu0 %v12387_v0  ;;  %11570 = vmatprep.mubr.bf16.mxu0 %v12395_v4  ;;  %v12391_v5 = vld [vmem:[%s15998_s1 + $0x20] sm:$0xff]   ;;  %v12393_v7 = vld [vmem:[%s15998_s1 + $0x30] sm:$0xff]   ;;  %v12394_v8 = vld [vmem:[%s15998_s1 + $0x38] sm:$0xff]   ;;  %707 = vst [vmem:[#allocation2] sm:$0xff] %v13069_v31 }
   0x4   :  { %11556 = vmatprep.subr.bf16.mxu0 %v12388_v1  ;;  %v12396_v9 = vld [vmem:[%s15999_s0 + $0x8] sm:$0xff]   ;;  %v12397_v10 = vld [vmem:[%s15999_s0 + $0x10] sm:$0xff]   ;;  %v12398_v11 = vld [vmem:[%s15999_s0 + $0x18] sm:$0xff]   ;;  %708 = vst [vmem:[#allocation2 + $0x8] sm:$0x1] %v13069_v31 }
   0x5   :  { %v12399_v12 = vld [vmem:[%s15999_s0 + $0x20] sm:$0xff]   ;;  %v12400_v13 = vld [vmem:[%s15999_s0 + $0x28] sm:$0xff]   ;;  %v12401_v14 = vld [vmem:[%s15999_s0 + $0x30] sm:$0xff]   ;;  %709 = vst [vmem:[#allocation2 + $0x10] sm:$0xff] %v13069_v31 }
   0x6   :  { %v12402_v15 = vld [vmem:[%s15999_s0 + $0x38] sm:$0xff]   ;;  %v12403_v16 = vld [vmem:[%s15999_s0 + $0x40] sm:$0xff]   ;;  %v12404_v17 = vld [vmem:[%s15999_s0 + $0x48] sm:$0xff]   ;;  %710 = vst [vmem:[#allocation2 + $0x18] sm:$0x1] %v13069_v31 }
   0x7   :  { %11557 = vmatpush3.bf16.msra.mxu0 %v12388_v1  ;;  %v12405_v18 = vld [vmem:[%s15999_s0 + $0x50] sm:$0xff]   ;;  %v12406_v19 = vld [vmem:[%s15999_s0 + $0x58] sm:$0xff]   ;;  %v12407_v20 = vld [vmem:[%s15999_s0 + $0x60] sm:$0xff]   ;;  %711 = vst [vmem:[#allocation2 + $0x20] sm:$0xff] %v13069_v31 }
   0x8   :  { %11558 = vmatprep.subr.bf16.mxu0 %v12389_v2  ;;  %v12408_v21 = vld [vmem:[%s15999_s0 + $0x68] sm:$0xff]   ;;  %v12409_v22 = vld [vmem:[%s15999_s0 + $0x70] sm:$0xff]   ;;  %v12410_v23 = vld [vmem:[%s15999_s0 + $0x78] sm:$0xff]   ;;  %712 = vst [vmem:[#allocation2 + $0x28] sm:$0x1] %v13069_v31 }
   0x9   :  { %v12411_v24 = vld [vmem:[%s15999_s0 + $0x80] sm:$0xff]   ;;  %v12412_v25 = vld [vmem:[%s15999_s0 + $0x88] sm:$0xff]   ;;  %v12413_v26 = vld [vmem:[%s15999_s0 + $0x90] sm:$0xff]   ;;  %715 = vst [vmem:[#allocation2 + $0x40] sm:$0xff] %v13069_v31 }
   0xa   :  { %v12414_v27 = vld [vmem:[%s15999_s0 + $0x98] sm:$0xff]   ;;  %v12415_v28 = vld [vmem:[%s15999_s0 + $0xa0] sm:$0xff]   ;;  %v12416_v29 = vld [vmem:[%s15999_s0 + $0xa8] sm:$0xff]   ;;  %716 = vst [vmem:[#allocation2 + $0x48] sm:$0x1] %v13069_v31 }
   0xb   :  { %11559 = vmatpush3.bf16.msra.mxu0 %v12389_v2  ;;  %v12417_v30 = vld [vmem:[%s15999_s0 + $0xb0] sm:$0xff]   ;;  %717 = vst [vmem:[#allocation2 + $0x50] sm:$0xff] %v13069_v31  ;;  %718 = vst [vmem:[#allocation2 + $0x58] sm:$0x1] %v13069_v31  ;;  %v12418_v32 = vld [vmem:[%s15999_s0 + $0xb8] sm:$0xff]  }
   0xc   :  { %11560 = vmatprep.subr.bf16.mxu0 %v12390_v3  ;;  %719 = vst [vmem:[#allocation2 + $0x60] sm:$0xff] %v13069_v31  ;;  %720 = vst [vmem:[#allocation2 + $0x68] sm:$0x1] %v13069_v31  ;;  %v12419_v33 = vld [vmem:[%s15999_s0 + $0xc0] sm:$0xff]   ;;  %v12420_v34 = vld [vmem:[%s15999_s0 + $0xc8] sm:$0xff]  }
   0xd   :  { %721 = vst [vmem:[#allocation2 + $0x70] sm:$0xff] %v13069_v31  ;;  %722 = vst [vmem:[#allocation2 + $0x78] sm:$0x1] %v13069_v31  ;;  %v12421_v35 = vld [vmem:[%s15999_s0 + $0xd0] sm:$0xff]   ;;  %v12427_v36 = vld [vmem:[%s16000_s3 + $0x40] sm:$0xff]  }
   0xe   :  { %723 = vst [vmem:[#allocation2 + $0x80] sm:$0xff] %v13069_v31  ;;  %724 = vst [vmem:[#allocation2 + $0x88] sm:$0x1] %v13069_v31  ;;  %11634 = vmatprep.subr.bf16.mxu1 %v12427_v36  ;;  %v12428_v37 = vld [vmem:[%s16000_s3 + $0x48] sm:$0xff]   ;;  %v12422_v38 = vld [vmem:[%s15999_s0 + $0xd8] sm:$0xff]  }
   0xf   :  { %11561 = vmatpush3.bf16.msra.mxu0 %v12390_v3  ;;  %725 = vst [vmem:[#allocation2 + $0x90] sm:$0xff] %v13069_v31  ;;  %726 = vst [vmem:[#allocation2 + $0x98] sm:$0x1] %v13069_v31  ;;  %11635 = vmatpush3.bf16.msra.mxu1 %v12427_v36  ;;  %v12423_v39 = vld [vmem:[%s15999_s0 + $0xe0] sm:$0xff]   ;;  %v12429_v40 = vld [vmem:[%s16000_s3 + $0x50] sm:$0xff]  }
  0x10   :  { %11562 = vmatprep.subr.bf16.mxu0 %v12391_v5  ;;  %727 = vst [vmem:[#allocation2 + $0xa0] sm:$0xff] %v13069_v31  ;;  %728 = vst [vmem:[#allocation2 + $0xa8] sm:$0x1] %v13069_v31  ;;  %11636 = vmatprep.subr.bf16.mxu1 %v12428_v37  ;;  %v12430_v41 = vld [vmem:[%s16000_s3 + $0x58] sm:$0xff]   ;;  %v12424_v42 = vld [vmem:[%s15999_s0 + $0xe8] sm:$0xff]  }
  0x11   :  { %729 = vst [vmem:[#allocation2 + $0xb0] sm:$0xff] %v13069_v31  ;;  %730 = vst [vmem:[#allocation2 + $0xb8] sm:$0x1] %v13069_v31  ;;  %v12425_v43 = vld [vmem:[%s15999_s0 + $0xf0] sm:$0xff]   ;;  %v12431_v44 = vld [vmem:[%s16000_s3 + $0x60] sm:$0xff]  }
  0x12   :  { %731 = vst [vmem:[#allocation2 + $0xc0] sm:$0xff] %v13069_v31  ;;  %732 = vst [vmem:[#allocation2 + $0xc8] sm:$0x1] %v13069_v31  ;;  %v12432_v45 = vld [vmem:[%s16000_s3 + $0x68] sm:$0xff]   ;;  %v12426_v46 = vld [vmem:[%s15999_s0 + $0xf8] sm:$0xff]  }
  0x13   :  { %11563 = vmatpush3.bf16.msra.mxu0 %v12391_v5  ;;  %733 = vst [vmem:[#allocation2 + $0xd0] sm:$0xff] %v13069_v31  ;;  %734 = vst [vmem:[#allocation2 + $0xd8] sm:$0x1] %v13069_v31  ;;  %11637 = vmatpush3.bf16.msra.mxu1 %v12428_v37  ;;  %v12433_v47 = vld [vmem:[%s16000_s3 + $0x70] sm:$0xff]   ;;  %v12434_v48 = vld [vmem:[%s16000_s3 + $0x78] sm:$0xff]  }
  0x14   :  { %11564 = vmatprep.subr.bf16.mxu0 %v12392_v6  ;;  %735 = vst [vmem:[#allocation2 + $0xe0] sm:$0xff] %v13069_v31  ;;  %736 = vst [vmem:[#allocation2 + $0xe8] sm:$0x1] %v13069_v31  ;;  %11638 = vmatprep.subr.bf16.mxu1 %v12429_v40  ;;  %v13367_v49 = vld [vmem:[%s16000_s3] sm:$0xff]  }
  0x15   :  { %737 = vst [vmem:[#allocation2 + $0xf0] sm:$0xff] %v13069_v31  ;;  %738 = vst [vmem:[#allocation2 + $0xf8] sm:$0x1] %v13069_v31  ;;  %v13373_v50 = vld [vmem:[%s16001_s2] ss:$0 sm:$0xff] }
  0x16   :  { %739 = vst [vmem:[#allocation2 + $0x100] sm:$0xff] %v13069_v31  ;;  %740 = vst [vmem:[#allocation2 + $0x108] sm:$0x1] %v13069_v31 }
  0x17   :  { %11565 = vmatpush3.bf16.msra.mxu0 %v12392_v6  ;;  %741 = vst [vmem:[#allocation2 + $0x110] sm:$0xff] %v13069_v31  ;;  %742 = vst [vmem:[#allocation2 + $0x118] sm:$0x1] %v13069_v31  ;;  %11639 = vmatpush3.bf16.msra.mxu1 %v12429_v40 }
  0x18   :  { %11566 = vmatprep.subr.bf16.mxu0 %v12393_v7  ;;  %743 = vst [vmem:[#allocation2 + $0x120] sm:$0xff] %v13069_v31  ;;  %744 = vst [vmem:[#allocation2 + $0x128] sm:$0x1] %v13069_v31  ;;  %11640 = vmatprep.subr.bf16.mxu1 %v12430_v41 }
  0x19   :  { %746 = vst [vmem:[#allocation2 + $0x138] sm:$0x1] %v13069_v31  ;;  %748 = vst [vmem:[#allocation2 + $0x148] sm:$0x1] %v13069_v31 }
  0x1a   :  { %750 = vst [vmem:[#allocation2 + $0x158] sm:$0x1] %v13069_v31  ;;  %752 = vst [vmem:[#allocation2 + $0x168] sm:$0x1] %v13069_v31 }
  0x1b   :  { %11567 = vmatpush3.bf16.msra.mxu0 %v12393_v7  ;;  %754 = vst [vmem:[#allocation2 + $0x178] sm:$0x1] %v13069_v31  ;;  %756 = vst [vmem:[#allocation2 + $0x188] sm:$0x1] %v13069_v31  ;;  %11641 = vmatpush3.bf16.msra.mxu1 %v12430_v41 }
  0x1c   :  { %11568 = vmatprep.subr.bf16.mxu0 %v12394_v8  ;;  %758 = vst [vmem:[#allocation2 + $0x198] sm:$0x1] %v13069_v31  ;;  %760 = vst [vmem:[#allocation2 + $0x1a8] sm:$0x1] %v13069_v31  ;;  %11642 = vmatprep.subr.bf16.mxu1 %v12431_v44 }
  0x1d   :  { %761 = vst [vmem:[#allocation2 + $0x1b0] sm:$0xff] %v13069_v31  ;;  %762 = vst [vmem:[#allocation2 + $0x1b8] sm:$0x1] %v13069_v31 }
  0x1e   :  { %764 = vst [vmem:[#allocation2 + $0x1c8] sm:$0x1] %v13069_v31  ;;  %766 = vst [vmem:[#allocation2 + $0x1d8] sm:$0x1] %v13069_v31 }
  0x1f   :  { %11569 = vmatpush3.bf16.msra.mxu0 %v12394_v8  ;;  %768 = vst [vmem:[#allocation2 + $0x1e8] sm:$0x1] %v13069_v31  ;;  %770 = vst [vmem:[#allocation2 + $0x1f8] sm:$0x1] %v13069_v31  ;;  %11643 = vmatpush3.bf16.msra.mxu1 %v12431_v44 }
  0x20   :  { %772 = vst [vmem:[#allocation2 + $0x208] sm:$0x1] %v13069_v31  ;;  %774 = vst [vmem:[#allocation2 + $0x218] sm:$0x1] %v13069_v31  ;;  %11644 = vmatprep.subr.bf16.mxu1 %v12432_v45 }
  0x21   :  { %776 = vst [vmem:[#allocation2 + $0x228] sm:$0x1] %v13069_v31  ;;  %778 = vst [vmem:[#allocation2 + $0x238] sm:$0x1] %v13069_v31 }
  0x22   :  { %11571 = vmatmul.mubr.bf16.vlgmr.msra.gmra.mrb[0].mxu0 %v12396_v9  ;;  %779 = vst [vmem:[#allocation2 + $0x240] sm:$0xff] %v13069_v31  ;;  %781 = vst [vmem:[#allocation2 + $0x250] sm:$0xff] %v13069_v31 }
  0x23   :  { %11574 = vmatprep.mubr.bf16.mxu0 %v12397_v10  ;;  %782 = vst [vmem:[#allocation2 + $0x258] sm:$0x1] %v13069_v31  ;;  %783 = vst [vmem:[#allocation2 + $0x260] sm:$0xff] %v13069_v31  ;;  %11645 = vmatpush3.bf16.msra.mxu1 %v12432_v45 }
  0x24   :  { %784 = vst [vmem:[#allocation2 + $0x268] sm:$0x1] %v13069_v31  ;;  %785 = vst [vmem:[#allocation2 + $0x270] sm:$0xff] %v13069_v31  ;;  %11646 = vmatprep.subr.bf16.mxu1 %v12433_v47 }
  0x25   :  { %786 = vst [vmem:[#allocation2 + $0x278] sm:$0x1] %v13069_v31  ;;  %787 = vst [vmem:[#allocation2 + $0x280] sm:$0xff] %v13069_v31 }
  0x26   :  { %788 = vst [vmem:[#allocation2 + $0x288] sm:$0x1] %v13069_v31  ;;  %789 = vst [vmem:[#allocation2 + $0x290] sm:$0xff] %v13069_v31 }
  0x27   :  { %790 = vst [vmem:[#allocation2 + $0x298] sm:$0x1] %v13069_v31  ;;  %791 = vst [vmem:[#allocation2 + $0x2a0] sm:$0xff] %v13069_v31  ;;  %11647 = vmatpush3.bf16.msra.mxu1 %v12433_v47 }
  0x28   :  { %792 = vst [vmem:[#allocation2 + $0x2a8] sm:$0x1] %v13069_v31  ;;  %793 = vst [vmem:[#allocation2 + $0x2b0] sm:$0xff] %v13069_v31  ;;  %11648 = vmatprep.subr.bf16.mxu1 %v12434_v48 }
  0x29   :  { %794 = vst [vmem:[#allocation2 + $0x2b8] sm:$0x1] %v13069_v31  ;;  %795 = vst [vmem:[#allocation2 + $0x2c0] sm:$0xff] %v13069_v31 }
  0x2a   :  { %11575 = vmatmul.mubr.bf16.gmra.mrb[4].mxu0 %v12398_v11  ;;  %796 = vst [vmem:[#allocation2 + $0x2c8] sm:$0x1] %v13069_v31  ;;  %797 = vst [vmem:[#allocation2 + $0x2d0] sm:$0xff] %v13069_v31 }
  0x2b   :  { %11578 = vmatprep.mubr.bf16.mxu0 %v12399_v12  ;;  %799 = vst [vmem:[#allocation2 + $0x2e0] sm:$0xff] %v13069_v31  ;;  %800 = vst [vmem:[#allocation2 + $0x2e8] sm:$0x1] %v13069_v31  ;;  %11649 = vmatpush3.bf16.msra.mxu1 %v12434_v48 }
  0x2c   :  { %801 = vst [vmem:[#allocation2 + $0x2f0] sm:$0xff] %v13069_v31  ;;  %802 = vst [vmem:[#allocation2 + $0x2f8] sm:$0x1] %v13069_v31  ;;  %11666 = vmatprep.subr.bf16.mxu1 %v13367_v49 }
  0x2d   :  { %803 = vst [vmem:[#allocation2 + $0x300] sm:$0xff] %v13069_v31  ;;  %804 = vst [vmem:[#allocation2 + $0x308] sm:$0x1] %v13069_v31 }
  0x2e   :  { %805 = vst [vmem:[#allocation2 + $0x310] sm:$0xff] %v13069_v31  ;;  %806 = vst [vmem:[#allocation2 + $0x318] sm:$0x1] %v13069_v31 }
  0x2f   :  { %807 = vst [vmem:[#allocation2 + $0x320] sm:$0xff] %v13069_v31  ;;  %808 = vst [vmem:[#allocation2 + $0x328] sm:$0x1] %v13069_v31 }
  0x30   :  { %809 = vst [vmem:[#allocation2 + $0x330] sm:$0xff] %v13069_v31  ;;  %810 = vst [vmem:[#allocation2 + $0x338] sm:$0x1] %v13069_v31 }
  0x31   :  { %811 = vst [vmem:[#allocation2 + $0x340] sm:$0xff] %v13069_v31  ;;  %812 = vst [vmem:[#allocation2 + $0x348] sm:$0x1] %v13069_v31 }
  0x32   :  { %11579 = vmatmul.mubr.bf16.gmra.mrb[8].mxu0 %v12400_v13  ;;  %813 = vst [vmem:[#allocation2 + $0x350] sm:$0xff] %v13069_v31  ;;  %814 = vst [vmem:[#allocation2 + $0x358] sm:$0x1] %v13069_v31 }
  0x33   :  { %11582 = vmatprep.mubr.bf16.mxu0 %v12401_v14  ;;  %816 = vst [vmem:[#allocation2 + $0x368] sm:$0x1] %v13069_v31  ;;  %818 = vst [vmem:[#allocation2 + $0x378] sm:$0x1] %v13069_v31 }
  0x34   :  { %820 = vst [vmem:[#allocation2 + $0x388] sm:$0x1] %v13069_v31  ;;  %822 = vst [vmem:[#allocation2 + $0x398] sm:$0x1] %v13069_v31 }
  0x35   :  { %824 = vst [vmem:[#allocation2 + $0x3a8] sm:$0x1] %v13069_v31  ;;  %826 = vst [vmem:[#allocation2 + $0x3b8] sm:$0x1] %v13069_v31 }
  0x36   :  { %828 = vst [vmem:[#allocation2 + $0x3c8] sm:$0x1] %v13069_v31  ;;  %830 = vst [vmem:[#allocation2 + $0x3d8] sm:$0x1] %v13069_v31 }
  0x37   :  { %831 = vst [vmem:[#allocation2 + $0x3e0] sm:$0xff] %v13069_v31  ;;  %832 = vst [vmem:[#allocation2 + $0x3e8] sm:$0x1] %v13069_v31 }
  0x38   :  { %834 = vst [vmem:[#allocation2 + $0x3f8] sm:$0x1] %v13069_v31  ;;  %836 = vst [vmem:[#allocation2 + $0x408] sm:$0x1] %v13069_v31 }
  0x39   :  { %838 = vst [vmem:[#allocation2 + $0x418] sm:$0x1] %v13069_v31  ;;  %840 = vst [vmem:[#allocation2 + $0x428] sm:$0x1] %v13069_v31 }
  0x3a   :  { %11583 = vmatmul.mubr.bf16.gmra.mrb[12].mxu0 %v12402_v15  ;;  %842 = vst [vmem:[#allocation2 + $0x438] sm:$0x1] %v13069_v31  ;;  %844 = vst [vmem:[#allocation2 + $0x448] sm:$0x1] %v13069_v31 }
  0x3b   :  { %11586 = vmatprep.mubr.bf16.mxu0 %v12403_v16  ;;  %846 = vst [vmem:[#allocation2 + $0x458] sm:$0x1] %v13069_v31  ;;  %848 = vst [vmem:[#allocation2 + $0x468] sm:$0x1] %v13069_v31 }
  0x3c   :  { %849 = vst [vmem:[#allocation2 + $0x470] sm:$0xff] %v13069_v31  ;;  %850 = vst [vmem:[#allocation2 + $0x478] sm:$0x1] %v13069_v31 }
  0x42   :  { %11587 = vmatmul.mubr.bf16.gmra.mrb[16].mxu0 %v12404_v17 }
  0x43   :  { %11590 = vmatprep.mubr.bf16.mxu0 %v12405_v18 }
  0x4a   :  { %11591 = vmatmul.mubr.bf16.gmra.mrb[20].mxu0 %v12406_v19 }
  0x4b   :  { %11594 = vmatprep.mubr.bf16.mxu0 %v12407_v20 }
  0x52   :  { %11595 = vmatmul.mubr.bf16.gmra.mrb[24].mxu0 %v12408_v21 }
  0x53   :  { %11598 = vmatprep.mubr.bf16.mxu0 %v12409_v22 }
  0x5a   :  { %11599 = vmatmul.mubr.bf16.gmra.mrb[28].mxu0 %v12410_v23 }
  0x5b   :  { %11602 = vmatprep.mubr.bf16.mxu0 %v12411_v24 }
  0x62   :  { %11603 = vmatmul.mubr.bf16.gmra.mrb[32].mxu0 %v12412_v25 }
  0x63   :  { %11606 = vmatprep.mubr.bf16.mxu0 %v12413_v26 }
  0x6a   :  { %11607 = vmatmul.mubr.bf16.gmra.mrb[36].mxu0 %v12414_v27 }
  0x6b   :  { %11610 = vmatprep.mubr.bf16.mxu0 %v12415_v28 }
  0x72   :  { %11611 = vmatmul.mubr.bf16.gmra.mrb[40].mxu0 %v12416_v29 }
  0x73   :  { %11614 = vmatprep.mubr.bf16.mxu0 %v12417_v30 }
  0x7a   :  { %11615 = vmatmul.mubr.bf16.gmra.mrb[44].mxu0 %v12418_v32 }
  0x7b   :  { %11618 = vmatprep.mubr.bf16.mxu0 %v12419_v33 }
  0x82   :  { %11619 = vmatmul.mubr.bf16.gmra.mrb[48].mxu0 %v12420_v34 }
  0x83   :  { %11622 = vmatprep.mubr.bf16.mxu0 %v12421_v35 }
  0x8a   :  { %11623 = vmatmul.mubr.bf16.gmra.mrb[52].mxu0 %v12422_v38 }
  0x8b   :  { %11626 = vmatprep.mubr.bf16.mxu0 %v12423_v39 }
  0x92   :  { %11627 = vmatmul.mubr.bf16.gmra.mrb[56].mxu0 %v12424_v42 }
  0x93   :  { %11630 = vmatprep.mubr.bf16.mxu0 %v12425_v43 }
  0x9a   :  { %11631 = vmatmul.mubr.bf16.gmra.mrb[60].mxu0 %v12426_v46 }
  0xf5   :  { %v11572_v51 = vpop.f32.mrb[0].mxu0 }
  0xf6   :  { %v397_v52 = vadd.f32 %v11572_v51, %v13373_v50  ;;  %v388_v53 = vpop.f32.mrb[1].mxu0 }
  0xf7   :  { %v13377_v54 = vadd.f32 %v13373_v50, %v388_v53  ;;  %v11573_v55 = vpop.f32.mrb[2].mxu0 }
  0xf8   :  { %v645_v56 = vmax.f32 %v397_v52, 0.0  ;;  %v400_v57 = vadd.f32 %v11573_v55, %v13373_v50  ;;  %v391_v58 = vpop.f32.mrb[3].mxu0 }
  0xf9   :  { %v643_v59 = vmax.f32 %v13377_v54, 0.0  ;;  %v392_v60 = vadd.f32 %v13373_v50, %v391_v58 }
  0xfa   :  { %854 = vst [vmem:[#allocation2 + $0x31] sm:$0xff] %v645_v56  ;;  %v646_v61 = vmax.f32 %v400_v57, 0.0 }
  0xfb   :  { %852 = vst [vmem:[#allocation2 + $0x11] sm:$0xff] %v643_v59  ;;  %v644_v62 = vmax.f32 %v392_v60, 0.0 }
  0xfc   :  { %855 = vst [vmem:[#allocation2 + $0x41] sm:$0xff] %v646_v61 }
  0xfd   :  { %853 = vst [vmem:[#allocation2 + $0x21] sm:$0xff] %v644_v62  ;;  %v11576_v63 = vpop.f32.mrb[4].mxu0  ;;  %v13384_v0 = vpack.c.bf16 %v645_v56, %v644_v62 }
  0xfe   :  { %v413_v1 = vadd.f32 %v11576_v63, %v13373_v50  ;;  %v404_v2 = vpop.f32.mrb[5].mxu0 }
  0xff   :  { %v405_v3 = vadd.f32 %v13373_v50, %v404_v2  ;;  %v11577_v4 = vpop.f32.mrb[6].mxu0 }
 0x100   :  { %v649_v5 = vmax.f32 %v413_v1, 0.0  ;;  %v416_v6 = vadd.f32 %v11577_v4, %v13373_v50  ;;  %v407_v7 = vpop.f32.mrb[7].mxu0 }
 0x101   :  { %v647_v8 = vmax.f32 %v405_v3, 0.0  ;;  %v408_v9 = vadd.f32 %v13373_v50, %v407_v7  ;;  %v12437_v7 = vld [vmem:[%s16000_s3 + $0x10] sm:$0xff]  }
 0x102   :  { %858 = vst [vmem:[#allocation2 + $0x71] sm:$0xff] %v649_v5  ;;  %v650_v10 = vmax.f32 %v416_v6, 0.0 }
 0x103   :  { %856 = vst [vmem:[#allocation2 + $0x51] sm:$0xff] %v647_v8  ;;  %v648_v11 = vmax.f32 %v408_v9, 0.0  ;;  %v13390_v12 = vpack.c.bf16 %v647_v8, %v646_v61  ;;  %v12436_v61 = vld [vmem:[%s16000_s3 + $0x8] sm:$0xff]  }
 0x104   :  { %859 = vst [vmem:[#allocation2 + $0x81] sm:$0xff] %v650_v10 }
 0x105   :  { %857 = vst [vmem:[#allocation2 + $0x61] sm:$0xff] %v648_v11  ;;  %v11580_v13 = vpop.f32.mrb[8].mxu0  ;;  %v13392_v14 = vpack.c.bf16 %v649_v5, %v648_v11 }
 0x106   :  { %v429_v15 = vadd.f32 %v11580_v13, %v13373_v50  ;;  %v420_v16 = vpop.f32.mrb[9].mxu0  ;;  %v12438_v13 = vld [vmem:[%s16000_s3 + $0x18] sm:$0xff]  }
 0x107   :  { %v13396_v17 = vadd.f32 %v13373_v50, %v420_v16  ;;  %v11581_v18 = vpop.f32.mrb[10].mxu0 }
 0x108   :  { %v653_v19 = vmax.f32 %v429_v15, 0.0  ;;  %v432_v20 = vadd.f32 %v11581_v18, %v13373_v50  ;;  %v423_v21 = vpop.f32.mrb[11].mxu0 }
 0x109   :  { %v651_v22 = vmax.f32 %v13396_v17, 0.0  ;;  %v424_v23 = vadd.f32 %v13373_v50, %v423_v21  ;;  %v12455_v17 = vld [vmem:[%s16000_s3 + $0xe0] sm:$0xff]  }
 0x10a   :  { %862 = vst [vmem:[#allocation2 + $0xc1] sm:$0xff] %v653_v19  ;;  %v654_v24 = vmax.f32 %v432_v20, 0.0 }
 0x10b   :  { %860 = vst [vmem:[#allocation2 + $0xa1] sm:$0xff] %v651_v22  ;;  %v652_v25 = vmax.f32 %v424_v23, 0.0 }
 0x10c   :  { %863 = vst [vmem:[#allocation2 + $0xd1] sm:$0xff] %v654_v24 }
 0x10d   :  { %861 = vst [vmem:[#allocation2 + $0xb1] sm:$0xff] %v652_v25  ;;  %v11584_v26 = vpop.f32.mrb[12].mxu0  ;;  %v13403_v27 = vpack.c.bf16 %v653_v19, %v652_v25 }
 0x10e   :  { %v445_v28 = vadd.f32 %v11584_v26, %v13373_v50  ;;  %v436_v29 = vpop.f32.mrb[13].mxu0  ;;  %v12439_v26 = vld [vmem:[%s16000_s3 + $0x20] sm:$0xff]  }
 0x10f   :  { %v437_v30 = vadd.f32 %v13373_v50, %v436_v29  ;;  %v11585_v32 = vpop.f32.mrb[14].mxu0 }
 0x110   :  { %v657_v33 = vmax.f32 %v445_v28, 0.0  ;;  %v448_v34 = vadd.f32 %v11585_v32, %v13373_v50  ;;  %v439_v35 = vpop.f32.mrb[15].mxu0 }
 0x111   :  { %v655_v36 = vmax.f32 %v437_v30, 0.0  ;;  %v440_v37 = vadd.f32 %v13373_v50, %v439_v35  ;;  %v13439_v30 = vld [vmem:[#allocation2] sm:$0xff]  ;;  %v12440_v35 = vld [vmem:[%s16000_s3 + $0x28] sm:$0xff]  }
 0x112   :  { %866 = vst [vmem:[#allocation2 + $0x101] sm:$0xff] %v657_v33  ;;  %v658_v38 = vmax.f32 %v448_v34, 0.0 }
 0x113   :  { %864 = vst [vmem:[#allocation2 + $0xe1] sm:$0xff] %v655_v36  ;;  %v656_v39 = vmax.f32 %v440_v37, 0.0  ;;  %v13409_v40 = vpack.c.bf16 %v655_v36, %v654_v24 }
 0x114   :  { %867 = vst [vmem:[#allocation2 + $0x111] sm:$0xff] %v658_v38 }
 0x115   :  { %865 = vst [vmem:[#allocation2 + $0xf1] sm:$0xff] %v656_v39  ;;  %v11588_v41 = vpop.f32.mrb[16].mxu0  ;;  %v13411_v42 = vpack.c.bf16 %v657_v33, %v656_v39 }
 0x116   :  { %v461_v43 = vadd.f32 %v11588_v41, %v13373_v50  ;;  %v452_v44 = vpop.f32.mrb[17].mxu0 }
 0x117   :  { %v453_v45 = vadd.f32 %v13373_v50, %v452_v44  ;;  %v11589_v46 = vpop.f32.mrb[18].mxu0 }
 0x118   :  { %v661_v47 = vmax.f32 %v461_v43, 0.0  ;;  %v464_v48 = vadd.f32 %v11589_v46, %v13373_v50  ;;  %v455_v51 = vpop.f32.mrb[19].mxu0 }
 0x119   :  { %v659_v52 = vmax.f32 %v453_v45, 0.0  ;;  %v456_v53 = vadd.f32 %v13373_v50, %v455_v51 }
 0x11a   :  { %871 = vst [vmem:[#allocation2 + $0x150] sm:$0xff] %v661_v47  ;;  %v662_v55 = vmax.f32 %v464_v48, 0.0 }
 0x11b   :  { %869 = vst [vmem:[#allocation2 + $0x130] sm:$0xff] %v659_v52  ;;  %v660_v56 = vmax.f32 %v456_v53, 0.0  ;;  %v976_v57 = vpack.c.bf16 %v659_v52, %v13069_v31  ;;  %v920_v53 = vld [vmem:[#allocation2 + $0x10] sm:$0xff] }
 0x11c   :  { %872 = vst [vmem:[#allocation2 + $0x160] sm:$0xff] %v662_v55 }
 0x11d   :  { %870 = vst [vmem:[#allocation2 + $0x140] sm:$0xff] %v660_v56  ;;  %v11592_v58 = vpop.f32.mrb[20].mxu0  ;;  %11650 = vmatprep.mubr.bf16.mxu1 %v976_v57  ;;  %v977_v60 = vpack.c.bf16 %v661_v47, %v660_v56  ;;  %v12441_v47 = vld [vmem:[%s16000_s3 + $0x30] sm:$0xff]   ;;  %v12442_v56 = vld [vmem:[%s16000_s3 + $0x38] sm:$0xff]  }
 0x11e   :  { %v477_v62 = vadd.f32 %v11592_v58, %v13373_v50  ;;  %v468_v63 = vpop.f32.mrb[21].mxu0  ;;  %v935_v58 = vpack.c.bf16 %v920_v53, %v13439_v30 }
 0x11f   :  { %v469_v1 = vadd.f32 %v13373_v50, %v468_v63  ;;  %v11593_v2 = vpop.f32.mrb[22].mxu0  ;;  %11651 = vmatmul.mubr.bf16.vlgmr.msra.gmra.mrb[0].mxu1 %v977_v60 }
 0x120   :  { %v665_v3 = vmax.f32 %v477_v62, 0.0  ;;  %v480_v4 = vadd.f32 %v11593_v2, %v13373_v50  ;;  %v471_v31 = vpop.f32.mrb[23].mxu0  ;;  %11667 = vmatpush3.bf16.msra.mxu1 %v13367_v49 }
 0x121   :  { %v663_v5 = vmax.f32 %v469_v1, 0.0  ;;  %v472_v6 = vadd.f32 %v13373_v50, %v471_v31  ;;  %11668 = vmatprep.subr.bf16.mxu1 %v12436_v61 }
 0x122   :  { %875 = vst [vmem:[#allocation2 + $0x190] sm:$0xff] %v665_v3  ;;  %v666_v8 = vmax.f32 %v480_v4, 0.0  ;;  %v12443_v4 = vld [vmem:[%s16000_s3 + $0x80] sm:$0xff]  }
 0x123   :  { %873 = vst [vmem:[#allocation2 + $0x170] sm:$0xff] %v663_v5  ;;  %v664_v9 = vmax.f32 %v472_v6, 0.0  ;;  %v978_v10 = vpack.c.bf16 %v663_v5, %v662_v55  ;;  %v921_v6 = vld [vmem:[#allocation2 + $0x20] sm:$0xff] }
 0x124   :  { %876 = vst [vmem:[#allocation2 + $0x1a0] sm:$0xff] %v666_v8  ;;  %11669 = vmatpush3.bf16.msra.mxu1 %v12436_v61  ;;  %v924_v8 = vld [vmem:[#allocation2 + $0x50] sm:$0xff] }
 0x125   :  { %874 = vst [vmem:[#allocation2 + $0x180] sm:$0xff] %v664_v9  ;;  %v11596_v11 = vpop.f32.mrb[24].mxu0  ;;  %11654 = vmatprep.mubr.bf16.mxu1 %v978_v10  ;;  %11670 = vmatprep.subr.bf16.mxu1 %v12437_v7  ;;  %v979_v49 = vpack.c.bf16 %v665_v3, %v664_v9  ;;  %v922_v10 = vld [vmem:[#allocation2 + $0x30] sm:$0xff] }
 0x126   :  { %v493_v15 = vadd.f32 %v11596_v11, %v13373_v50  ;;  %v484_v16 = vpop.f32.mrb[25].mxu0 }
 0x127   :  { %v485_v18 = vadd.f32 %v13373_v50, %v484_v16  ;;  %v11597_v19 = vpop.f32.mrb[26].mxu0  ;;  %11655 = vmatmul.mubr.bf16.gmra.mrb[4].mxu1 %v979_v49  ;;  %v936_v49 = vpack.c.bf16 %v922_v10, %v921_v6 }
 0x128   :  { %v669_v20 = vmax.f32 %v493_v15, 0.0  ;;  %v496_v21 = vadd.f32 %v11597_v19, %v13373_v50  ;;  %v487_v23 = vpop.f32.mrb[27].mxu0  ;;  %11671 = vmatpush3.bf16.msra.mxu1 %v12437_v7  ;;  %v12444_v15 = vld [vmem:[%s16000_s3 + $0x88] sm:$0xff]  }
 0x129   :  { %v667_v24 = vmax.f32 %v485_v18, 0.0  ;;  %v488_v25 = vadd.f32 %v13373_v50, %v487_v23  ;;  %11672 = vmatprep.subr.bf16.mxu1 %v12438_v13 }
 0x12a   :  { %879 = vst [vmem:[#allocation2 + $0x1e0] sm:$0xff] %v669_v20  ;;  %v670_v28 = vmax.f32 %v496_v21, 0.0 }
 0x12b   :  { %877 = vst [vmem:[#allocation2 + $0x1c0] sm:$0xff] %v667_v24  ;;  %v668_v29 = vmax.f32 %v488_v25, 0.0  ;;  %v980_v32 = vpack.c.bf16 %v667_v24, %v13439_v30 }
 0x12c   :  { %880 = vst [vmem:[#allocation2 + $0x1f0] sm:$0xff] %v670_v28  ;;  %11673 = vmatpush3.bf16.msra.mxu1 %v12438_v13  ;;  %v923_v13 = vld [vmem:[#allocation2 + $0x40] sm:$0xff] }
 0x12d   :  { %878 = vst [vmem:[#allocation2 + $0x1d0] sm:$0xff] %v668_v29  ;;  %v11600_v33 = vpop.f32.mrb[28].mxu0  ;;  %11658 = vmatprep.mubr.bf16.mxu1 %v980_v32  ;;  %11674 = vmatprep.subr.bf16.mxu1 %v12439_v26  ;;  %v981_v34 = vpack.c.bf16 %v669_v20, %v668_v29  ;;  %v937_v19 = vpack.c.bf16 %v924_v8, %v923_v13  ;;  %v12445_v29 = vld [vmem:[%s16000_s3 + $0x90] sm:$0xff]  }
 0x12e   :  { %v509_v36 = vadd.f32 %v11600_v33, %v13373_v50  ;;  %v500_v37 = vpop.f32.mrb[29].mxu0 }
 0x12f   :  { %v501_v38 = vadd.f32 %v13373_v50, %v500_v37  ;;  %v11601_v39 = vpop.f32.mrb[30].mxu0  ;;  %11659 = vmatmul.mubr.bf16.gmra.mrb[8].mxu1 %v981_v34  ;;  %v925_v34 = vld [vmem:[#allocation2 + $0x60] sm:$0xff] }
 0x130   :  { %v673_v41 = vmax.f32 %v509_v36, 0.0  ;;  %v512_v43 = vadd.f32 %v11601_v39, %v13373_v50  ;;  %v503_v44 = vpop.f32.mrb[31].mxu0  ;;  %11675 = vmatpush3.bf16.msra.mxu1 %v12439_v26  ;;  %v928_v36 = vld [vmem:[#allocation2 + $0xa0] sm:$0xff] }
 0x131   :  { %v671_v45 = vmax.f32 %v501_v38, 0.0  ;;  %v504_v46 = vadd.f32 %v13373_v50, %v503_v44  ;;  %11676 = vmatprep.subr.bf16.mxu1 %v12440_v35  ;;  %v926_v38 = vld [vmem:[#allocation2 + $0x70] sm:$0xff] }
 0x132   :  { %883 = vst [vmem:[#allocation2 + $0x220] sm:$0xff] %v673_v41  ;;  %v674_v48 = vmax.f32 %v512_v43, 0.0  ;;  %v12446_v43 = vld [vmem:[%s16000_s3 + $0x98] sm:$0xff]  }
 0x133   :  { %881 = vst [vmem:[#allocation2 + $0x200] sm:$0xff] %v671_v45  ;;  %v672_v51 = vmax.f32 %v504_v46, 0.0  ;;  %v982_v52 = vpack.c.bf16 %v671_v45, %v670_v28  ;;  %v939_v46 = vpack.c.bf16 %v928_v36, %v13439_v30 }
 0x134   :  { %884 = vst [vmem:[#allocation2 + $0x230] sm:$0xff] %v674_v48  ;;  %11677 = vmatpush3.bf16.msra.mxu1 %v12440_v35 }
 0x135   :  { %882 = vst [vmem:[#allocation2 + $0x210] sm:$0xff] %v672_v51  ;;  %11662 = vmatprep.mubr.bf16.mxu1 %v982_v52  ;;  %11678 = vmatprep.subr.bf16.mxu1 %v12441_v47  ;;  %v983_v55 = vpack.c.bf16 %v673_v41, %v672_v51  ;;  %v11604_v57 = vpop.f32.mrb[32].mxu0  ;;  %v938_v41 = vpack.c.bf16 %v926_v38, %v925_v34 }
 0x136   :  { %v525_v60 = vadd.f32 %v11604_v57, %v13373_v50  ;;  %v516_v61 = vpop.f32.mrb[33].mxu0  ;;  %v12447_v57 = vld [vmem:[%s16000_s3 + $0xa0] sm:$0xff]  }
 0x137   :  { %11663 = vmatmul.mubr.bf16.gmra.mrb[12].mxu1 %v983_v55  ;;  %v517_v62 = vadd.f32 %v13373_v50, %v516_v61  ;;  %v11605_v63 = vpop.f32.mrb[34].mxu0 }
 0x138   :  { %11679 = vmatpush3.bf16.msra.mxu1 %v12441_v47  ;;  %11682 = vmatprep.mubr.bf16.mxu1 %v935_v58  ;;  %v677_v1 = vmax.f32 %v525_v60, 0.0  ;;  %v528_v2 = vadd.f32 %v11605_v63, %v13373_v50  ;;  %v519_v3 = vpop.f32.mrb[35].mxu0  ;;  %v929_v60 = vld [vmem:[#allocation2 + $0xb0] sm:$0xff] }
 0x139   :  { %11680 = vmatprep.subr.bf16.mxu1 %v12442_v56  ;;  %v675_v31 = vmax.f32 %v517_v62, 0.0  ;;  %v520_v5 = vadd.f32 %v13373_v50, %v519_v3  ;;  %v932_v62 = vld [vmem:[#allocation2 + $0xe0] sm:$0xff] }
 0x13a   :  { %888 = vst [vmem:[#allocation2 + $0x261] sm:$0xff] %v677_v1  ;;  %v678_v7 = vmax.f32 %v528_v2, 0.0 }
 0x13b   :  { %886 = vst [vmem:[#allocation2 + $0x241] sm:$0xff] %v675_v31  ;;  %v676_v9 = vmax.f32 %v520_v5, 0.0 }
 0x13c   :  { %11681 = vmatpush3.bf16.msra.mxu1 %v12442_v56  ;;  %889 = vst [vmem:[#allocation2 + $0x271] sm:$0xff] %v678_v7  ;;  %v13463_v11 = vpack.c.bf16 %v678_v7, %v677_v1  ;;  %v930_v1 = vld [vmem:[#allocation2 + $0xc0] sm:$0xff] }
 0x13d   :  { %11698 = vmatprep.subr.bf16.mxu1 %v12443_v4  ;;  %887 = vst [vmem:[#allocation2 + $0x251] sm:$0xff] %v676_v9  ;;  %v11608_v16 = vpop.f32.mrb[36].mxu0  ;;  %v13468_v18 = vpack.c.bf16 %v676_v9, %v675_v31  ;;  %v940_v3 = vpack.c.bf16 %v930_v1, %v929_v60  ;;  %v12448_v31 = vld [vmem:[%s16000_s3 + $0xa8] sm:$0xff]  }
 0x13e   :  { %v541_v20 = vadd.f32 %v11608_v16, %v13373_v50  ;;  %v532_v21 = vpop.f32.mrb[37].mxu0 }
 0x13f   :  { %11683 = vmatmul.mubr.bf16.vlgmr.msra.gmra.mrb[0].mxu1 %v936_v49  ;;  %v533_v23 = vadd.f32 %v13373_v50, %v532_v21  ;;  %v11609_v24 = vpop.f32.mrb[38].mxu0 }
 0x140   :  { %11699 = vmatpush3.bf16.msra.mxu1 %v12443_v4  ;;  %11686 = vmatprep.mubr.bf16.mxu1 %v937_v19  ;;  %v681_v25 = vmax.f32 %v541_v20, 0.0  ;;  %v544_v26 = vadd.f32 %v11609_v24, %v13373_v50  ;;  %v535_v28 = vpop.f32.mrb[39].mxu0  ;;  %v931_v4 = vld [vmem:[#allocation2 + $0xd0] sm:$0xff] }
 0x141   :  { %11700 = vmatprep.subr.bf16.mxu1 %v12444_v15  ;;  %v679_v32 = vmax.f32 %v533_v23, 0.0  ;;  %v536_v33 = vadd.f32 %v13373_v50, %v535_v28  ;;  %v941_v7 = vpack.c.bf16 %v932_v62, %v931_v4  ;;  %v12449_v19 = vld [vmem:[%s16000_s3 + $0xb0] sm:$0xff]   ;;  %v934_v28 = vld [vmem:[#allocation2 + $0x100] sm:$0xff] }
 0x142   :  { %892 = vst [vmem:[#allocation2 + $0x2a1] sm:$0xff] %v681_v25  ;;  %v682_v35 = vmax.f32 %v544_v26, 0.0  ;;  %v933_v23 = vld [vmem:[#allocation2 + $0xf0] sm:$0xff] }
 0x143   :  { %890 = vst [vmem:[#allocation2 + $0x281] sm:$0xff] %v679_v32  ;;  %v680_v37 = vmax.f32 %v536_v33, 0.0  ;;  %v12450_v33 = vld [vmem:[%s16000_s3 + $0xb8] sm:$0xff]  }
 0x144   :  { %11701 = vmatpush3.bf16.msra.mxu1 %v12444_v15  ;;  %893 = vst [vmem:[#allocation2 + $0x2b1] sm:$0xff] %v682_v35  ;;  %v13477_v39 = vpack.c.bf16 %v682_v35, %v681_v25  ;;  %v1290_v25 = vld [vmem:[#allocation2 + $0x1] sm:$0xff] }
 0x145   :  { %11702 = vmatprep.subr.bf16.mxu1 %v12445_v29  ;;  %891 = vst [vmem:[#allocation2 + $0x291] sm:$0xff] %v680_v37  ;;  %v11612_v44 = vpop.f32.mrb[40].mxu0  ;;  %v13482_v45 = vpack.c.bf16 %v680_v37, %v679_v32  ;;  %v942_v32 = vpack.c.bf16 %v934_v28, %v933_v23  ;;  %v1306_v36 = vpack.c.bf16 %v643_v59, %v1290_v25  ;;  %v12456_v28 = vld [vmem:[%s16000_s3 + $0xe8] sm:$0xff]  }
 0x146   :  { %v557_v47 = vadd.f32 %v11612_v44, %v13373_v50  ;;  %v548_v48 = vpop.f32.mrb[41].mxu0 }
 0x147   :  { %11687 = vmatmul.mubr.bf16.gmra.mrb[4].mxu1 %v938_v41  ;;  %v549_v51 = vadd.f32 %v13373_v50, %v548_v48  ;;  %v11613_v52 = vpop.f32.mrb[42].mxu0  ;;  %v12451_v48 = vld [vmem:[%s16000_s3 + $0xc0] sm:$0xff]  }
 0x148   :  { %11703 = vmatpush3.bf16.msra.mxu1 %v12445_v29  ;;  %11690 = vmatprep.mubr.bf16.mxu1 %v939_v46  ;;  %v685_v53 = vmax.f32 %v557_v47, 0.0  ;;  %v560_v55 = vadd.f32 %v11613_v52, %v13373_v50  ;;  %v551_v56 = vpop.f32.mrb[43].mxu0 }
 0x149   :  { %11704 = vmatprep.subr.bf16.mxu1 %v12446_v43  ;;  %v683_v58 = vmax.f32 %v549_v51, 0.0  ;;  %v552_v30 = vadd.f32 %v13373_v50, %v551_v56 }
 0x14a   :  { %896 = vst [vmem:[#allocation2 + $0x2f1] sm:$0xff] %v685_v53  ;;  %v686_v61 = vmax.f32 %v560_v55, 0.0  ;;  %v12452_v55 = vld [vmem:[%s16000_s3 + $0xc8] sm:$0xff]  }
 0x14b   :  { %894 = vst [vmem:[#allocation2 + $0x2d1] sm:$0xff] %v683_v58  ;;  %v684_v63 = vmax.f32 %v552_v30, 0.0 }
 0x14c   :  { %11705 = vmatpush3.bf16.msra.mxu1 %v12446_v43  ;;  %897 = vst [vmem:[#allocation2 + $0x301] sm:$0xff] %v686_v61  ;;  %v13492_v2 = vpack.c.bf16 %v686_v61, %v685_v53 }
 0x14d   :  { %11706 = vmatprep.subr.bf16.mxu1 %v12447_v57  ;;  %895 = vst [vmem:[#allocation2 + $0x2e1] sm:$0xff] %v684_v63  ;;  %v11616_v5 = vpop.f32.mrb[44].mxu0  ;;  %v13497_v6 = vpack.c.bf16 %v684_v63, %v683_v58 }
 0x14e   :  { %v573_v8 = vadd.f32 %v11616_v5, %v13373_v50  ;;  %v564_v9 = vpop.f32.mrb[45].mxu0  ;;  %v1298_v5 = vld [vmem:[#allocation2 + $0x91] sm:$0xff] }
 0x14f   :  { %11691 = vmatmul.mubr.bf16.gmra.mrb[8].mxu1 %v940_v3  ;;  %v565_v10 = vadd.f32 %v13373_v50, %v564_v9  ;;  %v11617_v49 = vpop.f32.mrb[46].mxu0  ;;  %v12453_v3 = vld [vmem:[%s16000_s3 + $0xd0] sm:$0xff]  }
 0x150   :  { %11707 = vmatpush3.bf16.msra.mxu1 %v12447_v57  ;;  %11694 = vmatprep.mubr.bf16.mxu1 %v941_v7  ;;  %v689_v13 = vmax.f32 %v573_v8, 0.0  ;;  %v576_v15 = vadd.f32 %v11617_v49, %v13373_v50  ;;  %v567_v16 = vpop.f32.mrb[47].mxu0  ;;  %v12454_v8 = vld [vmem:[%s16000_s3 + $0xd8] sm:$0xff]   ;;  %v1310_v49 = vpack.c.bf16 %v651_v22, %v1298_v5 }
 0x151   :  { %11708 = vmatprep.subr.bf16.mxu1 %v12448_v31  ;;  %v687_v20 = vmax.f32 %v565_v10, 0.0  ;;  %v568_v21 = vadd.f32 %v13373_v50, %v567_v16 }
 0x152   :  { %900 = vst [vmem:[#allocation2 + $0x331] sm:$0xff] %v689_v13  ;;  %v690_v24 = vmax.f32 %v576_v15, 0.0 }
 0x153   :  { %898 = vst [vmem:[#allocation2 + $0x311] sm:$0xff] %v687_v20  ;;  %v688_v26 = vmax.f32 %v568_v21, 0.0 }
 0x154   :  { %11709 = vmatpush3.bf16.msra.mxu1 %v12448_v31  ;;  %901 = vst [vmem:[#allocation2 + $0x341] sm:$0xff] %v690_v24  ;;  %v13506_v29 = vpack.c.bf16 %v690_v24, %v689_v13 }
 0x155   :  { %11710 = vmatprep.subr.bf16.mxu1 %v12449_v19  ;;  %899 = vst [vmem:[#allocation2 + $0x321] sm:$0xff] %v688_v26  ;;  %v11620_v34 = vpop.f32.mrb[48].mxu0  ;;  %v13511_v35 = vpack.c.bf16 %v688_v26, %v687_v20 }
 0x156   :  { %v589_v37 = vadd.f32 %v11620_v34, %v13373_v50  ;;  %v580_v38 = vpop.f32.mrb[49].mxu0 }
 0x157   :  { %11695 = vmatmul.mubr.bf16.gmra.mrb[12].mxu1 %v942_v32  ;;  %v581_v41 = vadd.f32 %v13373_v50, %v580_v38  ;;  %v11621_v43 = vpop.f32.mrb[50].mxu0 }
 0x158   :  { %11711 = vmatpush3.bf16.msra.mxu1 %v12449_v19  ;;  %11714 = vmatprep.mubr.bf16.mxu1 %v1306_v36  ;;  %v693_v44 = vmax.f32 %v589_v37, 0.0  ;;  %v592_v46 = vadd.f32 %v11621_v43, %v13373_v50  ;;  %v583_v47 = vpop.f32.mrb[51].mxu0 }
 0x159   :  { %11712 = vmatprep.subr.bf16.mxu1 %v12450_v33  ;;  %v691_v54 = vmax.f32 %v581_v41, 0.0  ;;  %v584_v59 = vadd.f32 %v13373_v50, %v583_v47 }
 0x15a   :  { %905 = vst [vmem:[#allocation2 + $0x380] sm:$0xff] %v693_v44  ;;  %v694_v51 = vmax.f32 %v592_v46, 0.0  ;;  %v12457_v46 = vld [vmem:[%s16000_s3 + $0xf0] sm:$0xff]  }
 0x15b   :  { %903 = vst [vmem:[#allocation2 + $0x360] sm:$0xff] %v691_v54  ;;  %v692_v52 = vmax.f32 %v584_v59, 0.0  ;;  %v1492_v59 = vld [vmem:[#allocation2 + $0x131] sm:$0xff] }
 0x15c   :  { %11713 = vmatpush3.bf16.msra.mxu1 %v12450_v33  ;;  %906 = vst [vmem:[#allocation2 + $0x390] sm:$0xff] %v694_v51  ;;  %v13522_v53 = vpack.c.bf16 %v694_v51, %v693_v44 }
 0x15d   :  { %11730 = vmatprep.subr.bf16.mxu1 %v12451_v48  ;;  %904 = vst [vmem:[#allocation2 + $0x370] sm:$0xff] %v692_v52  ;;  %v11624_v56 = vpop.f32.mrb[52].mxu0  ;;  %v13527_v57 = vpack.c.bf16 %v692_v52, %v691_v54  ;;  %v1491_v54 = vld [vmem:[#allocation2 + $0x121] sm:$0xff]  ;;  %v12458_v52 = vld [vmem:[%s16000_s3 + $0xf8] sm:$0xff]  }
 0x15e   :  { %v605_v58 = vadd.f32 %v11624_v56, %v13373_v50  ;;  %v596_v30 = vpop.f32.mrb[53].mxu0  ;;  %v1507_v56 = vpack.c.bf16 %v1492_v59, %v1491_v54  ;;  %v1698_v54 = vld [vmem:[#allocation2 + $0x2a0] sm:$0xff]  ;;  %v1699_v59 = vld [vmem:[#allocation2 + $0x2b0] sm:$0xff] }
 0x15f   :  { %11715 = vmatmul.mubr.bf16.vlgmr.msra.gmra.mrb[0].mxu1 %v13384_v0  ;;  %v597_v60 = vadd.f32 %v13373_v50, %v596_v30  ;;  %v11625_v61 = vpop.f32.mrb[54].mxu0  ;;  %v1496_v30 = vld [vmem:[#allocation2 + $0x171] sm:$0xff] }
 0x160   :  { %11731 = vmatpush3.bf16.msra.mxu1 %v12451_v48  ;;  %11718 = vmatprep.mubr.bf16.mxu1 %v13390_v12  ;;  %v697_v62 = vmax.f32 %v605_v58, 0.0  ;;  %v608_v63 = vadd.f32 %v11625_v61, %v13373_v50  ;;  %v599_v1 = vpop.f32.mrb[55].mxu0  ;;  %v1493_v58 = vld [vmem:[#allocation2 + $0x141] sm:$0xff] }
 0x161   :  { %11732 = vmatprep.subr.bf16.mxu1 %v12452_v55  ;;  %v695_v4 = vmax.f32 %v597_v60, 0.0  ;;  %v600_v31 = vadd.f32 %v13373_v50, %v599_v1  ;;  %v1494_v60 = vld [vmem:[#allocation2 + $0x151] sm:$0xff] }
 0x162   :  { %909 = vst [vmem:[#allocation2 + $0x3c0] sm:$0xff] %v697_v62  ;;  %v698_v0 = vmax.f32 %v608_v63, 0.0  ;;  %v1508_v61 = vpack.c.bf16 %v1494_v60, %v1493_v58  ;;  %v12460_v63 = vld [vmem:[%s16000_s3 + $0x108] sm:$0xff]   ;;  %v1704_v58 = vld [vmem:[#allocation2 + $0x310] sm:$0xff] }
 0x163   :  { %907 = vst [vmem:[#allocation2 + $0x3a0] sm:$0xff] %v695_v4  ;;  %v696_v7 = vmax.f32 %v600_v31, 0.0  ;;  %v1500_v31 = vld [vmem:[#allocation2 + $0x1c1] sm:$0xff]  ;;  %v1702_v60 = vld [vmem:[#allocation2 + $0x2f0] sm:$0xff] }
 0x164   :  { %11733 = vmatpush3.bf16.msra.mxu1 %v12452_v55  ;;  %910 = vst [vmem:[#allocation2 + $0x3d0] sm:$0xff] %v698_v0  ;;  %v13538_v12 = vpack.c.bf16 %v698_v0, %v697_v62  ;;  %v1495_v62 = vld [vmem:[#allocation2 + $0x161] sm:$0xff]  ;;  %v1498_v0 = vld [vmem:[#allocation2 + $0x191] sm:$0xff] }
 0x165   :  { %11734 = vmatprep.subr.bf16.mxu1 %v12453_v3  ;;  %908 = vst [vmem:[#allocation2 + $0x3b0] sm:$0xff] %v696_v7  ;;  %v11628_v9 = vpop.f32.mrb[56].mxu0  ;;  %v13543_v10 = vpack.c.bf16 %v696_v7, %v695_v4  ;;  %v1509_v1 = vpack.c.bf16 %v1496_v30, %v1495_v62  ;;  %v1499_v4 = vld [vmem:[#allocation2 + $0x1b1] sm:$0xff]  ;;  %v1705_v30 = vld [vmem:[#allocation2 + $0x320] sm:$0xff] }
 0x166   :  { %v621_v13 = vadd.f32 %v11628_v9, %v13373_v50  ;;  %v612_v15 = vpop.f32.mrb[57].mxu0  ;;  %v12462_v7 = vld [vmem:[%s16000_s3 + $0x118] sm:$0xff]   ;;  %v12463_v9 = vld [vmem:[%s16000_s3 + $0x120] sm:$0xff]   ;;  %v1714_v62 = vpack.c.bf16 %v1705_v30, %v1704_v58 }
 0x167   :  { %11719 = vmatmul.mubr.bf16.gmra.mrb[4].mxu1 %v13392_v14  ;;  %v613_v16 = vadd.f32 %v13373_v50, %v612_v15  ;;  %v11629_v19 = vpop.f32.mrb[58].mxu0  ;;  %v1502_v15 = vld [vmem:[#allocation2 + $0x1e1] sm:$0xff] }
 0x168   :  { %11735 = vmatpush3.bf16.msra.mxu1 %v12453_v3  ;;  %11722 = vmatprep.mubr.bf16.mxu1 %v1310_v49  ;;  %v701_v20 = vmax.f32 %v621_v13, 0.0  ;;  %v624_v21 = vadd.f32 %v11629_v19, %v13373_v50  ;;  %v615_v23 = vpop.f32.mrb[59].mxu0  ;;  %v1497_v3 = vld [vmem:[#allocation2 + $0x181] sm:$0xff]  ;;  %v1501_v49 = vld [vmem:[#allocation2 + $0x1d1] sm:$0xff] }
 0x169   :  { %11736 = vmatprep.subr.bf16.mxu1 %v12454_v8  ;;  %v699_v22 = vmax.f32 %v613_v16, 0.0  ;;  %v616_v24 = vadd.f32 %v13373_v50, %v615_v23  ;;  %v1510_v5 = vpack.c.bf16 %v1498_v0, %v1497_v3  ;;  %v1504_v13 = vld [vmem:[#allocation2 + $0x201] sm:$0xff]  ;;  %v1512_v16 = vpack.c.bf16 %v1502_v15, %v1501_v49  ;;  %v1503_v19 = vld [vmem:[#allocation2 + $0x1f1] sm:$0xff] }
 0x16a   :  { %913 = vst [vmem:[#allocation2 + $0x410] sm:$0xff] %v701_v20  ;;  %v702_v25 = vmax.f32 %v624_v21, 0.0  ;;  %v1513_v21 = vpack.c.bf16 %v1504_v13, %v1503_v19  ;;  %v12465_v23 = vld [vmem:[%s16000_s3 + $0x130] sm:$0xff]   ;;  %v12474_v0 = vld [vmem:[%s16000_s3 + $0x178] sm:$0xff]   ;;  %v2499_v58 = vld [vmem:[#allocation2 + $0x40] sm:$0xff] }
 0x16b   :  { %911 = vst [vmem:[#allocation2 + $0x3f0] sm:$0xff] %v699_v22  ;;  %v700_v14 = vmax.f32 %v616_v24, 0.0  ;;  %v1505_v24 = vld [vmem:[#allocation2 + $0x211] sm:$0xff]  ;;  %v2501_v30 = vld [vmem:[#allocation2 + $0x60] sm:$0xff] }
 0x16c   :  { %11737 = vmatpush3.bf16.msra.mxu1 %v12454_v8  ;;  %914 = vst [vmem:[#allocation2 + $0x420] sm:$0xff] %v702_v25  ;;  %v13555_v26 = vpack.c.bf16 %v702_v25, %v701_v20  ;;  %v1511_v8 = vpack.c.bf16 %v1500_v31, %v1499_v4  ;;  %v12464_v20 = vld [vmem:[%s16000_s3 + $0x128] sm:$0xff]   ;;  %v1706_v3 = vld [vmem:[#allocation2 + $0x330] sm:$0xff]  ;;  %v1707_v4 = vld [vmem:[#allocation2 + $0x340] sm:$0xff] }
 0x16d   :  { %11738 = vmatprep.subr.bf16.mxu1 %v12455_v17  ;;  %912 = vst [vmem:[#allocation2 + $0x400] sm:$0xff] %v700_v14  ;;  %v11632_v32 = vpop.f32.mrb[60].mxu0  ;;  %v13560_v33 = vpack.c.bf16 %v700_v14, %v699_v22  ;;  %v1693_v22 = vld [vmem:[#allocation2 + $0x250] sm:$0xff]  ;;  %v1506_v25 = vld [vmem:[#allocation2 + $0x221] sm:$0xff]  ;;  %v1715_v31 = vpack.c.bf16 %v1707_v4, %v1706_v3  ;;  %v12490_v49 = vld [vmem:[%s16000_s3 + $0x1f8] sm:$0xff]  }
 0x16e   :  { %v637_v34 = vadd.f32 %v11632_v32, %v13373_v50  ;;  %v628_v36 = vpop.f32.mrb[61].mxu0  ;;  %v12466_v32 = vld [vmem:[%s16000_s3 + $0x138] sm:$0xff]   ;;  %v2503_v3 = vld [vmem:[#allocation2 + $0x80] sm:$0xff]  ;;  %v2505_v4 = vld [vmem:[#allocation2 + $0xb0] sm:$0xff] }
 0x16f   :  { %11723 = vmatmul.mubr.bf16.gmra.mrb[8].mxu1 %v13403_v27  ;;  %v629_v37 = vadd.f32 %v13373_v50, %v628_v36  ;;  %v11633_v38 = vpop.f32.mrb[62].mxu0  ;;  %v1696_v36 = vld [vmem:[#allocation2 + $0x280] sm:$0xff]  ;;  %v2298_v15 = vld [vmem:[#allocation2 + $0x391] sm:$0xff] }
 0x170   :  { %11739 = vmatpush3.bf16.msra.mxu1 %v12455_v17  ;;  %11726 = vmatprep.mubr.bf16.mxu1 %v13409_v40  ;;  %v705_v41 = vmax.f32 %v637_v34, 0.0  ;;  %v640_v43 = vadd.f32 %v11633_v38, %v13373_v50  ;;  %v631_v44 = vpop.f32.mrb[63].mxu0  ;;  %v1692_v17 = vld [vmem:[#allocation2 + $0x240] sm:$0xff]  ;;  %v2300_v19 = vld [vmem:[#allocation2 + $0x3b1] sm:$0xff] }
 0x171   :  { %11740 = vmatprep.subr.bf16.mxu1 %v12456_v28  ;;  %v703_v47 = vmax.f32 %v629_v37, 0.0  ;;  %v632_v48 = vadd.f32 %v13373_v50, %v631_v44  ;;  %v12459_v50 = vld [vmem:[%s16000_s3 + $0x100] sm:$0xff]   ;;  %v1708_v14 = vpack.c.bf16 %v1693_v22, %v1692_v17  ;;  %v1697_v37 = vld [vmem:[#allocation2 + $0x290] sm:$0xff] }
 0x172   :  { %917 = vst [vmem:[#allocation2 + $0x450] sm:$0xff] %v705_v41  ;;  %v706_v27 = vmax.f32 %v640_v43, 0.0  ;;  %v12467_v34 = vld [vmem:[%s16000_s3 + $0x140] sm:$0xff]   ;;  %v1710_v43 = vpack.c.bf16 %v1697_v37, %v1696_v36  ;;  %v2302_v22 = vld [vmem:[#allocation2 + $0x3d1] sm:$0xff] }
 0x173   :  { %915 = vst [vmem:[#allocation2 + $0x430] sm:$0xff] %v703_v47  ;;  %v704_v51 = vmax.f32 %v632_v48, 0.0  ;;  %v1694_v38 = vld [vmem:[#allocation2 + $0x260] sm:$0xff]  ;;  %v1700_v48 = vld [vmem:[#allocation2 + $0x2d0] sm:$0xff] }
 0x174   :  { %11741 = vmatpush3.bf16.msra.mxu1 %v12456_v28  ;;  %918 = vst [vmem:[#allocation2 + $0x460] sm:$0xff] %v706_v27  ;;  %v13571_v40 = vpack.c.bf16 %v706_v27, %v705_v41  ;;  %v1514_v28 = vpack.c.bf16 %v1506_v25, %v1505_v24  ;;  %v1695_v41 = vld [vmem:[#allocation2 + $0x270] sm:$0xff]  ;;  %v1701_v27 = vld [vmem:[#allocation2 + $0x2e0] sm:$0xff] }
 0x175   :  { %11742 = vmatprep.subr.bf16.mxu1 %v12457_v46  ;;  %916 = vst [vmem:[#allocation2 + $0x440] sm:$0xff] %v704_v51  ;;  %v13576_v55 = vpack.c.bf16 %v704_v51, %v703_v47  ;;  %v1709_v44 = vpack.c.bf16 %v1695_v41, %v1694_v38  ;;  %v12469_v47 = vld [vmem:[%s16000_s3 + $0x150] sm:$0xff]   ;;  %v1712_v51 = vpack.c.bf16 %v1701_v27, %v1700_v48  ;;  %v2301_v17 = vld [vmem:[#allocation2 + $0x3c1] sm:$0xff] }
 0x176   :  { %v2303_v24 = vld [vmem:[#allocation2 + $0x3f1] sm:$0xff]  ;;  %v2304_v25 = vld [vmem:[#allocation2 + $0x401] sm:$0xff] }
 0x177   :  { %11727 = vmatmul.mubr.bf16.gmra.mrb[12].mxu1 %v13411_v42  ;;  %v12461_v42 = vld [vmem:[%s16000_s3 + $0x110] sm:$0xff]   ;;  %v2306_v37 = vld [vmem:[#allocation2 + $0x421] sm:$0xff] }
 0x178   :  { %11743 = vmatpush3.bf16.msra.mxu1 %v12457_v46  ;;  %11746 = vmatprep.mubr.bf16.mxu1 %v1507_v56  ;;  %v12468_v46 = vld [vmem:[%s16000_s3 + $0x148] sm:$0xff]   ;;  %v12470_v56 = vld [vmem:[%s16000_s3 + $0x158] sm:$0xff]  }
 0x179   :  { %11744 = vmatprep.subr.bf16.mxu1 %v12458_v52  ;;  %v2305_v36 = vld [vmem:[#allocation2 + $0x411] sm:$0xff] }
 0x17a   :  { %v2307_v38 = vld [vmem:[#allocation2 + $0x431] sm:$0xff] }
 0x17b   :  { %v2309_v48 = vld [vmem:[#allocation2 + $0x451] sm:$0xff]  ;;  %v2310_v27 = vld [vmem:[#allocation2 + $0x461] sm:$0xff] }
 0x17c   :  { %11745 = vmatpush3.bf16.msra.mxu1 %v12458_v52  ;;  %v1711_v52 = vpack.c.bf16 %v1699_v59, %v1698_v54  ;;  %v2308_v41 = vld [vmem:[#allocation2 + $0x441] sm:$0xff]  ;;  %v2318_v59 = vpack.c.bf16 %v2310_v27, %v2309_v48  ;;  %v2712_v48 = vld [vmem:[#allocation2 + $0x230] sm:$0xff] }
 0x17d   :  { %11762 = vmatprep.subr.bf16.mxu1 %v12459_v50  ;;  %v2497_v54 = vld [vmem:[#allocation2 + $0x20] sm:$0xff] }
 0x17e   :  { %v2899_v27 = vld [vmem:[#allocation2 + $0x21] sm:$0xff] }
 0x17f   :  { %11747 = vmatmul.mubr.bf16.vlgmr.msra.gmra.mrb[0].mxu1 %v1508_v61  ;;  %v1703_v61 = vld [vmem:[#allocation2 + $0x300] sm:$0xff] }
 0x180   :  { %11763 = vmatpush3.bf16.msra.mxu1 %v12459_v50  ;;  %11750 = vmatprep.mubr.bf16.mxu1 %v1509_v1  ;;  %v12471_v50 = vld [vmem:[%s16000_s3 + $0x160] sm:$0xff]   ;;  %v12472_v1 = vld [vmem:[%s16000_s3 + $0x168] sm:$0xff]  }
 0x181   :  { %11764 = vmatprep.subr.bf16.mxu1 %v12460_v63 }
 0x184   :  { %11765 = vmatpush3.bf16.msra.mxu1 %v12460_v63  ;;  %v1713_v63 = vpack.c.bf16 %v1703_v61, %v1702_v60  ;;  %v2498_v60 = vld [vmem:[#allocation2 + $0x30] sm:$0xff] }
 0x185   :  { %11766 = vmatprep.subr.bf16.mxu1 %v12461_v42  ;;  %v2513_v61 = vpack.c.bf16 %v2499_v58, %v2498_v60  ;;  %v2901_v58 = vld [vmem:[#allocation2 + $0x41] sm:$0xff]  ;;  %v2900_v60 = vld [vmem:[#allocation2 + $0x31] sm:$0xff] }
 0x187   :  { %11751 = vmatmul.mubr.bf16.gmra.mrb[4].mxu1 %v1510_v5  ;;  %v12475_v5 = vld [vmem:[%s16000_s3 + $0x180] sm:$0xff]  }
 0x188   :  { %11767 = vmatpush3.bf16.msra.mxu1 %v12461_v42  ;;  %11754 = vmatprep.mubr.bf16.mxu1 %v1511_v8  ;;  %v12473_v42 = vld [vmem:[%s16000_s3 + $0x170] sm:$0xff]   ;;  %v12478_v8 = vld [vmem:[%s16000_s3 + $0x198] sm:$0xff]  }
 0x189   :  { %11768 = vmatprep.subr.bf16.mxu1 %v12462_v7 }
 0x18c   :  { %11769 = vmatpush3.bf16.msra.mxu1 %v12462_v7  ;;  %v12476_v7 = vld [vmem:[%s16000_s3 + $0x188] sm:$0xff]  }
 0x18d   :  { %11770 = vmatprep.subr.bf16.mxu1 %v12463_v9 }
 0x18f   :  { %11755 = vmatmul.mubr.bf16.gmra.mrb[8].mxu1 %v1512_v16  ;;  %v2299_v16 = vld [vmem:[#allocation2 + $0x3a1] sm:$0xff] }
 0x190   :  { %11771 = vmatpush3.bf16.msra.mxu1 %v12463_v9  ;;  %11758 = vmatprep.mubr.bf16.mxu1 %v1513_v21  ;;  %v2296_v9 = vld [vmem:[#allocation2 + $0x371] sm:$0xff]  ;;  %v12492_v21 = vld [vmem:[%s16000_s3 + $0x208] sm:$0xff]  }
 0x191   :  { %11772 = vmatprep.subr.bf16.mxu1 %v12464_v20 }
 0x194   :  { %11773 = vmatpush3.bf16.msra.mxu1 %v12464_v20 }
 0x195   :  { %11774 = vmatprep.subr.bf16.mxu1 %v12465_v23 }
 0x197   :  { %11759 = vmatmul.mubr.bf16.gmra.mrb[12].mxu1 %v1514_v28  ;;  %v12494_v28 = vld [vmem:[%s16000_s3 + $0x218] sm:$0xff]  }
 0x198   :  { %11775 = vmatpush3.bf16.msra.mxu1 %v12465_v23  ;;  %11778 = vmatprep.mubr.bf16.mxu1 %v1708_v14  ;;  %v2313_v23 = vpack.c.bf16 %v2300_v19, %v2299_v16  ;;  %v2314_v14 = vpack.c.bf16 %v2302_v22, %v2301_v17  ;;  %v2699_v16 = vld [vmem:[#allocation2 + $0x150] sm:$0xff]  ;;  %v2704_v17 = vld [vmem:[#allocation2 + $0x1a0] sm:$0xff] }
 0x199   :  { %11776 = vmatprep.subr.bf16.mxu1 %v12466_v32  ;;  %v2706_v22 = vld [vmem:[#allocation2 + $0x1d0] sm:$0xff] }
 0x19c   :  { %11777 = vmatpush3.bf16.msra.mxu1 %v12466_v32  ;;  %v2315_v32 = vpack.c.bf16 %v2304_v25, %v2303_v24  ;;  %v2703_v24 = vld [vmem:[#allocation2 + $0x190] sm:$0xff] }
 0x19d   :  { %11794 = vmatprep.subr.bf16.mxu1 %v12467_v34  ;;  %v2716_v25 = vpack.c.bf16 %v2704_v17, %v2703_v24  ;;  %v3106_v17 = vld [vmem:[#allocation2 + $0x1a1] sm:$0xff]  ;;  %v3105_v24 = vld [vmem:[#allocation2 + $0x191] sm:$0xff] }
 0x19f   :  { %11779 = vmatmul.mubr.bf16.vlgmr.msra.gmra.mrb[0].mxu1 %v1709_v44  ;;  %v12496_v44 = vld [vmem:[%s16000_s3 + $0x228] sm:$0xff]  }
 0x1a0   :  { %11795 = vmatpush3.bf16.msra.mxu1 %v12467_v34  ;;  %11782 = vmatprep.mubr.bf16.mxu1 %v1710_v43  ;;  %v12495_v34 = vld [vmem:[%s16000_s3 + $0x220] sm:$0xff]   ;;  %v2316_v43 = vpack.c.bf16 %v2306_v37, %v2305_v36  ;;  %v2708_v36 = vld [vmem:[#allocation2 + $0x1f0] sm:$0xff] }
 0x1a1   :  { %11796 = vmatprep.subr.bf16.mxu1 %v12468_v46  ;;  %v2710_v37 = vld [vmem:[#allocation2 + $0x210] sm:$0xff] }
 0x1a4   :  { %11797 = vmatpush3.bf16.msra.mxu1 %v12468_v46  ;;  %v2317_v46 = vpack.c.bf16 %v2308_v41, %v2307_v38  ;;  %v2707_v38 = vld [vmem:[#allocation2 + $0x1e0] sm:$0xff] }
 0x1a5   :  { %11798 = vmatprep.subr.bf16.mxu1 %v12469_v47  ;;  %v2718_v41 = vpack.c.bf16 %v2708_v36, %v2707_v38  ;;  %v3110_v36 = vld [vmem:[#allocation2 + $0x1f1] sm:$0xff]  ;;  %v3109_v38 = vld [vmem:[#allocation2 + $0x1e1] sm:$0xff] }
 0x1a7   :  { %11783 = vmatmul.mubr.bf16.gmra.mrb[4].mxu1 %v1711_v52  ;;  %v12498_v52 = vld [vmem:[%s16000_s3 + $0x238] sm:$0xff]  }
 0x1a8   :  { %11799 = vmatpush3.bf16.msra.mxu1 %v12469_v47  ;;  %11786 = vmatprep.mubr.bf16.mxu1 %v1712_v51  ;;  %v12497_v47 = vld [vmem:[%s16000_s3 + $0x230] sm:$0xff]  }
 0x1a9   :  { %11800 = vmatprep.subr.bf16.mxu1 %v12470_v56  ;;  %v2496_v51 = vld [vmem:[#allocation2 + $0x10] sm:$0xff] }
 0x1ac   :  { %11801 = vmatpush3.bf16.msra.mxu1 %v12470_v56  ;;  %v2512_v56 = vpack.c.bf16 %v2497_v54, %v2496_v51  ;;  %v2711_v54 = vld [vmem:[#allocation2 + $0x220] sm:$0xff]  ;;  %v2898_v51 = vld [vmem:[#allocation2 + $0x11] sm:$0xff] }
 0x1ad   :  { %11802 = vmatprep.subr.bf16.mxu1 %v12471_v50 }
 0x1af   :  { %11787 = vmatmul.mubr.bf16.gmra.mrb[8].mxu1 %v1713_v63  ;;  %v12500_v63 = vld [vmem:[%s16000_s3 + $0x248] sm:$0xff]  }
 0x1b0   :  { %11803 = vmatpush3.bf16.msra.mxu1 %v12471_v50  ;;  %11790 = vmatprep.mubr.bf16.mxu1 %v1714_v62  ;;  %v12499_v50 = vld [vmem:[%s16000_s3 + $0x240] sm:$0xff]   ;;  %v2500_v62 = vld [vmem:[#allocation2 + $0x50] sm:$0xff] }
 0x1b1   :  { %11804 = vmatprep.subr.bf16.mxu1 %v12472_v1 }
 0x1b4   :  { %11805 = vmatpush3.bf16.msra.mxu1 %v12472_v1  ;;  %v2514_v1 = vpack.c.bf16 %v2501_v30, %v2500_v62  ;;  %v2903_v30 = vld [vmem:[#allocation2 + $0x61] sm:$0xff]  ;;  %v2902_v62 = vld [vmem:[#allocation2 + $0x51] sm:$0xff] }
 0x1b5   :  { %11806 = vmatprep.subr.bf16.mxu1 %v12473_v42 }
 0x1b7   :  { %11791 = vmatmul.mubr.bf16.gmra.mrb[12].mxu1 %v1715_v31  ;;  %v2502_v31 = vld [vmem:[#allocation2 + $0x70] sm:$0xff] }
 0x1b8   :  { %11807 = vmatpush3.bf16.msra.mxu1 %v12473_v42  ;;  %11810 = vmatprep.mubr.bf16.mxu1 %v13527_v57  ;;  %v12477_v57 = vld [vmem:[%s16000_s3 + $0x190] sm:$0xff]  }
 0x1b9   :  { %11808 = vmatprep.subr.bf16.mxu1 %v12474_v0  ;;  %v12501_v42 = vld [vmem:[%s16000_s3 + $0x250] sm:$0xff]  }
 0x1bc   :  { %11809 = vmatpush3.bf16.msra.mxu1 %v12474_v0  ;;  %v2515_v0 = vpack.c.bf16 %v2503_v3, %v2502_v31  ;;  %v2905_v3 = vld [vmem:[#allocation2 + $0x81] sm:$0xff]  ;;  %v2904_v31 = vld [vmem:[#allocation2 + $0x71] sm:$0xff] }
 0x1bd   :  { %11826 = vmatprep.subr.bf16.mxu1 %v12475_v5 }
 0x1bf   :  { %11811 = vmatmul.mubr.bf16.vlgmr.msra.gmra.mrb[0].mxu1 %v13522_v53  ;;  %v12479_v53 = vld [vmem:[%s16000_s3 + $0x1a0] sm:$0xff]  }
 0x1c0   :  { %11827 = vmatpush3.bf16.msra.mxu1 %v12475_v5  ;;  %11814 = vmatprep.mubr.bf16.mxu1 %v13543_v10  ;;  %v12480_v10 = vld [vmem:[%s16000_s3 + $0x1a8] sm:$0xff]   ;;  %v2504_v5 = vld [vmem:[#allocation2 + $0xa0] sm:$0xff] }
 0x1c1   :  { %11828 = vmatprep.subr.bf16.mxu1 %v12476_v7 }
 0x1c4   :  { %11829 = vmatpush3.bf16.msra.mxu1 %v12476_v7  ;;  %v12502_v7 = vld [vmem:[%s16000_s3 + $0x258] sm:$0xff]  }
 0x1c5   :  { %11830 = vmatprep.subr.bf16.mxu1 %v12477_v57 }
 0x1c7   :  { %11815 = vmatmul.mubr.bf16.gmra.mrb[4].mxu1 %v13538_v12  ;;  %v12481_v12 = vld [vmem:[%s16000_s3 + $0x1b0] sm:$0xff]  }
 0x1c8   :  { %11831 = vmatpush3.bf16.msra.mxu1 %v12477_v57  ;;  %11818 = vmatprep.mubr.bf16.mxu1 %v13560_v33  ;;  %v12482_v33 = vld [vmem:[%s16000_s3 + $0x1b8] sm:$0xff]   ;;  %v2516_v57 = vpack.c.bf16 %v2505_v4, %v2504_v5  ;;  %v2906_v5 = vld [vmem:[#allocation2 + $0xa1] sm:$0xff] }
 0x1c9   :  { %11832 = vmatprep.subr.bf16.mxu1 %v12478_v8  ;;  %v2907_v4 = vld [vmem:[#allocation2 + $0xb1] sm:$0xff] }
 0x1cc   :  { %11833 = vmatpush3.bf16.msra.mxu1 %v12478_v8  ;;  %v12503_v8 = vld [vmem:[%s16000_s3 + $0x260] sm:$0xff]  }
 0x1cd   :  { %11834 = vmatprep.subr.bf16.mxu1 %v12479_v53 }
 0x1cf   :  { %11819 = vmatmul.mubr.bf16.gmra.mrb[8].mxu1 %v13555_v26  ;;  %v12483_v26 = vld [vmem:[%s16000_s3 + $0x1c0] sm:$0xff]  }
 0x1d0   :  { %11835 = vmatpush3.bf16.msra.mxu1 %v12479_v53  ;;  %11822 = vmatprep.mubr.bf16.mxu1 %v13576_v55  ;;  %v12484_v55 = vld [vmem:[%s16000_s3 + $0x1c8] sm:$0xff]   ;;  %v2507_v53 = vld [vmem:[#allocation2 + $0xd0] sm:$0xff] }
 0x1d1   :  { %11836 = vmatprep.subr.bf16.mxu1 %v12480_v10 }
 0x1d4   :  { %11837 = vmatpush3.bf16.msra.mxu1 %v12480_v10  ;;  %v2509_v10 = vld [vmem:[#allocation2 + $0xf0] sm:$0xff] }
 0x1d5   :  { %11838 = vmatprep.subr.bf16.mxu1 %v12481_v12 }
 0x1d7   :  { %11823 = vmatmul.mubr.bf16.gmra.mrb[12].mxu1 %v13571_v40  ;;  %v12486_v40 = vld [vmem:[%s16000_s3 + $0x1d8] sm:$0xff]  }
 0x1d8   :  { %11839 = vmatpush3.bf16.msra.mxu1 %v12481_v12  ;;  %11842 = vmatprep.mubr.bf16.mxu1 %v13468_v18  ;;  %v12485_v18 = vld [vmem:[%s16000_s3 + $0x1d0] sm:$0xff]   ;;  %v2506_v12 = vld [vmem:[#allocation2 + $0xc0] sm:$0xff] }
 0x1d9   :  { %11840 = vmatprep.subr.bf16.mxu1 %v12482_v33 }
 0x1dc   :  { %11841 = vmatpush3.bf16.msra.mxu1 %v12482_v33  ;;  %v2517_v33 = vpack.c.bf16 %v2507_v53, %v2506_v12  ;;  %v2909_v53 = vld [vmem:[#allocation2 + $0xd1] sm:$0xff]  ;;  %v2908_v12 = vld [vmem:[#allocation2 + $0xc1] sm:$0xff] }
 0x1dd   :  { %11858 = vmatprep.subr.bf16.mxu1 %v12483_v26 }
 0x1df   :  { %11843 = vmatmul.mubr.bf16.vlgmr.msra.gmra.mrb[0].mxu1 %v13463_v11  ;;  %v12487_v11 = vld [vmem:[%s16000_s3 + $0x1e0] sm:$0xff]  }
 0x1e0   :  { %11859 = vmatpush3.bf16.msra.mxu1 %v12483_v26  ;;  %11846 = vmatprep.mubr.bf16.mxu1 %v13482_v45  ;;  %v12488_v45 = vld [vmem:[%s16000_s3 + $0x1e8] sm:$0xff]   ;;  %v2508_v26 = vld [vmem:[#allocation2 + $0xe0] sm:$0xff] }
 0x1e1   :  { %11860 = vmatprep.subr.bf16.mxu1 %v12484_v55 }
 0x1e4   :  { %11861 = vmatpush3.bf16.msra.mxu1 %v12484_v55  ;;  %v12504_v55 = vld [vmem:[%s16000_s3 + $0x268] sm:$0xff]  }
 0x1e5   :  { %11862 = vmatprep.subr.bf16.mxu1 %v12485_v18 }
 0x1e7   :  { %11847 = vmatmul.mubr.bf16.gmra.mrb[4].mxu1 %v13477_v39  ;;  %v12489_v39 = vld [vmem:[%s16000_s3 + $0x1f0] sm:$0xff]  }
 0x1e8   :  { %11863 = vmatpush3.bf16.msra.mxu1 %v12485_v18  ;;  %11850 = vmatprep.mubr.bf16.mxu1 %v13497_v6  ;;  %v2295_v6 = vld [vmem:[#allocation2 + $0x361] sm:$0xff]  ;;  %v2518_v18 = vpack.c.bf16 %v2509_v10, %v2508_v26  ;;  %v2911_v10 = vld [vmem:[#allocation2 + $0xf1] sm:$0xff] }
 0x1e9   :  { %11864 = vmatprep.subr.bf16.mxu1 %v12486_v40  ;;  %v2311_v13 = vpack.c.bf16 %v2296_v9, %v2295_v6  ;;  %v2697_v9 = vld [vmem:[#allocation2 + $0x130] sm:$0xff]  ;;  %v2910_v26 = vld [vmem:[#allocation2 + $0xe1] sm:$0xff] }
 0x1ec   :  { %11865 = vmatpush3.bf16.msra.mxu1 %v12486_v40  ;;  %v12505_v40 = vld [vmem:[%s16000_s3 + $0x270] sm:$0xff]  }
 0x1ed   :  { %11866 = vmatprep.subr.bf16.mxu1 %v12487_v11 }
 0x1ef   :  { %11851 = vmatmul.mubr.bf16.gmra.mrb[8].mxu1 %v13492_v2  ;;  %v12491_v2 = vld [vmem:[%s16000_s3 + $0x200] sm:$0xff]  }
 0x1f0   :  { %11867 = vmatpush3.bf16.msra.mxu1 %v12487_v11  ;;  %11854 = vmatprep.mubr.bf16.mxu1 %v13511_v35  ;;  %v2297_v35 = vld [vmem:[#allocation2 + $0x381] sm:$0xff]  ;;  %v2511_v11 = vld [vmem:[#allocation2 + $0x110] sm:$0xff] }
 0x1f1   :  { %11868 = vmatprep.subr.bf16.mxu1 %v12488_v45  ;;  %v2312_v20 = vpack.c.bf16 %v2298_v15, %v2297_v35  ;;  %v2700_v35 = vld [vmem:[#allocation2 + $0x160] sm:$0xff] }
 0x1f2   :  { %v2702_v15 = vld [vmem:[#allocation2 + $0x180] sm:$0xff]  ;;  %v2714_v19 = vpack.c.bf16 %v2700_v35, %v2699_v16  ;;  %v3101_v16 = vld [vmem:[#allocation2 + $0x151] sm:$0xff] }
 0x1f3   :  { %v3102_v35 = vld [vmem:[#allocation2 + $0x161] sm:$0xff] }
 0x1f4   :  { %11869 = vmatpush3.bf16.msra.mxu1 %v12488_v45  ;;  %v2698_v45 = vld [vmem:[#allocation2 + $0x140] sm:$0xff] }
 0x1f5   :  { %11870 = vmatprep.subr.bf16.mxu1 %v12489_v39 }
 0x1f7   :  { %11855 = vmatmul.mubr.bf16.gmra.mrb[12].mxu1 %v13506_v29  ;;  %v12493_v29 = vld [vmem:[%s16000_s3 + $0x210] sm:$0xff]  }
 0x1f8   :  { %11871 = vmatpush3.bf16.msra.mxu1 %v12489_v39  ;;  %11874 = vmatprep.mubr.bf16.mxu1 %v2311_v13  ;;  %v2510_v39 = vld [vmem:[#allocation2 + $0x100] sm:$0xff]  ;;  %v2713_v13 = vpack.c.bf16 %v2698_v45, %v2697_v9  ;;  %v3099_v9 = vld [vmem:[#allocation2 + $0x131] sm:$0xff] }
 0x1f9   :  { %11872 = vmatprep.subr.bf16.mxu1 %v12490_v49  ;;  %v2519_v6 = vpack.c.bf16 %v2511_v11, %v2510_v39  ;;  %v2913_v11 = vld [vmem:[#allocation2 + $0x111] sm:$0xff]  ;;  %v3100_v45 = vld [vmem:[#allocation2 + $0x141] sm:$0xff] }
 0x1fa   :  { %v2912_v39 = vld [vmem:[#allocation2 + $0x101] sm:$0xff] }
 0x1fc   :  { %11873 = vmatpush3.bf16.msra.mxu1 %v12490_v49  ;;  %v12506_v49 = vld [vmem:[%s16000_s3 + $0x278] sm:$0xff]  }
 0x1fd   :  { %11890 = vmatprep.subr.bf16.mxu1 %v12491_v2 }
 0x1ff   :  { %11875 = vmatmul.mubr.bf16.vlgmr.msra.gmra.mrb[0].mxu1 %v2312_v20  ;;  %v2701_v20 = vld [vmem:[#allocation2 + $0x170] sm:$0xff] }
 0x200   :  { %11891 = vmatpush3.bf16.msra.mxu1 %v12491_v2  ;;  %11878 = vmatprep.mubr.bf16.mxu1 %v2313_v23  ;;  %v12507_v2 = vld [vmem:[%s16000_s3 + $0x280] sm:$0xff]   ;;  %v2715_v23 = vpack.c.bf16 %v2702_v15, %v2701_v20  ;;  %v3103_v20 = vld [vmem:[#allocation2 + $0x171] sm:$0xff] }
 0x201   :  { %11892 = vmatprep.subr.bf16.mxu1 %v12492_v21  ;;  %v3104_v15 = vld [vmem:[#allocation2 + $0x181] sm:$0xff] }
 0x204   :  { %11893 = vmatpush3.bf16.msra.mxu1 %v12492_v21  ;;  %v12508_v21 = vld [vmem:[%s16000_s3 + $0x288] sm:$0xff]  }
 0x205   :  { %11894 = vmatprep.subr.bf16.mxu1 %v12493_v29 }
 0x207   :  { %11879 = vmatmul.mubr.bf16.gmra.mrb[4].mxu1 %v2314_v14  ;;  %v2705_v14 = vld [vmem:[#allocation2 + $0x1c0] sm:$0xff] }
 0x208   :  { %11895 = vmatpush3.bf16.msra.mxu1 %v12493_v29  ;;  %11882 = vmatprep.mubr.bf16.mxu1 %v2315_v32  ;;  %v12509_v29 = vld [vmem:[%s16000_s3 + $0x290] sm:$0xff]   ;;  %v2717_v32 = vpack.c.bf16 %v2706_v22, %v2705_v14  ;;  %v3107_v14 = vld [vmem:[#allocation2 + $0x1c1] sm:$0xff] }
 0x209   :  { %11896 = vmatprep.subr.bf16.mxu1 %v12494_v28  ;;  %v3108_v22 = vld [vmem:[#allocation2 + $0x1d1] sm:$0xff] }
 0x20c   :  { %11897 = vmatpush3.bf16.msra.mxu1 %v12494_v28  ;;  %v12510_v28 = vld [vmem:[%s16000_s3 + $0x298] sm:$0xff]  }
 0x20d   :  { %11898 = vmatprep.subr.bf16.mxu1 %v12495_v34 }
 0x20f   :  { %11883 = vmatmul.mubr.bf16.gmra.mrb[8].mxu1 %v2316_v43  ;;  %v2709_v43 = vld [vmem:[#allocation2 + $0x200] sm:$0xff] }
 0x210   :  { %11899 = vmatpush3.bf16.msra.mxu1 %v12495_v34  ;;  %11886 = vmatprep.mubr.bf16.mxu1 %v2317_v46  ;;  %v12511_v34 = vld [vmem:[%s16000_s3 + $0x2a0] sm:$0xff]   ;;  %v2719_v46 = vpack.c.bf16 %v2710_v37, %v2709_v43  ;;  %v3112_v37 = vld [vmem:[#allocation2 + $0x211] sm:$0xff] }
 0x211   :  { %11900 = vmatprep.subr.bf16.mxu1 %v12496_v44  ;;  %v3111_v43 = vld [vmem:[#allocation2 + $0x201] sm:$0xff] }
 0x214   :  { %11901 = vmatpush3.bf16.msra.mxu1 %v12496_v44  ;;  %v12512_v44 = vld [vmem:[%s16000_s3 + $0x2a8] sm:$0xff]  }
 0x215   :  { %11902 = vmatprep.subr.bf16.mxu1 %v12497_v47 }
 0x217   :  { %11887 = vmatmul.mubr.bf16.gmra.mrb[12].mxu1 %v2318_v59  ;;  %v2720_v59 = vpack.c.bf16 %v2712_v48, %v2711_v54  ;;  %v3114_v48 = vld [vmem:[#allocation2 + $0x231] sm:$0xff]  ;;  %v3302_v54 = vld [vmem:[#allocation2 + $0x260] sm:$0xff] }
 0x218   :  { %11903 = vmatpush3.bf16.msra.mxu1 %v12497_v47  ;;  %11906 = vmatprep.mubr.bf16.mxu1 %v2512_v56  ;;  %v12513_v47 = vld [vmem:[%s16000_s3 + $0x2b0] sm:$0xff]   ;;  %v2914_v56 = vpack.c.bf16 %v2899_v27, %v2898_v51 }
 0x219   :  { %11904 = vmatprep.subr.bf16.mxu1 %v12498_v52  ;;  %v3301_v27 = vld [vmem:[#allocation2 + $0x250] sm:$0xff] }
 0x21c   :  { %11905 = vmatpush3.bf16.msra.mxu1 %v12498_v52  ;;  %v12514_v52 = vld [vmem:[%s16000_s3 + $0x2b8] sm:$0xff]  }
 0x21d   :  { %11922 = vmatprep.subr.bf16.mxu1 %v12499_v50 }
 0x21f   :  { %11907 = vmatmul.mubr.bf16.vlgmr.msra.gmra.mrb[0].mxu1 %v2513_v61  ;;  %v2915_v61 = vpack.c.bf16 %v2901_v58, %v2900_v60  ;;  %v3303_v58 = vld [vmem:[#allocation2 + $0x270] sm:$0xff]  ;;  %v12555_v60 = vld [vmem:[%s16002_s5 + $0x40] sm:$0xff]  }
 0x220   :  { %11923 = vmatpush3.bf16.msra.mxu1 %v12499_v50  ;;  %11910 = vmatprep.mubr.bf16.mxu1 %v2514_v1  ;;  %v12515_v50 = vld [vmem:[%s16000_s3 + $0x2c0] sm:$0xff]   ;;  %v2916_v1 = vpack.c.bf16 %v2903_v30, %v2902_v62 }
 0x221   :  { %11924 = vmatprep.subr.bf16.mxu1 %v12500_v63  ;;  %v3304_v30 = vld [vmem:[#allocation2 + $0x280] sm:$0xff]  ;;  %10850 = vmatprep.subr.bf16.mxu0 %v12555_v60 }
 0x222   :  { %v3306_v62 = vld [vmem:[#allocation2 + $0x2a0] sm:$0xff] }
 0x223   :  { %v3517_v60 = vld [vmem:[#allocation2 + $0x460] sm:$0xff] }
 0x224   :  { %11925 = vmatpush3.bf16.msra.mxu1 %v12500_v63  ;;  %v12516_v63 = vld [vmem:[%s16000_s3 + $0x2c8] sm:$0xff]  }
 0x225   :  { %11926 = vmatprep.subr.bf16.mxu1 %v12501_v42 }
 0x227   :  { %11911 = vmatmul.mubr.bf16.gmra.mrb[4].mxu1 %v2515_v0  ;;  %v2917_v0 = vpack.c.bf16 %v2905_v3, %v2904_v31  ;;  %v12532_v3 = vld [vmem:[%s16000_s3 + $0x348] sm:$0xff]   ;;  %v12559_v31 = vld [vmem:[%s16002_s5 + $0x50] sm:$0xff]  }
 0x228   :  { %11927 = vmatpush3.bf16.msra.mxu1 %v12501_v42  ;;  %11914 = vmatprep.mubr.bf16.mxu1 %v2516_v57  ;;  %v12517_v42 = vld [vmem:[%s16000_s3 + $0x2d0] sm:$0xff]   ;;  %v2918_v57 = vpack.c.bf16 %v2907_v4, %v2906_v5  ;;  %v3318_v4 = vpack.c.bf16 %v3304_v30, %v3303_v58 }
 0x229   :  { %11928 = vmatprep.subr.bf16.mxu1 %v12502_v7  ;;  %v12560_v5 = vld [vmem:[%s16002_s5 + $0x10] sm:$0xff]  }
 0x22a   :  { %v12545_v30 = vld [vmem:[%s16000_s3 + $0x3b0] sm:$0xff]  }
 0x22c   :  { %11929 = vmatpush3.bf16.msra.mxu1 %v12502_v7  ;;  %v12518_v7 = vld [vmem:[%s16000_s3 + $0x2d8] sm:$0xff]  }
 0x22d   :  { %11930 = vmatprep.subr.bf16.mxu1 %v12503_v8 }
 0x22f   :  { %11915 = vmatmul.mubr.bf16.gmra.mrb[8].mxu1 %v2517_v33  ;;  %v2919_v33 = vpack.c.bf16 %v2909_v53, %v2908_v12  ;;  %v3309_v53 = vld [vmem:[#allocation2 + $0x2e0] sm:$0xff]  ;;  %v12562_v12 = vld [vmem:[%s16002_s5 + $0x18] sm:$0xff]  }
 0x230   :  { %11931 = vmatpush3.bf16.msra.mxu1 %v12503_v8  ;;  %11918 = vmatprep.mubr.bf16.mxu1 %v2518_v18  ;;  %v12519_v8 = vld [vmem:[%s16000_s3 + $0x2e0] sm:$0xff]   ;;  %v2920_v18 = vpack.c.bf16 %v2911_v10, %v2910_v26  ;;  %v3310_v10 = vld [vmem:[#allocation2 + $0x2f0] sm:$0xff] }
 0x231   :  { %11932 = vmatprep.subr.bf16.mxu1 %v12504_v55  ;;  %v12563_v26 = vld [vmem:[%s16002_s5 + $0x60] sm:$0xff]  }
 0x234   :  { %11933 = vmatpush3.bf16.msra.mxu1 %v12504_v55  ;;  %v12520_v55 = vld [vmem:[%s16000_s3 + $0x2e8] sm:$0xff]  }
 0x235   :  { %11934 = vmatprep.subr.bf16.mxu1 %v12505_v40 }
 0x237   :  { %11919 = vmatmul.mubr.bf16.gmra.mrb[12].mxu1 %v2519_v6  ;;  %v2921_v6 = vpack.c.bf16 %v2913_v11, %v2912_v39  ;;  %v3321_v11 = vpack.c.bf16 %v3310_v10, %v3309_v53  ;;  %v12535_v39 = vld [vmem:[%s16000_s3 + $0x360] sm:$0xff]   ;;  %v12549_v53 = vld [vmem:[%s16000_s3 + $0x3d0] sm:$0xff]  }
 0x238   :  { %11935 = vmatpush3.bf16.msra.mxu1 %v12505_v40  ;;  %11938 = vmatprep.mubr.bf16.mxu1 %v2713_v13  ;;  %v12521_v40 = vld [vmem:[%s16000_s3 + $0x2f0] sm:$0xff]   ;;  %v3115_v13 = vpack.c.bf16 %v3100_v45, %v3099_v9  ;;  %v12565_v45 = vld [vmem:[%s16002_s5 + $0x68] sm:$0xff]  }
 0x239   :  { %11936 = vmatprep.subr.bf16.mxu1 %v12506_v49  ;;  %v3312_v9 = vld [vmem:[#allocation2 + $0x310] sm:$0xff] }
 0x23a   :  { %v3710_v10 = vld [vmem:[#allocation2 + $0x2b1] sm:$0xff] }
 0x23c   :  { %11937 = vmatpush3.bf16.msra.mxu1 %v12506_v49  ;;  %v12522_v49 = vld [vmem:[%s16000_s3 + $0x2f8] sm:$0xff]  }
 0x23d   :  { %11954 = vmatprep.subr.bf16.mxu1 %v12507_v2 }
 0x23f   :  { %11939 = vmatmul.mubr.bf16.vlgmr.msra.gmra.mrb[0].mxu1 %v2714_v19  ;;  %v3116_v19 = vpack.c.bf16 %v3102_v35, %v3101_v16  ;;  %v12536_v35 = vld [vmem:[%s16000_s3 + $0x368] sm:$0xff]  }
 0x240   :  { %11955 = vmatpush3.bf16.msra.mxu1 %v12507_v2  ;;  %11942 = vmatprep.mubr.bf16.mxu1 %v2715_v23  ;;  %v12523_v2 = vld [vmem:[%s16000_s3 + $0x300] sm:$0xff]   ;;  %v3117_v23 = vpack.c.bf16 %v3104_v15, %v3103_v20 }
 0x241   :  { %11956 = vmatprep.subr.bf16.mxu1 %v12508_v21  ;;  %v3315_v20 = vld [vmem:[#allocation2 + $0x340] sm:$0xff] }
 0x244   :  { %11957 = vmatpush3.bf16.msra.mxu1 %v12508_v21  ;;  %v12524_v21 = vld [vmem:[%s16000_s3 + $0x308] sm:$0xff]  }
 0x245   :  { %11958 = vmatprep.subr.bf16.mxu1 %v12509_v29 }
 0x247   :  { %11943 = vmatmul.mubr.bf16.gmra.mrb[4].mxu1 %v2716_v25  ;;  %v3118_v25 = vpack.c.bf16 %v3106_v17, %v3105_v24  ;;  %v12539_v24 = vld [vmem:[%s16000_s3 + $0x380] sm:$0xff]  }
 0x248   :  { %11959 = vmatpush3.bf16.msra.mxu1 %v12509_v29  ;;  %11946 = vmatprep.mubr.bf16.mxu1 %v2717_v32  ;;  %v12525_v29 = vld [vmem:[%s16000_s3 + $0x310] sm:$0xff]   ;;  %v3119_v32 = vpack.c.bf16 %v3108_v22, %v3107_v14  ;;  %v3506_v14 = vld [vmem:[#allocation2 + $0x3a0] sm:$0xff] }
 0x249   :  { %11960 = vmatprep.subr.bf16.mxu1 %v12510_v28 }
 0x24c   :  { %11961 = vmatpush3.bf16.msra.mxu1 %v12510_v28  ;;  %v12526_v28 = vld [vmem:[%s16000_s3 + $0x318] sm:$0xff]  }
 0x24d   :  { %11962 = vmatprep.subr.bf16.mxu1 %v12511_v34 }
 0x24f   :  { %11947 = vmatmul.mubr.bf16.gmra.mrb[8].mxu1 %v2718_v41  ;;  %v3120_v41 = vpack.c.bf16 %v3110_v36, %v3109_v38  ;;  %v12541_v38 = vld [vmem:[%s16000_s3 + $0x390] sm:$0xff]  }
 0x250   :  { %11963 = vmatpush3.bf16.msra.mxu1 %v12511_v34  ;;  %11950 = vmatprep.mubr.bf16.mxu1 %v2719_v46  ;;  %v12527_v34 = vld [vmem:[%s16000_s3 + $0x320] sm:$0xff]   ;;  %v3121_v46 = vpack.c.bf16 %v3112_v37, %v3111_v43 }
 0x251   :  { %11964 = vmatprep.subr.bf16.mxu1 %v12512_v44  ;;  %v3511_v43 = vld [vmem:[#allocation2 + $0x400] sm:$0xff] }
 0x254   :  { %11965 = vmatpush3.bf16.msra.mxu1 %v12512_v44  ;;  %v12528_v44 = vld [vmem:[%s16000_s3 + $0x328] sm:$0xff]  }
 0x255   :  { %11966 = vmatprep.subr.bf16.mxu1 %v12513_v47 }
 0x257   :  { %11951 = vmatmul.mubr.bf16.gmra.mrb[12].mxu1 %v2720_v59  ;;  %v3113_v59 = vld [vmem:[#allocation2 + $0x221] sm:$0xff] }
 0x258   :  { %11967 = vmatpush3.bf16.msra.mxu1 %v12513_v47  ;;  %11970 = vmatprep.mubr.bf16.mxu1 %v2914_v56  ;;  %v12529_v47 = vld [vmem:[%s16000_s3 + $0x330] sm:$0xff]   ;;  %v3122_v51 = vpack.c.bf16 %v3114_v48, %v3113_v59  ;;  %v3317_v56 = vpack.c.bf16 %v3302_v54, %v3301_v27  ;;  %v12543_v27 = vld [vmem:[%s16000_s3 + $0x3a0] sm:$0xff]  }
 0x259   :  { %11968 = vmatprep.subr.bf16.mxu1 %v12514_v52  ;;  %v3513_v54 = vld [vmem:[#allocation2 + $0x420] sm:$0xff]  ;;  %v3514_v59 = vld [vmem:[#allocation2 + $0x430] sm:$0xff] }
 0x25c   :  { %11969 = vmatpush3.bf16.msra.mxu1 %v12514_v52  ;;  %v12530_v52 = vld [vmem:[%s16000_s3 + $0x338] sm:$0xff]  }
 0x25d   :  { %11986 = vmatprep.subr.bf16.mxu1 %v12515_v50 }
 0x25f   :  { %11971 = vmatmul.mubr.bf16.vlgmr.msra.gmra.mrb[0].mxu1 %v2915_v61  ;;  %v3305_v61 = vld [vmem:[#allocation2 + $0x290] sm:$0xff] }
 0x260   :  { %11987 = vmatpush3.bf16.msra.mxu1 %v12515_v50  ;;  %11974 = vmatprep.mubr.bf16.mxu1 %v2916_v1  ;;  %v12531_v50 = vld [vmem:[%s16000_s3 + $0x340] sm:$0xff]   ;;  %v12557_v1 = vld [vmem:[%s16002_s5 + $0x48] sm:$0xff]  }
 0x261   :  { %11988 = vmatprep.subr.bf16.mxu1 %v12516_v63 }
 0x264   :  { %11989 = vmatpush3.bf16.msra.mxu1 %v12516_v63  ;;  %v12556_v63 = vld [vmem:[%s16002_s5] sm:$0xff]  }
 0x265   :  { %11990 = vmatprep.subr.bf16.mxu1 %v12517_v42  ;;  %10851 = vmatpush3.bf16.msra.mxu0 %v12556_v63  ;;  %v12546_v63 = vld [vmem:[%s16000_s3 + $0x3b8] sm:$0xff]  }
 0x266   :  { %10852 = vmatprep.subr.bf16.mxu0 %v12557_v1 }
 0x267   :  { %11975 = vmatmul.mubr.bf16.gmra.mrb[4].mxu1 %v2917_v0  ;;  %v3319_v0 = vpack.c.bf16 %v3306_v62, %v3305_v61  ;;  %v3704_v61 = vld [vmem:[#allocation2 + $0x251] sm:$0xff]  ;;  %v3705_v62 = vld [vmem:[#allocation2 + $0x261] sm:$0xff] }
 0x268   :  { %11991 = vmatpush3.bf16.msra.mxu1 %v12517_v42  ;;  %11978 = vmatprep.mubr.bf16.mxu1 %v2918_v57  ;;  %v12558_v42 = vld [vmem:[%s16002_s5 + $0x8] sm:$0xff]   ;;  %v12561_v57 = vld [vmem:[%s16002_s5 + $0x58] sm:$0xff]  }
 0x269   :  { %11992 = vmatprep.subr.bf16.mxu1 %v12518_v7  ;;  %10853 = vmatpush3.bf16.msra.mxu0 %v12558_v42  ;;  %v3720_v42 = vpack.c.bf16 %v3705_v62, %v3704_v61  ;;  %v12573_v61 = vld [vmem:[%s16002_s5 + $0x6d0] sm:$0xff]  }
 0x26a   :  { %10854 = vmatprep.subr.bf16.mxu0 %v12559_v31  ;;  %v3707_v31 = vld [vmem:[#allocation2 + $0x281] sm:$0xff]  ;;  %v12574_v62 = vld [vmem:[%s16002_s5 + $0x690] sm:$0xff]  }
 0x26c   :  { %11993 = vmatpush3.bf16.msra.mxu1 %v12518_v7  ;;  %v3307_v7 = vld [vmem:[#allocation2 + $0x2b0] sm:$0xff] }
 0x26d   :  { %11994 = vmatprep.subr.bf16.mxu1 %v12519_v8  ;;  %10855 = vmatpush3.bf16.msra.mxu0 %v12560_v5  ;;  %v3709_v5 = vld [vmem:[#allocation2 + $0x2a1] sm:$0xff] }
 0x26e   :  { %10856 = vmatprep.subr.bf16.mxu0 %v12561_v57 }
 0x26f   :  { %11979 = vmatmul.mubr.bf16.gmra.mrb[8].mxu1 %v2919_v33  ;;  %v12534_v33 = vld [vmem:[%s16000_s3 + $0x358] sm:$0xff]  }
 0x270   :  { %11995 = vmatpush3.bf16.msra.mxu1 %v12519_v8  ;;  %11982 = vmatprep.mubr.bf16.mxu1 %v2920_v18  ;;  %v12533_v8 = vld [vmem:[%s16000_s3 + $0x350] sm:$0xff]  }
 0x271   :  { %11996 = vmatprep.subr.bf16.mxu1 %v12520_v55  ;;  %10857 = vmatpush3.bf16.msra.mxu0 %v12562_v12  ;;  %v3711_v12 = vld [vmem:[#allocation2 + $0x2c1] sm:$0xff] }
 0x272   :  { %10858 = vmatprep.subr.bf16.mxu0 %v12563_v26  ;;  %v3713_v26 = vld [vmem:[#allocation2 + $0x2f1] sm:$0xff] }
 0x274   :  { %11997 = vmatpush3.bf16.msra.mxu1 %v12520_v55  ;;  %v13850_v55 = vld [vmem:[#allocation2] sm:$0xff] }
 0x275   :  { %11998 = vmatprep.subr.bf16.mxu1 %v12521_v40  ;;  %v3320_v18 = vpack.c.bf16 %v13850_v55, %v3307_v7  ;;  %v3324_v17 = vpack.c.bf16 %v13850_v55, %v3315_v20  ;;  %v3526_v1 = vpack.c.bf16 %v13850_v55, %v3517_v60  ;;  %v12548_v7 = vld [vmem:[%s16000_s3 + $0x3c8] sm:$0xff]  }
 0x276   :  { %v3906_v20 = vld [vmem:[#allocation2 + $0x381] sm:$0xff] }
 0x277   :  { %11983 = vmatmul.mubr.bf16.gmra.mrb[12].mxu1 %v2921_v6  ;;  %v3311_v6 = vld [vmem:[#allocation2 + $0x300] sm:$0xff]  ;;  %v12572_v60 = vld [vmem:[%s16002_s5 + $0x688] sm:$0xff]  }
 0x278   :  { %11999 = vmatpush3.bf16.msra.mxu1 %v12521_v40  ;;  %12002 = vmatprep.mubr.bf16.mxu1 %v3115_v13  ;;  %v12564_v40 = vld [vmem:[%s16002_s5 + $0x20] sm:$0xff]   ;;  %v3314_v13 = vld [vmem:[#allocation2 + $0x330] sm:$0xff]  ;;  %v3322_v15 = vpack.c.bf16 %v3312_v9, %v3311_v6 }
 0x279   :  { %12000 = vmatprep.subr.bf16.mxu1 %v12522_v49  ;;  %10859 = vmatpush3.bf16.msra.mxu0 %v12564_v40  ;;  %v3716_v6 = vld [vmem:[#allocation2 + $0x321] sm:$0xff]  ;;  %v3717_v9 = vld [vmem:[#allocation2 + $0x331] sm:$0xff] }
 0x27a   :  { %10860 = vmatprep.subr.bf16.mxu0 %v12565_v45  ;;  %v3714_v45 = vld [vmem:[#allocation2 + $0x301] sm:$0xff] }
 0x27c   :  { %12001 = vmatpush3.bf16.msra.mxu1 %v12522_v49  ;;  %v3313_v49 = vld [vmem:[#allocation2 + $0x320] sm:$0xff] }
 0x27d   :  { %12018 = vmatprep.subr.bf16.mxu1 %v12523_v2  ;;  %v3323_v16 = vpack.c.bf16 %v3314_v13, %v3313_v49  ;;  %v12552_v49 = vld [vmem:[%s16000_s3 + $0x3e8] sm:$0xff]  }
 0x27f   :  { %12003 = vmatmul.mubr.bf16.vlgmr.msra.gmra.mrb[0].mxu1 %v3116_v19  ;;  %v12537_v19 = vld [vmem:[%s16000_s3 + $0x370] sm:$0xff]  }
 0x280   :  { %12019 = vmatpush3.bf16.msra.mxu1 %v12523_v2  ;;  %12006 = vmatprep.mubr.bf16.mxu1 %v3117_v23  ;;  %v12566_v2 = vld [vmem:[%s16002_s5 + $0x28] sm:$0xff]   ;;  %v3504_v23 = vld [vmem:[#allocation2 + $0x380] sm:$0xff] }
 0x281   :  { %12020 = vmatprep.subr.bf16.mxu1 %v12524_v21  ;;  %10861 = vmatpush3.bf16.msra.mxu0 %v12566_v2  ;;  %v3726_v2 = vpack.c.bf16 %v3717_v9, %v3716_v6 }
 0x284   :  { %12021 = vmatpush3.bf16.msra.mxu1 %v12524_v21  ;;  %v3503_v21 = vld [vmem:[#allocation2 + $0x370] sm:$0xff] }
 0x285   :  { %12022 = vmatprep.subr.bf16.mxu1 %v12525_v29  ;;  %v3519_v22 = vpack.c.bf16 %v3504_v23, %v3503_v21  ;;  %v12554_v21 = vld [vmem:[%s16000_s3 + $0x3f8] sm:$0xff]  }
 0x287   :  { %12007 = vmatmul.mubr.bf16.gmra.mrb[4].mxu1 %v3118_v25  ;;  %v3505_v25 = vld [vmem:[#allocation2 + $0x390] sm:$0xff] }
 0x288   :  { %12023 = vmatpush3.bf16.msra.mxu1 %v12525_v29  ;;  %12010 = vmatprep.mubr.bf16.mxu1 %v3119_v32  ;;  %v12538_v29 = vld [vmem:[%s16000_s3 + $0x378] sm:$0xff]   ;;  %v3508_v32 = vld [vmem:[#allocation2 + $0x3c0] sm:$0xff]  ;;  %v3520_v36 = vpack.c.bf16 %v3506_v14, %v3505_v25 }
 0x289   :  { %12024 = vmatprep.subr.bf16.mxu1 %v12526_v28  ;;  %v3910_v25 = vld [vmem:[#allocation2 + $0x3c1] sm:$0xff] }
 0x28c   :  { %12025 = vmatpush3.bf16.msra.mxu1 %v12526_v28  ;;  %v3507_v28 = vld [vmem:[#allocation2 + $0x3b0] sm:$0xff] }
 0x28d   :  { %12026 = vmatprep.subr.bf16.mxu1 %v12527_v34  ;;  %v3521_v37 = vpack.c.bf16 %v3508_v32, %v3507_v28  ;;  %v3911_v32 = vld [vmem:[#allocation2 + $0x3d1] sm:$0xff] }
 0x28f   :  { %12011 = vmatmul.mubr.bf16.gmra.mrb[8].mxu1 %v3120_v41  ;;  %v3509_v41 = vld [vmem:[#allocation2 + $0x3d0] sm:$0xff] }
 0x290   :  { %12027 = vmatpush3.bf16.msra.mxu1 %v12527_v34  ;;  %12014 = vmatprep.mubr.bf16.mxu1 %v3121_v46  ;;  %v12540_v34 = vld [vmem:[%s16000_s3 + $0x388] sm:$0xff]   ;;  %v12542_v46 = vld [vmem:[%s16000_s3 + $0x398] sm:$0xff]  }
 0x291   :  { %12028 = vmatprep.subr.bf16.mxu1 %v12528_v44 }
 0x294   :  { %12029 = vmatpush3.bf16.msra.mxu1 %v12528_v44  ;;  %v3512_v44 = vld [vmem:[#allocation2 + $0x410] sm:$0xff] }
 0x295   :  { %12030 = vmatprep.subr.bf16.mxu1 %v12529_v47  ;;  %v3523_v48 = vpack.c.bf16 %v3512_v44, %v3511_v43  ;;  %v3915_v43 = vld [vmem:[#allocation2 + $0x421] sm:$0xff]  ;;  %v3916_v44 = vld [vmem:[#allocation2 + $0x431] sm:$0xff] }
 0x297   :  { %12015 = vmatmul.mubr.bf16.gmra.mrb[12].mxu1 %v3122_v51  ;;  %v3515_v51 = vld [vmem:[#allocation2 + $0x440] sm:$0xff] }
 0x298   :  { %12031 = vmatpush3.bf16.msra.mxu1 %v12529_v47  ;;  %12034 = vmatprep.mubr.bf16.mxu1 %v3317_v56  ;;  %v3522_v47 = vpack.c.bf16 %v13850_v55, %v3509_v41  ;;  %v12544_v56 = vld [vmem:[%s16000_s3 + $0x3a8] sm:$0xff]   ;;  %v12550_v55 = vld [vmem:[%s16000_s3 + $0x3d8] sm:$0xff]  }
 0x299   :  { %12032 = vmatprep.subr.bf16.mxu1 %v12530_v52 }
 0x29c   :  { %12033 = vmatpush3.bf16.msra.mxu1 %v12530_v52  ;;  %v3516_v52 = vld [vmem:[#allocation2 + $0x450] sm:$0xff] }
 0x29d   :  { %12050 = vmatprep.subr.bf16.mxu1 %v12531_v50  ;;  %v3525_v58 = vpack.c.bf16 %v3516_v52, %v3515_v51  ;;  %v12568_v52 = vld [vmem:[%s16002_s5 + $0x6c0] sm:$0xff]  }
 0x29f   :  { %12035 = vmatmul.mubr.bf16.vlgmr.msra.gmra.mrb[0].mxu1 %v3318_v4  ;;  %v3706_v4 = vld [vmem:[#allocation2 + $0x271] sm:$0xff] }
 0x2a0   :  { %12051 = vmatpush3.bf16.msra.mxu1 %v12531_v50  ;;  %12038 = vmatprep.mubr.bf16.mxu1 %v3319_v0  ;;  %v3524_v50 = vpack.c.bf16 %v3514_v59, %v3513_v54  ;;  %v3708_v0 = vld [vmem:[#allocation2 + $0x291] sm:$0xff]  ;;  %v3721_v57 = vpack.c.bf16 %v3707_v31, %v3706_v4  ;;  %v3919_v54 = vld [vmem:[#allocation2 + $0x461] sm:$0xff] }
 0x2a1   :  { %12052 = vmatprep.subr.bf16.mxu1 %v12532_v3  ;;  %v3920_v59 = vld [vmem:[#allocation2 + $0x471] sm:$0xff]  ;;  %v12581_v31 = vld [vmem:[%s16002_s5 + $0x6e8] sm:$0xff]  }
 0x2a2   :  { %v3928_v51 = vpack.c.bf16 %v3920_v59, %v3919_v54  ;;  %v12577_v4 = vld [vmem:[%s16002_s5 + $0x78] sm:$0xff]  }
 0x2a4   :  { %12053 = vmatpush3.bf16.msra.mxu1 %v12532_v3  ;;  %v12547_v3 = vld [vmem:[%s16000_s3 + $0x3c0] sm:$0xff]  }
 0x2a5   :  { %12054 = vmatprep.subr.bf16.mxu1 %v12533_v8 }
 0x2a7   :  { %12039 = vmatmul.mubr.bf16.gmra.mrb[4].mxu1 %v3320_v18  ;;  %v3723_v18 = vpack.c.bf16 %v3711_v12, %v3710_v10  ;;  %v12587_v10 = vld [vmem:[%s16002_s5 + $0xc0] sm:$0xff]  }
 0x2a8   :  { %12055 = vmatpush3.bf16.msra.mxu1 %v12533_v8  ;;  %12042 = vmatprep.mubr.bf16.mxu1 %v3321_v11  ;;  %v3722_v8 = vpack.c.bf16 %v3709_v5, %v3708_v0  ;;  %v12551_v11 = vld [vmem:[%s16000_s3 + $0x3e0] sm:$0xff]   ;;  %v12579_v0 = vld [vmem:[%s16002_s5 + $0x38] sm:$0xff]   ;;  %v12582_v5 = vld [vmem:[%s16002_s5 + $0x6a8] sm:$0xff]  }
 0x2a9   :  { %12056 = vmatprep.subr.bf16.mxu1 %v12534_v33  ;;  %v12588_v12 = vld [vmem:[%s16002_s5 + $0x7c0] sm:$0xff]  }
 0x2ac   :  { %12057 = vmatpush3.bf16.msra.mxu1 %v12534_v33  ;;  %v3712_v33 = vld [vmem:[#allocation2 + $0x2e1] sm:$0xff] }
 0x2ad   :  { %12058 = vmatprep.subr.bf16.mxu1 %v12535_v39  ;;  %v3724_v40 = vpack.c.bf16 %v3713_v26, %v3712_v33  ;;  %v13994_v33 = vld [vmem:[%s16003_s4] ss:$0 sm:$0xff] }
 0x2af   :  { %12043 = vmatmul.mubr.bf16.gmra.mrb[8].mxu1 %v3322_v15  ;;  %v3718_v15 = vld [vmem:[#allocation2 + $0x341] sm:$0xff] }
 0x2b0   :  { %12059 = vmatpush3.bf16.msra.mxu1 %v12535_v39  ;;  %12046 = vmatprep.mubr.bf16.mxu1 %v3323_v16  ;;  %v3715_v39 = vld [vmem:[#allocation2 + $0x311] sm:$0xff] }
 0x2b1   :  { %12060 = vmatprep.subr.bf16.mxu1 %v12536_v35  ;;  %v3725_v13 = vpack.c.bf16 %v3715_v39, %v3714_v45  ;;  %v3719_v16 = vld [vmem:[#allocation2 + $0x351] sm:$0xff] }
 0x2b2   :  { %v3727_v23 = vpack.c.bf16 %v3719_v16, %v3718_v15 }
 0x2b4   :  { %12061 = vmatpush3.bf16.msra.mxu1 %v12536_v35  ;;  %v12553_v35 = vld [vmem:[%s16000_s3 + $0x3f0] sm:$0xff]  }
 0x2b5   :  { %12062 = vmatprep.subr.bf16.mxu1 %v12537_v19 }
 0x2b7   :  { %12047 = vmatmul.mubr.bf16.gmra.mrb[12].mxu1 %v3324_v17  ;;  %v3907_v17 = vld [vmem:[#allocation2 + $0x391] sm:$0xff] }
 0x2b8   :  { %12063 = vmatpush3.bf16.msra.mxu1 %v12537_v19  ;;  %12066 = vmatprep.mubr.bf16.mxu1 %v3519_v22  ;;  %v3905_v19 = vld [vmem:[#allocation2 + $0x371] sm:$0xff]  ;;  %v3908_v22 = vld [vmem:[#allocation2 + $0x3a1] sm:$0xff] }
 0x2b9   :  { %12064 = vmatprep.subr.bf16.mxu1 %v12538_v29  ;;  %v3922_v14 = vpack.c.bf16 %v3908_v22, %v3907_v17 }
 0x2bc   :  { %12065 = vmatpush3.bf16.msra.mxu1 %v12538_v29  ;;  %v3921_v29 = vpack.c.bf16 %v3906_v20, %v3905_v19 }
 0x2bd   :  { %12082 = vmatprep.subr.bf16.mxu1 %v12539_v24 }
 0x2bf   :  { %12067 = vmatmul.mubr.bf16.vlgmr.msra.gmra.mrb[0].mxu1 %v3520_v36  ;;  %v3913_v36 = vld [vmem:[#allocation2 + $0x401] sm:$0xff] }
 0x2c0   :  { %12083 = vmatpush3.bf16.msra.mxu1 %v12539_v24  ;;  %12070 = vmatprep.mubr.bf16.mxu1 %v3521_v37  ;;  %v3909_v24 = vld [vmem:[#allocation2 + $0x3b1] sm:$0xff] }
 0x2c1   :  { %12084 = vmatprep.subr.bf16.mxu1 %v12540_v34  ;;  %v3923_v28 = vpack.c.bf16 %v3910_v25, %v3909_v24  ;;  %v3914_v37 = vld [vmem:[#allocation2 + $0x411] sm:$0xff] }
 0x2c2   :  { %v3925_v41 = vpack.c.bf16 %v3914_v37, %v3913_v36 }
 0x2c4   :  { %12085 = vmatpush3.bf16.msra.mxu1 %v12540_v34  ;;  %v3912_v34 = vld [vmem:[#allocation2 + $0x3e1] sm:$0xff] }
 0x2c5   :  { %12086 = vmatprep.subr.bf16.mxu1 %v12541_v38 }
 0x2c7   :  { %12071 = vmatmul.mubr.bf16.gmra.mrb[4].mxu1 %v3522_v47  ;;  %v3918_v47 = vld [vmem:[#allocation2 + $0x451] sm:$0xff] }
 0x2c8   :  { %12087 = vmatpush3.bf16.msra.mxu1 %v12541_v38  ;;  %12074 = vmatprep.mubr.bf16.mxu1 %v3523_v48  ;;  %v3924_v38 = vpack.c.bf16 %v3912_v34, %v3911_v32  ;;  %v3926_v48 = vpack.c.bf16 %v3916_v44, %v3915_v43 }
 0x2c9   :  { %12088 = vmatprep.subr.bf16.mxu1 %v12542_v46 }
 0x2cc   :  { %12089 = vmatpush3.bf16.msra.mxu1 %v12542_v46  ;;  %v3917_v46 = vld [vmem:[#allocation2 + $0x441] sm:$0xff] }
 0x2cd   :  { %12090 = vmatprep.subr.bf16.mxu1 %v12543_v27 }
 0x2cf   :  { %12075 = vmatmul.mubr.bf16.gmra.mrb[8].mxu1 %v3524_v50  ;;  %v12567_v50 = vld [vmem:[%s16002_s5 + $0x70] sm:$0xff]  }
 0x2d0   :  { %12091 = vmatpush3.bf16.msra.mxu1 %v12543_v27  ;;  %12078 = vmatprep.mubr.bf16.mxu1 %v3525_v58  ;;  %v3927_v27 = vpack.c.bf16 %v3918_v47, %v3917_v46  ;;  %v12571_v58 = vld [vmem:[%s16002_s5 + $0x6c8] sm:$0xff]  }
 0x2d1   :  { %12092 = vmatprep.subr.bf16.mxu1 %v12544_v56  ;;  %10862 = vmatprep.subr.bf16.mxu0 %v12567_v50 }
 0x2d4   :  { %12093 = vmatpush3.bf16.msra.mxu1 %v12544_v56  ;;  %v12570_v56 = vld [vmem:[%s16002_s5 + $0x680] sm:$0xff]  }
 0x2d5   :  { %12094 = vmatprep.subr.bf16.mxu1 %v12545_v30 }
 0x2d7   :  { %12079 = vmatmul.mubr.bf16.gmra.mrb[12].mxu1 %v3526_v1  ;;  %v12576_v1 = vld [vmem:[%s16002_s5 + $0x698] sm:$0xff]  }
 0x2d8   :  { %12095 = vmatpush3.bf16.msra.mxu1 %v12545_v30  ;;  %12098 = vmatprep.mubr.bf16.mxu1 %v3720_v42  ;;  %v12569_v30 = vld [vmem:[%s16002_s5 + $0x30] sm:$0xff]   ;;  %v12578_v42 = vld [vmem:[%s16002_s5 + $0x6e0] sm:$0xff]  }
 0x2d9   :  { %12096 = vmatprep.subr.bf16.mxu1 %v12546_v63  ;;  %10863 = vmatpush3.bf16.msra.mxu0 %v12569_v30 }
 0x2da   :  { %10864 = vmatprep.subr.bf16.mxu0 %v12577_v4 }
 0x2dc   :  { %12097 = vmatpush3.bf16.msra.mxu1 %v12546_v63  ;;  %v12575_v63 = vld [vmem:[%s16002_s5 + $0x6d8] sm:$0xff]  }
 0x2dd   :  { %12114 = vmatprep.subr.bf16.mxu1 %v12547_v3  ;;  %10865 = vmatpush3.bf16.msra.mxu0 %v12579_v0 }
 0x2de   :  { %10872 = vmatprep.subr.bf16.mxu0 %v12587_v10 }
 0x2df   :  { %12099 = vmatmul.mubr.bf16.vlgmr.msra.gmra.mrb[0].mxu1 %v3721_v57  ;;  %v12584_v57 = vld [vmem:[%s16002_s5 + $0x6b0] sm:$0xff]  }
 0x2e0   :  { %12115 = vmatpush3.bf16.msra.mxu1 %v12547_v3  ;;  %12102 = vmatprep.mubr.bf16.mxu1 %v3722_v8  ;;  %v12580_v3 = vld [vmem:[%s16002_s5 + $0x6a0] sm:$0xff]   ;;  %v12585_v8 = vld [vmem:[%s16002_s5 + $0x6f8] sm:$0xff]  }
 0x2e1   :  { %12116 = vmatprep.subr.bf16.mxu1 %v12548_v7 }
 0x2e4   :  { %12117 = vmatpush3.bf16.msra.mxu1 %v12548_v7  ;;  %v12583_v7 = vld [vmem:[%s16002_s5 + $0x6f0] sm:$0xff]  }
 0x2e5   :  { %12118 = vmatprep.subr.bf16.mxu1 %v12549_v53 }
 0x2e7   :  { %12103 = vmatmul.mubr.bf16.gmra.mrb[4].mxu1 %v3723_v18 }
 0x2e8   :  { %12119 = vmatpush3.bf16.msra.mxu1 %v12549_v53  ;;  %12106 = vmatprep.mubr.bf16.mxu1 %v3724_v40  ;;  %v12586_v53 = vld [vmem:[%s16002_s5 + $0x6b8] sm:$0xff]  }
 0x2e9   :  { %12120 = vmatprep.subr.bf16.mxu1 %v12550_v55 }
 0x2ec   :  { %12121 = vmatpush3.bf16.msra.mxu1 %v12550_v55 }
 0x2ed   :  { %12122 = vmatprep.subr.bf16.mxu1 %v12551_v11 }
 0x2ef   :  { %12107 = vmatmul.mubr.bf16.gmra.mrb[8].mxu1 %v3725_v13 }
 0x2f0   :  { %12123 = vmatpush3.bf16.msra.mxu1 %v12551_v11  ;;  %12110 = vmatprep.mubr.bf16.mxu1 %v3726_v2 }
 0x2f1   :  { %12124 = vmatprep.subr.bf16.mxu1 %v12552_v49 }
 0x2f4   :  { %12125 = vmatpush3.bf16.msra.mxu1 %v12552_v49 }
 0x2f5   :  { %12126 = vmatprep.subr.bf16.mxu1 %v12553_v35 }
 0x2f7   :  { %12111 = vmatmul.mubr.bf16.gmra.mrb[12].mxu1 %v3727_v23 }
 0x2f8   :  { %12127 = vmatpush3.bf16.msra.mxu1 %v12553_v35  ;;  %12130 = vmatprep.mubr.bf16.mxu1 %v3921_v29 }
 0x2f9   :  { %12128 = vmatprep.subr.bf16.mxu1 %v12554_v21 }
 0x2fc   :  { %12129 = vmatpush3.bf16.msra.mxu1 %v12554_v21 }
 0x2fd   :  { %11136 = vmatprep.subr.bf16.mxu1 %v12568_v52 }
 0x2ff   :  { %12131 = vmatmul.mubr.bf16.vlgmr.msra.gmra.mrb[0].mxu1 %v3922_v14 }
 0x300   :  { %12134 = vmatprep.mubr.bf16.mxu1 %v3923_v28  ;;  %11137 = vmatpush3.bf16.msra.mxu1 %v12570_v56 }
 0x301   :  { %11138 = vmatprep.subr.bf16.mxu1 %v12571_v58 }
 0x304   :  { %11139 = vmatpush3.bf16.msra.mxu1 %v12572_v60 }
 0x305   :  { %11140 = vmatprep.subr.bf16.mxu1 %v12573_v61 }
 0x307   :  { %12135 = vmatmul.mubr.bf16.gmra.mrb[4].mxu1 %v3924_v38 }
 0x308   :  { %12138 = vmatprep.mubr.bf16.mxu1 %v3925_v41  ;;  %11141 = vmatpush3.bf16.msra.mxu1 %v12574_v62 }
 0x309   :  { %11142 = vmatprep.subr.bf16.mxu1 %v12575_v63 }
 0x30c   :  { %11143 = vmatpush3.bf16.msra.mxu1 %v12576_v1 }
 0x30d   :  { %11144 = vmatprep.subr.bf16.mxu1 %v12578_v42 }
 0x30f   :  { %12139 = vmatmul.mubr.bf16.gmra.mrb[8].mxu1 %v3926_v48 }
 0x310   :  { %12142 = vmatprep.mubr.bf16.mxu1 %v3927_v27  ;;  %11145 = vmatpush3.bf16.msra.mxu1 %v12580_v3 }
 0x311   :  { %11146 = vmatprep.subr.bf16.mxu1 %v12581_v31 }
 0x314   :  { %11147 = vmatpush3.bf16.msra.mxu1 %v12582_v5 }
 0x315   :  { %11148 = vmatprep.subr.bf16.mxu1 %v12583_v7 }
 0x317   :  { %12143 = vmatmul.mubr.bf16.gmra.mrb[12].mxu1 %v3928_v51 }
 0x318   :  { %11149 = vmatpush3.bf16.msra.mxu1 %v12584_v57 }
 0x319   :  { %11150 = vmatprep.subr.bf16.mxu1 %v12585_v8 }
 0x31c   :  { %11151 = vmatpush3.bf16.msra.mxu1 %v12586_v53 }
 0x31d   :  { %11180 = vmatprep.subr.bf16.mxu1 %v12588_v12 }
 0x3d2   :  { %v12132_v26 = vpop.f32.mrb[0].mxu1 }
 0x3d3   :  { %v4115_v55 = vadd.f32 %v12132_v26, %v13994_v33  ;;  %v4027_v18 = vpop.f32.mrb[1].mxu1 }
 0x3d4   :  { %v4113_v40 = vadd.f32 %v13994_v33, %v4027_v18  ;;  %v12133_v11 = vpop.f32.mrb[2].mxu1 }
 0x3d5   :  { %v4116_v45 = vadd.f32 %v12133_v11, %v13994_v33  ;;  %v4030_v39 = vpop.f32.mrb[3].mxu1  ;;  %v4131_v9 = vmax.f32 %v4115_v55, 0.0 }
 0x3d6   :  { %v4114_v6 = vadd.f32 %v13994_v33, %v4030_v39  ;;  %v4129_v13 = vmax.f32 %v4113_v40, 0.0 }
 0x3d7   :  { %v4132_v49 = vmax.f32 %v4116_v45, 0.0 }
 0x3d8   :  { %v4130_v2 = vmax.f32 %v4114_v6, 0.0 }
 0x3d9   :  { %v14000_v35 = vpack.c.bf16 %v4132_v49, %v4131_v9 }
 0x3da   :  { %v4145_v15 = vpack.c.bf16 %v4130_v2, %v4129_v13  ;;  %v12136_v16 = vpop.f32.mrb[4].mxu1 }
 0x3db   :  { %v4119_v19 = vadd.f32 %v12136_v16, %v13994_v33  ;;  %v4043_v20 = vpop.f32.mrb[5].mxu1  ;;  %v14007_v14 = vunpack.c.h.b16 %v14000_v35 }
 0x3dc   :  { %v4117_v21 = vadd.f32 %v13994_v33, %v4043_v20  ;;  %v12137_v23 = vpop.f32.mrb[6].mxu1  ;;  %v14009_v34 = vunpack.c.l.b16 %v4145_v15  ;;  %v14014_v44 = vunpack.c.h.b16 %v4145_v15 }
 0x3dd   :  { %v4120_v29 = vadd.f32 %v12137_v23, %v13994_v33  ;;  %v4046_v17 = vpop.f32.mrb[7].mxu1  ;;  %v4135_v24 = vmax.f32 %v4119_v19, 0.0  ;;  %v4293_v48 = vrot.slane %v14007_v14, 3  ;;  %v4288_v51 = vrot.slane %v14007_v14, 2 }
 0x3de   :  { %v4118_v22 = vadd.f32 %v13994_v33, %v4046_v17  ;;  %v4133_v28 = vmax.f32 %v4117_v21, 0.0  ;;  %v4162_v59 = vrot.slane %v14009_v34, 1  ;;  %v4171_v52 = vrot.slane %v14009_v34, 3  ;;  %v12589_v17 = vld [vmem:[%s16002_s5 + $0x80] sm:$0xff]  }
 0x3df   :  { %v4136_v25 = vmax.f32 %v4120_v29, 0.0  ;;  %v4313_v50 = vrot.slane %v14007_v14, 7  ;;  %v4166_v58 = vrot.slane %v14009_v34, 2  ;;  %v4308_v30 = vrot.slane %v14007_v14, 6 }
 0x3e0   :  { %v4134_v32 = vmax.f32 %v4118_v22, 0.0  ;;  %v4181_v62 = vrot.slane %v14009_v34, 5  ;;  %v4176_v63 = vrot.slane %v14009_v34, 4  ;;  %v4191_v3 = vrot.slane %v14009_v34, 7  ;;  %v12590_v22 = vld [vmem:[%s16002_s5 + $0x780] sm:$0xff]  }
 0x3e1   :  { %v14011_v36 = vpack.c.bf16 %v4136_v25, %v4135_v24  ;;  %v4186_v4 = vrot.slane %v14009_v34, 6  ;;  %v4202_v0 = vrot.slane %v14014_v44, 1  ;;  %v4211_v5 = vrot.slane %v14014_v44, 3 }
 0x3e2   :  { %v4147_v37 = vpack.c.bf16 %v4134_v32, %v4133_v28  ;;  %v12140_v38 = vpop.f32.mrb[8].mxu1  ;;  %v4206_v7 = vrot.slane %v14014_v44, 2  ;;  %v4221_v10 = vrot.slane %v14014_v44, 5  ;;  %v4216_v12 = vrot.slane %v14014_v44, 4 }
 0x3e3   :  { %v4123_v41 = vadd.f32 %v12140_v38, %v13994_v33  ;;  %v4059_v43 = vpop.f32.mrb[9].mxu1  ;;  %v14036_v57 = vunpack.c.l.b16 %v14011_v36  ;;  %v4231_v11 = vrot.slane %v14014_v44, 7  ;;  %v4226_v49 = vrot.slane %v14014_v44, 6 }
 0x3e4   :  { %v4121_v46 = vadd.f32 %v13994_v33, %v4059_v43  ;;  %v12141_v47 = vpop.f32.mrb[10].mxu1  ;;  %v14042_v26 = vunpack.c.l.b16 %v4147_v37  ;;  %v14049_v45 = vunpack.c.h.b16 %v4147_v37 }
 0x3e5   :  { %v4124_v27 = vadd.f32 %v12141_v47, %v13994_v33  ;;  %v4062_v54 = vpop.f32.mrb[11].mxu1  ;;  %v4139_v60 = vmax.f32 %v4123_v41, 0.0 }
 0x3e6   :  { %v4122_v56 = vadd.f32 %v13994_v33, %v4062_v54  ;;  %v4137_v1 = vmax.f32 %v4121_v46, 0.0  ;;  %v12592_v46 = vld [vmem:[%s16002_s5 + $0x7c8] sm:$0xff]  }
 0x3e7   :  { %v4140_v61 = vmax.f32 %v4124_v27, 0.0 }
 0x3e8   :  { %v4138_v42 = vmax.f32 %v4122_v56, 0.0 }
 0x3e9   :  { %v14030_v31 = vpack.c.bf16 %v4140_v61, %v4139_v60 }
 0x3ea   :  { %v14038_v8 = vpack.c.bf16 %v4138_v42, %v4137_v1  ;;  %v12144_v53 = vpop.f32.mrb[12].mxu1 }
 0x3eb   :  { %v14045_v55 = vunpack.c.h.b16 %v14030_v31  ;;  %v4127_v18 = vadd.f32 %v12144_v53, %v13994_v33  ;;  %v4075_v40 = vpop.f32.mrb[13].mxu1  ;;  %v4417_v53 = vrot.slane %v14036_v57, 3 }
 0x3ec   :  { %v14052_v39 = vunpack.c.l.b16 %v14038_v8  ;;  %v4125_v6 = vadd.f32 %v13994_v33, %v4075_v40  ;;  %v12145_v9 = vpop.f32.mrb[14].mxu1 }
 0x3ed   :  { %v4143_v13 = vmax.f32 %v4127_v18, 0.0  ;;  %v4128_v2 = vadd.f32 %v12145_v9, %v13994_v33  ;;  %v4078_v15 = vpop.f32.mrb[15].mxu1  ;;  %v4294_v16 = vrot.slane %v14045_v55, 2  ;;  %v4289_v19 = vrot.slane %v14045_v55, 1 }
 0x3ee   :  { %v4141_v20 = vmax.f32 %v4125_v6, 0.0  ;;  %v4126_v21 = vadd.f32 %v13994_v33, %v4078_v15  ;;  %v4163_v23 = vsel %vm4158_vm0, %v14052_v39, %v4162_v59  ;;  %v4157_v29 = vrot.slane %v14052_v39, 7  ;;  %v12591_v33 = vld [vmem:[%s16002_s5 + $0xc8] sm:$0xff]  }
 0x3ef   :  { %v4144_v24 = vmax.f32 %v4128_v2, 0.0  ;;  %v4164_v25 = vpack.c.b16 %v4163_v23, %v4163_v23  ;;  %v4295_v28 = vsel %vm4158_vm0, %v4294_v16, %v4293_v48  ;;  %v4290_v32 = vsel %vm4158_vm0, %v4289_v19, %v4288_v51  ;;  %v12593_v51 = vld [vmem:[%s16002_s5 + $0x88] sm:$0xff]   ;;  %v12596_v2 = vld [vmem:[%s16002_s5 + $0x7d0] sm:$0xff]  }
 0x3f0   :  { %v4142_v37 = vmax.f32 %v4126_v21, 0.0  ;;  %v4296_v38 = vpack.c.b16 %v4295_v28, %v4295_v28  ;;  %v4159_v41 = vsel %vm4158_vm0, %v4157_v29, %v14009_v34  ;;  %v4291_v43 = vpack.c.b16 %v4290_v32, %v4290_v32 }
 0x3f1   :  { %v14079_v47 = vpack.c.bf16 %v4144_v24, %v4143_v13  ;;  %8617 = vmatprep.mubr.bf16.mxu0 %v4164_v25  ;;  %v4160_v48 = vpack.c.b16 %v4159_v41, %v4159_v41  ;;  %v4172_v27 = vrot.slane %v14052_v39, 2  ;;  %v4314_v54 = vrot.slane %v14045_v55, 6  ;;  %v12598_v24 = vld [vmem:[%s16002_s5 + $0x790] sm:$0xff]  }
 0x3f2   :  { %v4151_v59 = vpack.c.bf16 %v4142_v37, %v4141_v20  ;;  %9137 = vmatprep.mubr.bf16.mxu1 %v4296_v38  ;;  %v4167_v56 = vrot.slane %v14052_v39, 1  ;;  %v4309_v60 = vrot.slane %v14045_v55, 5  ;;  %v4182_v61 = vrot.slane %v14052_v39, 4  ;;  %v12600_v37 = vld [vmem:[%s16002_s5 + $0x7d8] sm:$0xff]  }
 0x3f3   :  { %8618 = vmatmul.mubr.bf16.vlgmr.msra.gmra.mrb[64].mxu0 %v4160_v48  ;;  %9138 = vmatmul.mubr.bf16.vlgmr.msra.gmra.mrb[16].mxu1 %v4291_v43  ;;  %v4173_v1 = vsel %vm4158_vm0, %v4172_v27, %v4171_v52  ;;  %v4315_v42 = vsel %vm4158_vm0, %v4314_v54, %v4313_v50  ;;  %v4412_v18 = vrot.slane %v14036_v57, 2  ;;  %v12594_v52 = vld [vmem:[%s16002_s5 + $0x788] sm:$0xff]   ;;  %v12595_v50 = vld [vmem:[%s16002_s5 + $0xd0] sm:$0xff]   ;;  %v4177_v20 = vrot.slane %v14052_v39, 3  ;;  %v12602_v48 = vld [vmem:[%s16002_s5 + $0x798] sm:$0xff]  }
 0x3f4   :  { %v14097_v40 = vunpack.c.l.b16 %v4151_v59  ;;  %v14099_v6 = vunpack.c.h.b16 %v4151_v59  ;;  %10873 = vmatpush3.bf16.msra.mxu0 %v12589_v17  ;;  %11181 = vmatpush3.bf16.msra.mxu1 %v12590_v22  ;;  %v4174_v9 = vpack.c.b16 %v4173_v1, %v4173_v1  ;;  %v4316_v13 = vpack.c.b16 %v4315_v42, %v4315_v42  ;;  %v12603_v1 = vld [vmem:[%s16002_s5 + $0xe0] sm:$0xff]  }
 0x3f5   :  { %10874 = vmatprep.subr.bf16.mxu0 %v12591_v33  ;;  %11182 = vmatprep.subr.bf16.mxu1 %v12592_v46  ;;  %v14113_v15 = vsel %vm4158_vm0, %v4167_v56, %v4166_v58  ;;  %v14118_v16 = vsel %vm4158_vm0, %v4309_v60, %v4308_v30  ;;  %v14123_v19 = vsel %vm4158_vm0, %v4182_v61, %v4181_v62  ;;  %v14127_v21 = vunpack.c.h.b16 %v14038_v8  ;;  %v12597_v30 = vld [vmem:[%s16002_s5 + $0x90] sm:$0xff]   ;;  %v12599_v33 = vld [vmem:[%s16002_s5 + $0xd8] sm:$0xff]  }
 0x3f6   :  { %8657 = vmatprep.mubr.bf16.mxu0 %v4174_v9  ;;  %9217 = vmatprep.mubr.bf16.mxu1 %v4316_v13  ;;  %v4335_v58 = vrot.slane %v14042_v26, 3  ;;  %v4336_v23 = vrot.slane %v14097_v40, 2  ;;  %v4330_v29 = vrot.slane %v14042_v26, 2  ;;  %v14138_v62 = vsel %vm4158_vm0, %v4177_v20, %v4176_v63  ;;  %v12601_v46 = vld [vmem:[%s16002_s5 + $0x98] sm:$0xff]  }
 0x3f7   :  { %v4331_v8 = vrot.slane %v14097_v40, 1  ;;  %v4192_v17 = vrot.slane %v14052_v39, 6  ;;  %v4356_v22 = vrot.slane %v14097_v40, 6  ;;  %v4355_v28 = vrot.slane %v14042_v26, 7 }
 0x3f8   :  { %10875 = vmatpush3.bf16.msra.mxu0 %v12593_v51  ;;  %11183 = vmatpush3.bf16.msra.mxu1 %v12594_v52  ;;  %v14147_v25 = vsel %vm4158_vm0, %v4336_v23, %v4335_v58  ;;  %v4187_v63 = vrot.slane %v14052_v39, 5  ;;  %v4351_v32 = vrot.slane %v14097_v40, 5  ;;  %v4350_v39 = vrot.slane %v14042_v26, 6 }
 0x3f9   :  { %10876 = vmatprep.subr.bf16.mxu0 %v12595_v50  ;;  %11184 = vmatprep.subr.bf16.mxu1 %v12596_v2  ;;  %v14159_v38 = vsel %vm4158_vm0, %v4331_v8, %v4330_v29  ;;  %v14164_v41 = vsel %vm4158_vm0, %v4192_v17, %v4191_v3  ;;  %v4376_v43 = vrot.slane %v14099_v6, 2  ;;  %v14175_v27 = vsel %vm4158_vm0, %v4356_v22, %v4355_v28  ;;  %v12605_v50 = vld [vmem:[%s16002_s5 + $0xa0] sm:$0xff]  }
 0x3fa   :  { %v14180_v3 = vsel %vm4158_vm0, %v4187_v63, %v4186_v4  ;;  %v4375_v54 = vrot.slane %v14049_v45, 3  ;;  %v4370_v59 = vrot.slane %v14049_v45, 2  ;;  %v14185_v51 = vunpack.c.l.b16 %v14000_v35  ;;  %v12606_v2 = vld [vmem:[%s16002_s5 + $0x7a0] sm:$0xff]  }
 0x3fb   :  { %v14188_v56 = vsel %vm4158_vm0, %v4351_v32, %v4350_v39  ;;  %v14194_v60 = vsel %vm4158_vm0, %v14127_v21, %v4202_v0  ;;  %v14197_v34 = vunpack.c.l.b16 %v14079_v47  ;;  %v4198_v35 = vrot.slane %v14127_v21, 7  ;;  %v12604_v0 = vld [vmem:[%s16002_s5 + $0x7e0] sm:$0xff]   ;;  %v12609_v39 = vld [vmem:[%s16002_s5 + $0xa8] sm:$0xff]  }
 0x3fc   :  { %10877 = vmatpush3.bf16.msra.mxu0 %v12597_v30  ;;  %11185 = vmatpush3.bf16.msra.mxu1 %v12598_v24  ;;  %v14200_v4 = vsel %vm4158_vm0, %v4376_v43, %v4375_v54  ;;  %v4395_v61 = vrot.slane %v14049_v45, 7  ;;  %v4371_v42 = vrot.slane %v14099_v6, 1  ;;  %v4212_v9 = vrot.slane %v14127_v21, 2  ;;  %v12610_v43 = vld [vmem:[%s16002_s5 + $0x7a8] sm:$0xff]  }
 0x3fd   :  { %10878 = vmatprep.subr.bf16.mxu0 %v12599_v33  ;;  %11186 = vmatprep.subr.bf16.mxu1 %v12600_v37  ;;  %v4396_v13 = vrot.slane %v14099_v6, 6  ;;  %v4390_v52 = vrot.slane %v14049_v45, 6  ;;  %v14222_v20 = vsel %vm4158_vm0, %v4198_v35, %v14014_v44  ;;  %v4207_v58 = vrot.slane %v14127_v21, 1 }
 0x3fe   :  { %v4391_v23 = vrot.slane %v14099_v6, 5  ;;  %v4222_v29 = vrot.slane %v14127_v21, 4  ;;  %v14228_v30 = vunpack.c.h.b16 %v14011_v36  ;;  %v14231_v8 = vsel %vm4158_vm0, %v4371_v42, %v4370_v59 }
 0x3ff   :  { %v14236_v17 = vsel %vm4158_vm0, %v4212_v9, %v4211_v5  ;;  %v14239_v22 = vsel %vm4158_vm0, %v4396_v13, %v4395_v61  ;;  %v14242_v24 = vunpack.c.l.b16 %v14030_v31  ;;  %v14245_v28 = vunpack.c.h.b16 %v14079_v47  ;;  %v12607_v5 = vld [vmem:[%s16002_s5 + $0xe8] sm:$0xff]  }
 0x400   :  { %10879 = vmatpush3.bf16.msra.mxu0 %v12601_v46  ;;  %11187 = vmatpush3.bf16.msra.mxu1 %v12602_v48  ;;  %v4418_v36 = vrot.slane %v14197_v34, 2  ;;  %v4437_v63 = vrot.slane %v14036_v57, 7  ;;  %v12608_v31 = vld [vmem:[%s16002_s5 + $0x7e8] sm:$0xff]   ;;  %v14258_v47 = vsel %vm4158_vm0, %v4207_v58, %v4206_v7  ;;  %v14261_v32 = vsel %vm4158_vm0, %v4391_v23, %v4390_v52  ;;  %v12613_v52 = vld [vmem:[%s16002_s5 + $0xb0] sm:$0xff]  }
 0x401   :  { %10880 = vmatprep.subr.bf16.mxu0 %v12603_v1  ;;  %11188 = vmatprep.subr.bf16.mxu1 %v12604_v0  ;;  %v14266_v33 = vsel %vm4158_vm0, %v4222_v29, %v4221_v10  ;;  %v4217_v37 = vrot.slane %v14127_v21, 3  ;;  %v4432_v46 = vrot.slane %v14036_v57, 6  ;;  %v4244_v10 = vrot.slane %v14185_v51, 1  ;;  %v12612_v0 = vld [vmem:[%s16002_s5 + $0x7f0] sm:$0xff]  }
 0x402   :  { %v14278_v7 = vsel %vm4158_vm0, %v4418_v36, %v4417_v53  ;;  %v4413_v54 = vrot.slane %v14197_v34, 1  ;;  %v4232_v59 = vrot.slane %v14127_v21, 6  ;;  %v4438_v35 = vrot.slane %v14197_v34, 6  ;;  %v12614_v23 = vld [vmem:[%s16002_s5 + $0x7b0] sm:$0xff]  }
 0x403   :  { %v14285_v48 = vsel %vm4158_vm0, %v4217_v37, %v4216_v12  ;;  %v4227_v53 = vrot.slane %v14127_v21, 5  ;;  %v4433_v61 = vrot.slane %v14197_v34, 5  ;;  %v4457_v1 = vrot.slane %v14228_v30, 3  ;;  %v12611_v12 = vld [vmem:[%s16002_s5 + $0xf0] sm:$0xff]  }
 0x404   :  { %10881 = vmatpush3.bf16.msra.mxu0 %v12605_v50  ;;  %11189 = vmatpush3.bf16.msra.mxu1 %v12606_v2  ;;  %v14302_v42 = vsel %vm4158_vm0, %v4413_v54, %v4412_v18  ;;  %v14307_v21 = vsel %vm4158_vm0, %v4232_v59, %v4231_v11  ;;  %v14311_v9 = vsel %vm4158_vm0, %v14242_v24, %v4244_v10  ;;  %v4458_v13 = vrot.slane %v14245_v28, 2 }
 0x405   :  { %10882 = vmatprep.subr.bf16.mxu0 %v12607_v5  ;;  %11190 = vmatprep.subr.bf16.mxu1 %v12608_v31  ;;  %v14318_v50 = vsel %vm4158_vm0, %v4438_v35, %v4437_v63  ;;  %v14323_v18 = vsel %vm4158_vm0, %v4227_v53, %v4226_v49  ;;  %v4452_v11 = vrot.slane %v14228_v30, 2  ;;  %v4253_v2 = vrot.slane %v14185_v51, 3  ;;  %v12615_v63 = vld [vmem:[%s16002_s5 + $0xf8] sm:$0xff]  }
 0x406   :  { %v14328_v58 = vsel %vm4158_vm0, %v4433_v61, %v4432_v46  ;;  %v14334_v29 = vsel %vm4158_vm0, %v4458_v13, %v4457_v1  ;;  %v4240_v44 = vrot.slane %v14242_v24, 7  ;;  %v4453_v49 = vrot.slane %v14245_v28, 1  ;;  %v12616_v5 = vld [vmem:[%s16002_s5 + $0x7f8] sm:$0xff]   ;;  %v12620_v13 = vld [vmem:[%s16002_s5 + $0x8c0] sm:$0xff]  }
 0x407   :  { %v4477_v36 = vrot.slane %v14228_v30, 7  ;;  %v4254_v31 = vrot.slane %v14242_v24, 2  ;;  %v4478_v37 = vrot.slane %v14245_v28, 6  ;;  %v12617_v46 = vld [vmem:[%s16002_s5 + $0xb8] sm:$0xff]   ;;  %v4472_v59 = vrot.slane %v14228_v30, 6 }
 0x408   :  { %10883 = vmatpush3.bf16.msra.mxu0 %v12609_v39  ;;  %11191 = vmatpush3.bf16.msra.mxu1 %v12610_v43  ;;  %v4248_v39 = vrot.slane %v14185_v51, 2  ;;  %v4249_v43 = vrot.slane %v14242_v24, 1  ;;  %v14354_v10 = vsel %vm4158_vm0, %v4240_v44, %v14185_v51  ;;  %v14357_v54 = vsel %vm4158_vm0, %v4453_v49, %v4452_v11  ;;  %v12618_v1 = vld [vmem:[%s16002_s5 + $0x7b8] sm:$0xff]  }
 0x409   :  { %10884 = vmatprep.subr.bf16.mxu0 %v12611_v12  ;;  %11192 = vmatprep.subr.bf16.mxu1 %v12612_v0  ;;  %v4473_v35 = vrot.slane %v14245_v28, 5  ;;  %v14362_v53 = vsel %vm4158_vm0, %v4254_v31, %v4253_v2  ;;  %v14365_v61 = vsel %vm4158_vm0, %v4478_v37, %v4477_v36  ;;  %v12619_v0 = vld [vmem:[%s16002_s5 + $0x140] sm:$0xff]   ;;  %v4263_v11 = vrot.slane %v14185_v51, 5 }
 0x40a   :  { %v14371_v12 = vsel %vm4158_vm0, %v4249_v43, %v4248_v39  ;;  %v4264_v2 = vrot.slane %v14242_v24, 4  ;;  %v4259_v44 = vrot.slane %v14242_v24, 3  ;;  %v4273_v49 = vrot.slane %v14185_v51, 7  ;;  %v12622_v31 = vld [vmem:[%s16002_s5 + $0x880] sm:$0xff]  }
 0x40b   :  { %v4274_v36 = vrot.slane %v14242_v24, 6  ;;  %v4268_v39 = vrot.slane %v14185_v51, 6  ;;  %v4269_v43 = vrot.slane %v14242_v24, 5  ;;  %v4184_v24 = vpack.c.b16 %v14123_v19, %v14123_v19 }
 0x40c   :  { %10885 = vmatpush3.bf16.msra.mxu0 %v12613_v52  ;;  %11193 = vmatpush3.bf16.msra.mxu1 %v12614_v23  ;;  %v14380_v52 = vsel %vm4158_vm0, %v4473_v35, %v4472_v59  ;;  %v4258_v23 = vrot.slane %v14185_v51, 4  ;;  %v14397_v37 = vsel %vm4158_vm0, %v4264_v2, %v4263_v11  ;;  %v4280_v11 = vrot.slane %v14045_v55, 7 }
 0x40d   :  { %10886 = vmatprep.subr.bf16.mxu0 %v12615_v63  ;;  %11194 = vmatprep.subr.bf16.mxu1 %v12616_v5  ;;  %16006 = vst [vmem:[#allocation3_spill] sm:$0xff] %v14380_v52  ;;  %v4169_v63 = vpack.c.b16 %v14113_v15, %v14113_v15  ;;  %v12621_v5 = vld [vmem:[%s16002_s5 + $0x100] sm:$0xff]   ;;  %v12623_v15 = vld [vmem:[%s16002_s5 + $0x148] sm:$0xff]   ;;  %v14408_v35 = vsel %vm4158_vm0, %v4274_v36, %v4273_v49  ;;  %v4284_v52 = vrot.slane %v14007_v14, 1  ;;  %v4326_v36 = vrot.slane %v14042_v26, 1 }
 0x40e   :  { %v14405_v59 = vsel %vm4158_vm0, %v4259_v44, %v4258_v23  ;;  %v4311_v51 = vpack.c.b16 %v14118_v16, %v14118_v16  ;;  %v4303_v16 = vrot.slane %v14007_v14, 5  ;;  %v4338_v19 = vpack.c.b16 %v14147_v25, %v14147_v25 }
 0x40f   :  { %v14424_v2 = vsel %vm4158_vm0, %v14045_v55, %v4284_v52  ;;  %v4298_v23 = vrot.slane %v14007_v14, 4  ;;  %v4299_v44 = vrot.slane %v14045_v55, 3  ;;  %v12625_v52 = vld [vmem:[%s16002_s5 + $0x108] sm:$0xff]  }
 0x410   :  { %10887 = vmatpush3.bf16.msra.mxu0 %v12617_v46  ;;  %11195 = vmatpush3.bf16.msra.mxu1 %v12618_v1  ;;  %v12624_v46 = vld [vmem:[%s16002_s5 + $0x8c8] sm:$0xff]   ;;  %v14420_v1 = vsel %vm4158_vm0, %v4269_v43, %v4268_v39  ;;  %v4346_v39 = vrot.slane %v14097_v40, 4  ;;  %v14460_v43 = vsel %vm4158_vm0, %v14097_v40, %v4326_v36  ;;  %v4386_v36 = vrot.slane %v14099_v6, 4 }
 0x411   :  { %10894 = vmatprep.subr.bf16.mxu0 %v12619_v0  ;;  %11224 = vmatprep.subr.bf16.mxu1 %v12620_v13  ;;  %v14428_v0 = vsel %vm4158_vm0, %v4280_v11, %v14007_v14  ;;  %v4304_v13 = vrot.slane %v14045_v55, 4  ;;  %v12626_v14 = vld [vmem:[%s16002_s5 + $0x888] sm:$0xff]   ;;  %v12627_v55 = vld [vmem:[%s16002_s5 + $0x150] sm:$0xff]   ;;  %v14451_v25 = vsel %vm4158_vm0, %v4299_v44, %v4298_v23  ;;  %v12632_v23 = vld [vmem:[%s16002_s5 + $0x8d8] sm:$0xff]  }
 0x413   :  { %8658 = vmatmul.mubr.bf16.vlgmr.msra.gmra.mrb[68].mxu0 %v4169_v63  ;;  %9218 = vmatmul.mubr.bf16.vlgmr.msra.gmra.mrb[20].mxu1 %v4311_v51  ;;  %v14440_v49 = vsel %vm4158_vm0, %v4304_v13, %v4303_v16  ;;  %v4322_v63 = vrot.slane %v14097_v40, 7  ;;  %v4340_v51 = vrot.slane %v14042_v26, 4  ;;  %v12630_v13 = vld [vmem:[%s16002_s5 + $0x890] sm:$0xff]  }
 0x414   :  { %10895 = vmatpush3.bf16.msra.mxu0 %v12621_v5  ;;  %8697 = vmatprep.mubr.bf16.mxu0 %v4184_v24  ;;  %v4345_v5 = vrot.slane %v14042_v26, 5  ;;  %v4341_v24 = vrot.slane %v14097_v40, 3  ;;  %v12631_v40 = vld [vmem:[%s16002_s5 + $0x158] sm:$0xff]  }
 0x415   :  { %11225 = vmatpush3.bf16.msra.mxu1 %v12622_v31  ;;  %9297 = vmatprep.mubr.bf16.mxu1 %v4338_v19  ;;  %v12628_v31 = vld [vmem:[%s16002_s5 + $0x8d0] sm:$0xff]   ;;  %v14464_v11 = vsel %vm4158_vm0, %v4322_v63, %v14042_v26  ;;  %v4362_v26 = vrot.slane %v14099_v6, 7  ;;  %v12633_v63 = vld [vmem:[%s16002_s5 + $0x118] sm:$0xff]  }
 0x416   :  { %10896 = vmatprep.subr.bf16.mxu0 %v12623_v15  ;;  %11226 = vmatprep.subr.bf16.mxu1 %v12624_v46  ;;  %v14469_v16 = vsel %vm4158_vm0, %v4346_v39, %v4345_v5  ;;  %v4366_v15 = vrot.slane %v14049_v45, 1  ;;  %v12629_v46 = vld [vmem:[%s16002_s5 + $0x110] sm:$0xff]   ;;  %v14479_v19 = vsel %vm4158_vm0, %v4341_v24, %v4340_v51  ;;  %v4381_v5 = vrot.slane %v14099_v6, 3 }
 0x417   :  { %v4408_v39 = vrot.slane %v14036_v57, 1 }
 0x418   :  { %10897 = vmatpush3.bf16.msra.mxu0 %v12625_v52  ;;  %v14490_v44 = vsel %vm4158_vm0, %v14099_v6, %v4366_v15  ;;  %v4385_v52 = vrot.slane %v14049_v45, 5  ;;  %v12635_v6 = vld [vmem:[%s16002_s5 + $0x160] sm:$0xff]  }
 0x419   :  { %11227 = vmatpush3.bf16.msra.mxu1 %v12626_v14  ;;  %10898 = vmatprep.subr.bf16.mxu0 %v12627_v55  ;;  %v14499_v14 = vsel %vm4158_vm0, %v4362_v26, %v14049_v45  ;;  %v4380_v55 = vrot.slane %v14049_v45, 4  ;;  %v14515_v15 = vsel %vm4158_vm0, %v14197_v34, %v4408_v39  ;;  %v4404_v45 = vrot.slane %v14197_v34, 7  ;;  %v12639_v39 = vld [vmem:[%s16002_s5 + $0x168] sm:$0xff]  }
 0x41a   :  { %11228 = vmatprep.subr.bf16.mxu1 %v12628_v31  ;;  %v14505_v51 = vsel %vm4158_vm0, %v4386_v36, %v4385_v52  ;;  %v12634_v31 = vld [vmem:[%s16002_s5 + $0x898] sm:$0xff]   ;;  %v4427_v26 = vrot.slane %v14036_v57, 5  ;;  %v4428_v52 = vrot.slane %v14197_v34, 4  ;;  %v12637_v36 = vld [vmem:[%s16002_s5 + $0x120] sm:$0xff]  }
 0x41b   :  { %v14511_v24 = vsel %vm4158_vm0, %v4381_v5, %v4380_v55  ;;  %v4422_v5 = vrot.slane %v14036_v57, 4 }
 0x41c   :  { %10899 = vmatpush3.bf16.msra.mxu0 %v12629_v46  ;;  %v12636_v46 = vld [vmem:[%s16002_s5 + $0x8e0] sm:$0xff]   ;;  %v14537_v55 = vsel %vm4158_vm0, %v4428_v52, %v4427_v26  ;;  %v4444_v26 = vrot.slane %v14245_v28, 7  ;;  %v4468_v52 = vrot.slane %v14245_v28, 4 }
 0x41d   :  { %11229 = vmatpush3.bf16.msra.mxu1 %v12630_v13  ;;  %10900 = vmatprep.subr.bf16.mxu0 %v12631_v40  ;;  %v14531_v13 = vsel %vm4158_vm0, %v4404_v45, %v14036_v57  ;;  %v12638_v40 = vld [vmem:[%s16002_s5 + $0x8a0] sm:$0xff]   ;;  %v12640_v45 = vld [vmem:[%s16002_s5 + $0x8e8] sm:$0xff]  }
 0x41e   :  { %11230 = vmatprep.subr.bf16.mxu1 %v12632_v23  ;;  %16007 = vst [vmem:[#allocation4_spill] sm:$0xff] %v14531_v13  ;;  %v4423_v23 = vrot.slane %v14197_v34, 3  ;;  %v4448_v13 = vrot.slane %v14228_v30, 1  ;;  %v12641_v57 = vld [vmem:[%s16002_s5 + $0x128] sm:$0xff]  }
 0x420   :  { %10901 = vmatpush3.bf16.msra.mxu0 %v12633_v63  ;;  %v14553_v34 = vsel %vm4158_vm0, %v4423_v23, %v4422_v5  ;;  %v12642_v63 = vld [vmem:[%s16002_s5 + $0x8a8] sm:$0xff]   ;;  %v12643_v5 = vld [vmem:[%s16002_s5 + $0x170] sm:$0xff]   ;;  %v4462_v23 = vrot.slane %v14228_v30, 4 }
 0x421   :  { %11231 = vmatpush3.bf16.msra.mxu1 %v12634_v31  ;;  %10902 = vmatprep.subr.bf16.mxu0 %v12635_v6  ;;  %v14560_v31 = vsel %vm4158_vm0, %v14245_v28, %v4448_v13  ;;  %v14564_v6 = vsel %vm4158_vm0, %v4444_v26, %v14228_v30  ;;  %v12644_v13 = vld [vmem:[%s16002_s5 + $0x8f0] sm:$0xff]   ;;  %v4463_v26 = vrot.slane %v14245_v28, 3  ;;  %v12648_v28 = vld [vmem:[%s16002_s5 + $0x8f8] sm:$0xff]  }
 0x422   :  { %11232 = vmatprep.subr.bf16.mxu1 %v12636_v46  ;;  %16008 = vst [vmem:[#allocation5_spill] sm:$0xff] %v14564_v6  ;;  %v4467_v46 = vrot.slane %v14228_v30, 5  ;;  %v12646_v6 = vld [vmem:[%s16002_s5 + $0x8b0] sm:$0xff]   ;;  %v12647_v30 = vld [vmem:[%s16002_s5 + $0x178] sm:$0xff]  }
 0x424   :  { %10903 = vmatpush3.bf16.msra.mxu0 %v12637_v36  ;;  %v12645_v36 = vld [vmem:[%s16002_s5 + $0x130] sm:$0xff]  }
 0x425   :  { %11233 = vmatpush3.bf16.msra.mxu1 %v12638_v40  ;;  %10904 = vmatprep.subr.bf16.mxu0 %v12639_v39  ;;  %v14580_v40 = vsel %vm4158_vm0, %v4468_v52, %v4467_v46  ;;  %v14583_v39 = vsel %vm4158_vm0, %v4463_v26, %v4462_v23  ;;  %v12652_v46 = vld [vmem:[%s16002_s5 + $0x9c0] sm:$0xff]   ;;  %v4333_v23 = vpack.c.b16 %v14159_v38, %v14159_v38  ;;  %v12658_v38 = vld [vmem:[%s16002_s5 + $0x988] sm:$0xff]  }
 0x426   :  { %11234 = vmatprep.subr.bf16.mxu1 %v12640_v45  ;;  %v12649_v45 = vld [vmem:[%s16002_s5 + $0x138] sm:$0xff]   ;;  %v12653_v52 = vld [vmem:[%s16002_s5 + $0x180] sm:$0xff]   ;;  %v4194_v26 = vpack.c.b16 %v14164_v41, %v14164_v41  ;;  %v12659_v41 = vld [vmem:[%s16002_s5 + $0x1d0] sm:$0xff]  }
 0x428   :  { %10905 = vmatpush3.bf16.msra.mxu0 %v12641_v57  ;;  %v12650_v57 = vld [vmem:[%s16002_s5 + $0x8b8] sm:$0xff]  }
 0x429   :  { %11235 = vmatpush3.bf16.msra.mxu1 %v12642_v63  ;;  %10906 = vmatprep.subr.bf16.mxu0 %v12643_v5  ;;  %v12651_v63 = vld [vmem:[%s16002_s5 + $0x1c0] sm:$0xff]  }
 0x42a   :  { %11236 = vmatprep.subr.bf16.mxu1 %v12644_v13  ;;  %v12654_v5 = vld [vmem:[%s16002_s5 + $0x980] sm:$0xff]   ;;  %v4179_v13 = vpack.c.b16 %v14138_v62, %v14138_v62  ;;  %v12657_v62 = vld [vmem:[%s16002_s5 + $0x188] sm:$0xff]  }
 0x42c   :  { %10907 = vmatpush3.bf16.msra.mxu0 %v12645_v36  ;;  %v12656_v36 = vld [vmem:[%s16002_s5 + $0x9c8] sm:$0xff]  }
 0x42d   :  { %11237 = vmatpush3.bf16.msra.mxu1 %v12646_v6  ;;  %10908 = vmatprep.subr.bf16.mxu0 %v12647_v30  ;;  %v12655_v6 = vld [vmem:[%s16002_s5 + $0x1c8] sm:$0xff]   ;;  %v4358_v30 = vpack.c.b16 %v14175_v27, %v14175_v27  ;;  %v12660_v27 = vld [vmem:[%s16002_s5 + $0x9d0] sm:$0xff]  }
 0x42e   :  { %11238 = vmatprep.subr.bf16.mxu1 %v12648_v28  ;;  %v12661_v28 = vld [vmem:[%s16002_s5 + $0x190] sm:$0xff]  }
 0x430   :  { %10909 = vmatpush3.bf16.msra.mxu0 %v12649_v45  ;;  %v12662_v45 = vld [vmem:[%s16002_s5 + $0x990] sm:$0xff]  }
 0x431   :  { %11239 = vmatpush3.bf16.msra.mxu1 %v12650_v57  ;;  %10916 = vmatprep.subr.bf16.mxu0 %v12651_v63  ;;  %v12663_v57 = vld [vmem:[%s16002_s5 + $0x1d8] sm:$0xff]  }
 0x432   :  { %11268 = vmatprep.subr.bf16.mxu1 %v12652_v46  ;;  %v12664_v63 = vld [vmem:[%s16002_s5 + $0x9d8] sm:$0xff]  }
 0x433   :  { %8698 = vmatmul.mubr.bf16.vlgmr.msra.gmra.mrb[72].mxu0 %v4179_v13  ;;  %v12665_v46 = vld [vmem:[%s16002_s5 + $0x198] sm:$0xff]   ;;  %v12669_v13 = vld [vmem:[%s16002_s5 + $0x1a0] sm:$0xff]  }
 0x434   :  { %9298 = vmatmul.mubr.bf16.vlgmr.msra.gmra.mrb[24].mxu1 %v4333_v23  ;;  %10917 = vmatpush3.bf16.msra.mxu0 %v12653_v52  ;;  %v12666_v52 = vld [vmem:[%s16002_s5 + $0x998] sm:$0xff]   ;;  %v12670_v23 = vld [vmem:[%s16002_s5 + $0x9a0] sm:$0xff]  }
 0x435   :  { %8737 = vmatprep.mubr.bf16.mxu0 %v4194_v26  ;;  %11269 = vmatpush3.bf16.msra.mxu1 %v12654_v5  ;;  %v12667_v5 = vld [vmem:[%s16002_s5 + $0x1e0] sm:$0xff]   ;;  %v12671_v26 = vld [vmem:[%s16002_s5 + $0x1e8] sm:$0xff]  }
 0x436   :  { %9377 = vmatprep.mubr.bf16.mxu1 %v4358_v30  ;;  %10918 = vmatprep.subr.bf16.mxu0 %v12655_v6  ;;  %v12668_v6 = vld [vmem:[%s16002_s5 + $0x9e0] sm:$0xff]   ;;  %v12673_v30 = vld [vmem:[%s16002_s5 + $0x1a8] sm:$0xff]  }
 0x437   :  { %11270 = vmatprep.subr.bf16.mxu1 %v12656_v36  ;;  %v12672_v36 = vld [vmem:[%s16002_s5 + $0x9e8] sm:$0xff]  }
 0x438   :  { %10919 = vmatpush3.bf16.msra.mxu0 %v12657_v62  ;;  %v12674_v62 = vld [vmem:[%s16002_s5 + $0x9a8] sm:$0xff]  }
 0x439   :  { %11271 = vmatpush3.bf16.msra.mxu1 %v12658_v38  ;;  %10920 = vmatprep.subr.bf16.mxu0 %v12659_v41  ;;  %v12675_v38 = vld [vmem:[%s16002_s5 + $0x1f0] sm:$0xff]  }
 0x43a   :  { %11272 = vmatprep.subr.bf16.mxu1 %v12660_v27  ;;  %v12676_v41 = vld [vmem:[%s16002_s5 + $0x9f0] sm:$0xff]  }
 0x43b   :  { %v12677_v27 = vld [vmem:[%s16002_s5 + $0x1b0] sm:$0xff]  }
 0x43c   :  { %10921 = vmatpush3.bf16.msra.mxu0 %v12661_v28  ;;  %v12678_v28 = vld [vmem:[%s16002_s5 + $0x9b0] sm:$0xff]  }
 0x43d   :  { %11273 = vmatpush3.bf16.msra.mxu1 %v12662_v45  ;;  %10922 = vmatprep.subr.bf16.mxu0 %v12663_v57  ;;  %v12679_v45 = vld [vmem:[%s16002_s5 + $0x1f8] sm:$0xff]  }
 0x43e   :  { %11274 = vmatprep.subr.bf16.mxu1 %v12664_v63  ;;  %v12680_v57 = vld [vmem:[%s16002_s5 + $0x9f8] sm:$0xff]  }
 0x43f   :  { %v12681_v63 = vld [vmem:[%s16002_s5 + $0x1b8] sm:$0xff]  }
 0x440   :  { %10923 = vmatpush3.bf16.msra.mxu0 %v12665_v46  ;;  %v12682_v46 = vld [vmem:[%s16002_s5 + $0x9b8] sm:$0xff]  }
 0x441   :  { %11275 = vmatpush3.bf16.msra.mxu1 %v12666_v52  ;;  %10924 = vmatprep.subr.bf16.mxu0 %v12667_v5  ;;  %v12683_v52 = vld [vmem:[%s16002_s5 + $0x240] sm:$0xff]  }
 0x442   :  { %11276 = vmatprep.subr.bf16.mxu1 %v12668_v6  ;;  %v12684_v5 = vld [vmem:[%s16002_s5 + $0xac0] sm:$0xff]  }
 0x443   :  { %v12685_v6 = vld [vmem:[%s16002_s5 + $0x200] sm:$0xff]  }
 0x444   :  { %10925 = vmatpush3.bf16.msra.mxu0 %v12669_v13  ;;  %v12686_v13 = vld [vmem:[%s16002_s5 + $0xa80] sm:$0xff]  }
 0x445   :  { %11277 = vmatpush3.bf16.msra.mxu1 %v12670_v23  ;;  %10926 = vmatprep.subr.bf16.mxu0 %v12671_v26  ;;  %v12687_v23 = vld [vmem:[%s16002_s5 + $0x248] sm:$0xff]   ;;  %v4189_v26 = vpack.c.b16 %v14180_v3, %v14180_v3 }
 0x446   :  { %11278 = vmatprep.subr.bf16.mxu1 %v12672_v36  ;;  %v4353_v36 = vpack.c.b16 %v14188_v56, %v14188_v56  ;;  %v12689_v3 = vld [vmem:[%s16002_s5 + $0x208] sm:$0xff]  }
 0x447   :  { %v12690_v56 = vld [vmem:[%s16002_s5 + $0xa88] sm:$0xff]  }
 0x448   :  { %10927 = vmatpush3.bf16.msra.mxu0 %v12673_v30  ;;  %v4204_v30 = vpack.c.b16 %v14194_v60, %v14194_v60  ;;  %v12691_v60 = vld [vmem:[%s16002_s5 + $0x250] sm:$0xff]  }
 0x449   :  { %11279 = vmatpush3.bf16.msra.mxu1 %v12674_v62  ;;  %10928 = vmatprep.subr.bf16.mxu0 %v12675_v38  ;;  %v12688_v62 = vld [vmem:[%s16002_s5 + $0xac8] sm:$0xff]   ;;  %v4378_v38 = vpack.c.b16 %v14200_v4, %v14200_v4  ;;  %v12692_v4 = vld [vmem:[%s16002_s5 + $0xad0] sm:$0xff]  }
 0x44a   :  { %11280 = vmatprep.subr.bf16.mxu1 %v12676_v41  ;;  %v12693_v41 = vld [vmem:[%s16002_s5 + $0x210] sm:$0xff]  }
 0x44c   :  { %10929 = vmatpush3.bf16.msra.mxu0 %v12677_v27  ;;  %v12694_v27 = vld [vmem:[%s16002_s5 + $0xa90] sm:$0xff]  }
 0x44d   :  { %11281 = vmatpush3.bf16.msra.mxu1 %v12678_v28  ;;  %10930 = vmatprep.subr.bf16.mxu0 %v12679_v45  ;;  %v12695_v28 = vld [vmem:[%s16002_s5 + $0x258] sm:$0xff]  }
 0x44e   :  { %11282 = vmatprep.subr.bf16.mxu1 %v12680_v57  ;;  %v12696_v45 = vld [vmem:[%s16002_s5 + $0xad8] sm:$0xff]  }
 0x44f   :  { %v12697_v57 = vld [vmem:[%s16002_s5 + $0x218] sm:$0xff]  }
 0x450   :  { %10931 = vmatpush3.bf16.msra.mxu0 %v12681_v63  ;;  %v12698_v63 = vld [vmem:[%s16002_s5 + $0xa98] sm:$0xff]  }
 0x451   :  { %11283 = vmatpush3.bf16.msra.mxu1 %v12682_v46  ;;  %10938 = vmatprep.subr.bf16.mxu0 %v12683_v52  ;;  %v12699_v46 = vld [vmem:[%s16002_s5 + $0x260] sm:$0xff]  }
 0x452   :  { %11312 = vmatprep.subr.bf16.mxu1 %v12684_v5  ;;  %v12700_v52 = vld [vmem:[%s16002_s5 + $0xae0] sm:$0xff]  }
 0x453   :  { %8738 = vmatmul.mubr.bf16.vlgmr.msra.gmra.mrb[76].mxu0 %v4189_v26  ;;  %v12701_v5 = vld [vmem:[%s16002_s5 + $0x220] sm:$0xff]   ;;  %v12705_v26 = vld [vmem:[%s16002_s5 + $0x228] sm:$0xff]  }
 0x454   :  { %9378 = vmatmul.mubr.bf16.vlgmr.msra.gmra.mrb[28].mxu1 %v4353_v36  ;;  %10939 = vmatpush3.bf16.msra.mxu0 %v12685_v6  ;;  %v12702_v6 = vld [vmem:[%s16002_s5 + $0xaa0] sm:$0xff]   ;;  %v12706_v36 = vld [vmem:[%s16002_s5 + $0xaa8] sm:$0xff]  }
 0x455   :  { %8777 = vmatprep.mubr.bf16.mxu0 %v4204_v30  ;;  %11313 = vmatpush3.bf16.msra.mxu1 %v12686_v13  ;;  %v12703_v13 = vld [vmem:[%s16002_s5 + $0x268] sm:$0xff]   ;;  %v12707_v30 = vld [vmem:[%s16002_s5 + $0x270] sm:$0xff]  }
 0x456   :  { %9457 = vmatprep.mubr.bf16.mxu1 %v4378_v38  ;;  %10940 = vmatprep.subr.bf16.mxu0 %v12687_v23  ;;  %v12704_v23 = vld [vmem:[%s16002_s5 + $0xae8] sm:$0xff]   ;;  %v12709_v38 = vld [vmem:[%s16002_s5 + $0x230] sm:$0xff]  }
 0x457   :  { %11314 = vmatprep.subr.bf16.mxu1 %v12688_v62  ;;  %v12708_v62 = vld [vmem:[%s16002_s5 + $0xaf0] sm:$0xff]  }
 0x458   :  { %10941 = vmatpush3.bf16.msra.mxu0 %v12689_v3  ;;  %v12710_v3 = vld [vmem:[%s16002_s5 + $0xab0] sm:$0xff]  }
 0x459   :  { %11315 = vmatpush3.bf16.msra.mxu1 %v12690_v56  ;;  %10942 = vmatprep.subr.bf16.mxu0 %v12691_v60  ;;  %v12711_v56 = vld [vmem:[%s16002_s5 + $0x278] sm:$0xff]  }
 0x45a   :  { %11316 = vmatprep.subr.bf16.mxu1 %v12692_v4  ;;  %v12712_v60 = vld [vmem:[%s16002_s5 + $0xaf8] sm:$0xff]  }
 0x45b   :  { %v12713_v4 = vld [vmem:[%s16002_s5 + $0x238] sm:$0xff]  }
 0x45c   :  { %10943 = vmatpush3.bf16.msra.mxu0 %v12693_v41  ;;  %v12714_v41 = vld [vmem:[%s16002_s5 + $0xab8] sm:$0xff]  }
 0x45d   :  { %11317 = vmatpush3.bf16.msra.mxu1 %v12694_v27  ;;  %10944 = vmatprep.subr.bf16.mxu0 %v12695_v28  ;;  %v12715_v27 = vld [vmem:[%s16002_s5 + $0x2c0] sm:$0xff]  }
 0x45e   :  { %11318 = vmatprep.subr.bf16.mxu1 %v12696_v45  ;;  %v12716_v28 = vld [vmem:[%s16002_s5 + $0xbc0] sm:$0xff]  }
 0x45f   :  { %v12717_v45 = vld [vmem:[%s16002_s5 + $0x280] sm:$0xff]  }
 0x460   :  { %10945 = vmatpush3.bf16.msra.mxu0 %v12697_v57  ;;  %v4200_v57 = vpack.c.b16 %v14222_v20, %v14222_v20  ;;  %v12720_v20 = vld [vmem:[%s16002_s5 + $0xbc8] sm:$0xff]  }
 0x461   :  { %11319 = vmatpush3.bf16.msra.mxu1 %v12698_v63  ;;  %10946 = vmatprep.subr.bf16.mxu0 %v12699_v46  ;;  %v12718_v63 = vld [vmem:[%s16002_s5 + $0xb80] sm:$0xff]   ;;  %v4373_v46 = vpack.c.b16 %v14231_v8, %v14231_v8  ;;  %v12721_v8 = vld [vmem:[%s16002_s5 + $0x288] sm:$0xff]  }
 0x462   :  { %11320 = vmatprep.subr.bf16.mxu1 %v12700_v52  ;;  %v12719_v52 = vld [vmem:[%s16002_s5 + $0x2c8] sm:$0xff]  }
 0x464   :  { %10947 = vmatpush3.bf16.msra.mxu0 %v12701_v5  ;;  %v4214_v5 = vpack.c.b16 %v14236_v17, %v14236_v17  ;;  %v12723_v17 = vld [vmem:[%s16002_s5 + $0x2d0] sm:$0xff]  }
 0x465   :  { %11321 = vmatpush3.bf16.msra.mxu1 %v12702_v6  ;;  %10948 = vmatprep.subr.bf16.mxu0 %v12703_v13  ;;  %v4398_v6 = vpack.c.b16 %v14239_v22, %v14239_v22  ;;  %v12722_v13 = vld [vmem:[%s16002_s5 + $0xb88] sm:$0xff]   ;;  %v12724_v22 = vld [vmem:[%s16002_s5 + $0xbd0] sm:$0xff]  }
 0x466   :  { %11322 = vmatprep.subr.bf16.mxu1 %v12704_v23  ;;  %v12725_v23 = vld [vmem:[%s16002_s5 + $0x290] sm:$0xff]  }
 0x468   :  { %10949 = vmatpush3.bf16.msra.mxu0 %v12705_v26  ;;  %v12726_v26 = vld [vmem:[%s16002_s5 + $0xb90] sm:$0xff]  }
 0x469   :  { %11323 = vmatpush3.bf16.msra.mxu1 %v12706_v36  ;;  %10950 = vmatprep.subr.bf16.mxu0 %v12707_v30  ;;  %v12727_v36 = vld [vmem:[%s16002_s5 + $0x2d8] sm:$0xff]  }
 0x46a   :  { %11324 = vmatprep.subr.bf16.mxu1 %v12708_v62  ;;  %v12728_v30 = vld [vmem:[%s16002_s5 + $0xbd8] sm:$0xff]  }
 0x46b   :  { %v12729_v62 = vld [vmem:[%s16002_s5 + $0x298] sm:$0xff]  }
 0x46c   :  { %10951 = vmatpush3.bf16.msra.mxu0 %v12709_v38  ;;  %v12730_v38 = vld [vmem:[%s16002_s5 + $0xb98] sm:$0xff]  }
 0x46d   :  { %11325 = vmatpush3.bf16.msra.mxu1 %v12710_v3  ;;  %10952 = vmatprep.subr.bf16.mxu0 %v12711_v56  ;;  %v12731_v3 = vld [vmem:[%s16002_s5 + $0x2e0] sm:$0xff]  }
 0x46e   :  { %11326 = vmatprep.subr.bf16.mxu1 %v12712_v60  ;;  %v12732_v56 = vld [vmem:[%s16002_s5 + $0xbe0] sm:$0xff]  }
 0x46f   :  { %v12733_v60 = vld [vmem:[%s16002_s5 + $0x2a0] sm:$0xff]  }
 0x470   :  { %10953 = vmatpush3.bf16.msra.mxu0 %v12713_v4  ;;  %v12734_v4 = vld [vmem:[%s16002_s5 + $0xba0] sm:$0xff]  }
 0x471   :  { %11327 = vmatpush3.bf16.msra.mxu1 %v12714_v41  ;;  %10960 = vmatprep.subr.bf16.mxu0 %v12715_v27  ;;  %v12735_v41 = vld [vmem:[%s16002_s5 + $0x2e8] sm:$0xff]  }
 0x472   :  { %11356 = vmatprep.subr.bf16.mxu1 %v12716_v28  ;;  %v12736_v27 = vld [vmem:[%s16002_s5 + $0xbe8] sm:$0xff]  }
 0x473   :  { %8778 = vmatmul.mubr.bf16.vlgmr.msra.gmra.mrb[80].mxu0 %v4200_v57  ;;  %v12737_v28 = vld [vmem:[%s16002_s5 + $0x2a8] sm:$0xff]   ;;  %v12739_v57 = vld [vmem:[%s16002_s5 + $0x2f0] sm:$0xff]  }
 0x474   :  { %9458 = vmatmul.mubr.bf16.vlgmr.msra.gmra.mrb[32].mxu1 %v4373_v46  ;;  %10961 = vmatpush3.bf16.msra.mxu0 %v12717_v45  ;;  %v12738_v45 = vld [vmem:[%s16002_s5 + $0xba8] sm:$0xff]   ;;  %v12741_v46 = vld [vmem:[%s16002_s5 + $0x2b0] sm:$0xff]  }
 0x475   :  { %8817 = vmatprep.mubr.bf16.mxu0 %v4214_v5  ;;  %11357 = vmatpush3.bf16.msra.mxu1 %v12718_v63  ;;  %v12740_v63 = vld [vmem:[%s16002_s5 + $0xbf0] sm:$0xff]   ;;  %v12743_v5 = vld [vmem:[%s16002_s5 + $0x2f8] sm:$0xff]  }
 0x476   :  { %9537 = vmatprep.mubr.bf16.mxu1 %v4398_v6  ;;  %10962 = vmatprep.subr.bf16.mxu0 %v12719_v52  ;;  %v12742_v52 = vld [vmem:[%s16002_s5 + $0xbb0] sm:$0xff]   ;;  %v12745_v6 = vld [vmem:[%s16002_s5 + $0x2b8] sm:$0xff]  }
 0x477   :  { %11358 = vmatprep.subr.bf16.mxu1 %v12720_v20  ;;  %v12744_v20 = vld [vmem:[%s16002_s5 + $0xbf8] sm:$0xff]  }
 0x478   :  { %10963 = vmatpush3.bf16.msra.mxu0 %v12721_v8  ;;  %v12746_v8 = vld [vmem:[%s16002_s5 + $0xbb8] sm:$0xff]  }
 0x479   :  { %11359 = vmatpush3.bf16.msra.mxu1 %v12722_v13  ;;  %10964 = vmatprep.subr.bf16.mxu0 %v12723_v17  ;;  %v12747_v13 = vld [vmem:[%s16002_s5 + $0x340] sm:$0xff]  }
 0x47a   :  { %11360 = vmatprep.subr.bf16.mxu1 %v12724_v22  ;;  %v12748_v17 = vld [vmem:[%s16002_s5 + $0xcc0] sm:$0xff]  }
 0x47b   :  { %v12749_v22 = vld [vmem:[%s16002_s5 + $0x300] sm:$0xff]  }
 0x47c   :  { %10965 = vmatpush3.bf16.msra.mxu0 %v12725_v23  ;;  %v4209_v23 = vpack.c.b16 %v14258_v47, %v14258_v47  ;;  %v12752_v47 = vld [vmem:[%s16002_s5 + $0xcc8] sm:$0xff]  }
 0x47d   :  { %11361 = vmatpush3.bf16.msra.mxu1 %v12726_v26  ;;  %10966 = vmatprep.subr.bf16.mxu0 %v12727_v36  ;;  %v12750_v26 = vld [vmem:[%s16002_s5 + $0xc80] sm:$0xff]   ;;  %v4393_v36 = vpack.c.b16 %v14261_v32, %v14261_v32  ;;  %v12753_v32 = vld [vmem:[%s16002_s5 + $0x308] sm:$0xff]  }
 0x47e   :  { %11362 = vmatprep.subr.bf16.mxu1 %v12728_v30  ;;  %v12751_v30 = vld [vmem:[%s16002_s5 + $0x348] sm:$0xff]  }
 0x480   :  { %10967 = vmatpush3.bf16.msra.mxu0 %v12729_v62  ;;  %v4224_v62 = vpack.c.b16 %v14266_v33, %v14266_v33  ;;  %v12755_v33 = vld [vmem:[%s16002_s5 + $0x350] sm:$0xff]  }
 0x481   :  { %11363 = vmatpush3.bf16.msra.mxu1 %v12730_v38  ;;  %10968 = vmatprep.subr.bf16.mxu0 %v12731_v3  ;;  %v4420_v38 = vpack.c.b16 %v14278_v7, %v14278_v7  ;;  %v12754_v3 = vld [vmem:[%s16002_s5 + $0xc88] sm:$0xff]   ;;  %v12756_v7 = vld [vmem:[%s16002_s5 + $0xcd0] sm:$0xff]  }
 0x482   :  { %11364 = vmatprep.subr.bf16.mxu1 %v12732_v56  ;;  %v12757_v56 = vld [vmem:[%s16002_s5 + $0x310] sm:$0xff]  }
 0x484   :  { %10969 = vmatpush3.bf16.msra.mxu0 %v12733_v60  ;;  %v12758_v60 = vld [vmem:[%s16002_s5 + $0xc90] sm:$0xff]  }
 0x485   :  { %11365 = vmatpush3.bf16.msra.mxu1 %v12734_v4  ;;  %10970 = vmatprep.subr.bf16.mxu0 %v12735_v41  ;;  %v12759_v4 = vld [vmem:[%s16002_s5 + $0x358] sm:$0xff]  }
 0x486   :  { %11366 = vmatprep.subr.bf16.mxu1 %v12736_v27  ;;  %v12760_v41 = vld [vmem:[%s16002_s5 + $0xcd8] sm:$0xff]  }
 0x487   :  { %v12761_v27 = vld [vmem:[%s16002_s5 + $0x318] sm:$0xff]  }
 0x488   :  { %10971 = vmatpush3.bf16.msra.mxu0 %v12737_v28  ;;  %v12762_v28 = vld [vmem:[%s16002_s5 + $0xc98] sm:$0xff]  }
 0x489   :  { %11367 = vmatpush3.bf16.msra.mxu1 %v12738_v45  ;;  %10972 = vmatprep.subr.bf16.mxu0 %v12739_v57  ;;  %v12763_v45 = vld [vmem:[%s16002_s5 + $0x360] sm:$0xff]  }
 0x48a   :  { %11368 = vmatprep.subr.bf16.mxu1 %v12740_v63  ;;  %v12764_v57 = vld [vmem:[%s16002_s5 + $0xce0] sm:$0xff]  }
 0x48b   :  { %v12765_v63 = vld [vmem:[%s16002_s5 + $0x320] sm:$0xff]  }
 0x48c   :  { %10973 = vmatpush3.bf16.msra.mxu0 %v12741_v46  ;;  %v12766_v46 = vld [vmem:[%s16002_s5 + $0xca0] sm:$0xff]  }
 0x48d   :  { %11369 = vmatpush3.bf16.msra.mxu1 %v12742_v52  ;;  %10974 = vmatprep.subr.bf16.mxu0 %v12743_v5  ;;  %v12767_v52 = vld [vmem:[%s16002_s5 + $0x368] sm:$0xff]  }
 0x48e   :  { %11370 = vmatprep.subr.bf16.mxu1 %v12744_v20  ;;  %v12768_v5 = vld [vmem:[%s16002_s5 + $0xce8] sm:$0xff]  }
 0x48f   :  { %v12769_v20 = vld [vmem:[%s16002_s5 + $0x328] sm:$0xff]  }
 0x490   :  { %10975 = vmatpush3.bf16.msra.mxu0 %v12745_v6  ;;  %v12770_v6 = vld [vmem:[%s16002_s5 + $0xca8] sm:$0xff]  }
 0x491   :  { %11371 = vmatpush3.bf16.msra.mxu1 %v12746_v8  ;;  %10982 = vmatprep.subr.bf16.mxu0 %v12747_v13  ;;  %v12771_v8 = vld [vmem:[%s16002_s5 + $0x370] sm:$0xff]  }
 0x492   :  { %11400 = vmatprep.subr.bf16.mxu1 %v12748_v17  ;;  %v12772_v13 = vld [vmem:[%s16002_s5 + $0xcf0] sm:$0xff]  }
 0x493   :  { %8818 = vmatmul.mubr.bf16.vlgmr.msra.gmra.mrb[84].mxu0 %v4209_v23  ;;  %v12773_v17 = vld [vmem:[%s16002_s5 + $0x330] sm:$0xff]   ;;  %v12775_v23 = vld [vmem:[%s16002_s5 + $0x378] sm:$0xff]  }
 0x494   :  { %9538 = vmatmul.mubr.bf16.vlgmr.msra.gmra.mrb[36].mxu1 %v4393_v36  ;;  %10983 = vmatpush3.bf16.msra.mxu0 %v12749_v22  ;;  %v12774_v22 = vld [vmem:[%s16002_s5 + $0xcb0] sm:$0xff]   ;;  %v12777_v36 = vld [vmem:[%s16002_s5 + $0x338] sm:$0xff]  }
 0x495   :  { %8857 = vmatprep.mubr.bf16.mxu0 %v4224_v62  ;;  %11401 = vmatpush3.bf16.msra.mxu1 %v12750_v26  ;;  %v12776_v26 = vld [vmem:[%s16002_s5 + $0xcf8] sm:$0xff]   ;;  %v12779_v62 = vld [vmem:[%s16002_s5 + $0x3c0] sm:$0xff]  }
 0x496   :  { %9617 = vmatprep.mubr.bf16.mxu1 %v4420_v38  ;;  %10984 = vmatprep.subr.bf16.mxu0 %v12751_v30  ;;  %v12778_v30 = vld [vmem:[%s16002_s5 + $0xcb8] sm:$0xff]   ;;  %v12781_v38 = vld [vmem:[%s16002_s5 + $0x380] sm:$0xff]  }
 0x497   :  { %11402 = vmatprep.subr.bf16.mxu1 %v12752_v47  ;;  %v12780_v47 = vld [vmem:[%s16002_s5 + $0xdc0] sm:$0xff]  }
 0x498   :  { %10985 = vmatpush3.bf16.msra.mxu0 %v12753_v32  ;;  %v4219_v32 = vpack.c.b16 %v14285_v48, %v14285_v48  ;;  %v12784_v48 = vld [vmem:[%s16002_s5 + $0xdc8] sm:$0xff]  }
 0x499   :  { %11403 = vmatpush3.bf16.msra.mxu1 %v12754_v3  ;;  %10986 = vmatprep.subr.bf16.mxu0 %v12755_v33  ;;  %v12782_v3 = vld [vmem:[%s16002_s5 + $0xd80] sm:$0xff]   ;;  %v4415_v33 = vpack.c.b16 %v14302_v42, %v14302_v42  ;;  %v12785_v42 = vld [vmem:[%s16002_s5 + $0x388] sm:$0xff]  }
 0x49a   :  { %11404 = vmatprep.subr.bf16.mxu1 %v12756_v7  ;;  %v12783_v7 = vld [vmem:[%s16002_s5 + $0x3c8] sm:$0xff]  }
 0x49c   :  { %10987 = vmatpush3.bf16.msra.mxu0 %v12757_v56  ;;  %v4234_v56 = vpack.c.b16 %v14307_v21, %v14307_v21  ;;  %v12787_v21 = vld [vmem:[%s16002_s5 + $0x3d0] sm:$0xff]  }
 0x49d   :  { %11405 = vmatpush3.bf16.msra.mxu1 %v12758_v60  ;;  %10988 = vmatprep.subr.bf16.mxu0 %v12759_v4  ;;  %v4440_v60 = vpack.c.b16 %v14318_v50, %v14318_v50  ;;  %v12786_v4 = vld [vmem:[%s16002_s5 + $0xd88] sm:$0xff]   ;;  %v12788_v50 = vld [vmem:[%s16002_s5 + $0xdd0] sm:$0xff]  }
 0x49e   :  { %11406 = vmatprep.subr.bf16.mxu1 %v12760_v41  ;;  %v12789_v41 = vld [vmem:[%s16002_s5 + $0x390] sm:$0xff]  }
 0x4a0   :  { %10989 = vmatpush3.bf16.msra.mxu0 %v12761_v27  ;;  %v12790_v27 = vld [vmem:[%s16002_s5 + $0xd90] sm:$0xff]  }
 0x4a1   :  { %11407 = vmatpush3.bf16.msra.mxu1 %v12762_v28  ;;  %10990 = vmatprep.subr.bf16.mxu0 %v12763_v45  ;;  %v12791_v28 = vld [vmem:[%s16002_s5 + $0x3d8] sm:$0xff]  }
 0x4a2   :  { %11408 = vmatprep.subr.bf16.mxu1 %v12764_v57  ;;  %v12792_v45 = vld [vmem:[%s16002_s5 + $0xdd8] sm:$0xff]  }
 0x4a3   :  { %v12793_v57 = vld [vmem:[%s16002_s5 + $0x398] sm:$0xff]  }
 0x4a4   :  { %10991 = vmatpush3.bf16.msra.mxu0 %v12765_v63  ;;  %v12794_v63 = vld [vmem:[%s16002_s5 + $0xd98] sm:$0xff]  }
 0x4a5   :  { %11409 = vmatpush3.bf16.msra.mxu1 %v12766_v46  ;;  %10992 = vmatprep.subr.bf16.mxu0 %v12767_v52  ;;  %v12795_v46 = vld [vmem:[%s16002_s5 + $0x3e0] sm:$0xff]  }
 0x4a6   :  { %11410 = vmatprep.subr.bf16.mxu1 %v12768_v5  ;;  %v12796_v52 = vld [vmem:[%s16002_s5 + $0xde0] sm:$0xff]  }
 0x4a7   :  { %v12797_v5 = vld [vmem:[%s16002_s5 + $0x3a0] sm:$0xff]  }
 0x4a8   :  { %10993 = vmatpush3.bf16.msra.mxu0 %v12769_v20  ;;  %v12798_v20 = vld [vmem:[%s16002_s5 + $0xda0] sm:$0xff]  }
 0x4a9   :  { %11411 = vmatpush3.bf16.msra.mxu1 %v12770_v6  ;;  %10994 = vmatprep.subr.bf16.mxu0 %v12771_v8  ;;  %v12799_v6 = vld [vmem:[%s16002_s5 + $0x3e8] sm:$0xff]  }
 0x4aa   :  { %11412 = vmatprep.subr.bf16.mxu1 %v12772_v13  ;;  %v12800_v8 = vld [vmem:[%s16002_s5 + $0xde8] sm:$0xff]  }
 0x4ab   :  { %v12801_v13 = vld [vmem:[%s16002_s5 + $0x3a8] sm:$0xff]  }
 0x4ac   :  { %10995 = vmatpush3.bf16.msra.mxu0 %v12773_v17  ;;  %v12802_v17 = vld [vmem:[%s16002_s5 + $0xda8] sm:$0xff]  }
 0x4ad   :  { %11413 = vmatpush3.bf16.msra.mxu1 %v12774_v22  ;;  %10996 = vmatprep.subr.bf16.mxu0 %v12775_v23  ;;  %v12803_v22 = vld [vmem:[%s16002_s5 + $0x3f0] sm:$0xff]  }
 0x4ae   :  { %11414 = vmatprep.subr.bf16.mxu1 %v12776_v26 }
 0x4b0   :  { %10997 = vmatpush3.bf16.msra.mxu0 %v12777_v36  ;;  %v12804_v36 = vld [vmem:[%s16002_s5 + $0xdf0] sm:$0xff]  }
 0x4b1   :  { %11415 = vmatpush3.bf16.msra.mxu1 %v12778_v30  ;;  %11004 = vmatprep.subr.bf16.mxu0 %v12779_v62 }
 0x4b2   :  { %11444 = vmatprep.subr.bf16.mxu1 %v12780_v47 }
 0x4b3   :  { %8858 = vmatmul.mubr.bf16.vlgmr.msra.gmra.mrb[88].mxu0 %v4219_v32 }
 0x4b4   :  { %9618 = vmatmul.mubr.bf16.vlgmr.msra.gmra.mrb[40].mxu1 %v4415_v33  ;;  %11005 = vmatpush3.bf16.msra.mxu0 %v12781_v38  ;;  %v12805_v33 = vld [vmem:[%s16002_s5 + $0x3b0] sm:$0xff]  }
 0x4b5   :  { %8897 = vmatprep.mubr.bf16.mxu0 %v4234_v56  ;;  %11445 = vmatpush3.bf16.msra.mxu1 %v12782_v3 }
 0x4b6   :  { %9697 = vmatprep.mubr.bf16.mxu1 %v4440_v60  ;;  %11006 = vmatprep.subr.bf16.mxu0 %v12783_v7  ;;  %v12807_v60 = vld [vmem:[%s16002_s5 + $0x3f8] sm:$0xff]  }
 0x4b7   :  { %11446 = vmatprep.subr.bf16.mxu1 %v12784_v48  ;;  %v12806_v48 = vld [vmem:[%s16002_s5 + $0xdb0] sm:$0xff]  }
 0x4b8   :  { %11007 = vmatpush3.bf16.msra.mxu0 %v12785_v42  ;;  %v12808_v42 = vld [vmem:[%s16002_s5 + $0xdf8] sm:$0xff]  }
 0x4b9   :  { %11447 = vmatpush3.bf16.msra.mxu1 %v12786_v4  ;;  %11008 = vmatprep.subr.bf16.mxu0 %v12787_v21  ;;  %v12809_v4 = vld [vmem:[%s16002_s5 + $0x3b8] sm:$0xff]  }
 0x4ba   :  { %11448 = vmatprep.subr.bf16.mxu1 %v12788_v50  ;;  %v12810_v21 = vld [vmem:[%s16002_s5 + $0xdb8] sm:$0xff]   ;;  %v12811_v50 = vld [vmem:[%s16002_s5 + $0x440] sm:$0xff]  }
 0x4bc   :  { %11009 = vmatpush3.bf16.msra.mxu0 %v12789_v41  ;;  %v12812_v41 = vld [vmem:[%s16002_s5 + $0xec0] sm:$0xff]  }
 0x4bd   :  { %11449 = vmatpush3.bf16.msra.mxu1 %v12790_v27  ;;  %11010 = vmatprep.subr.bf16.mxu0 %v12791_v28  ;;  %v12813_v27 = vld [vmem:[%s16002_s5 + $0x400] sm:$0xff]   ;;  %v4229_v28 = vpack.c.b16 %v14323_v18, %v14323_v18  ;;  %v12816_v18 = vld [vmem:[%s16002_s5 + $0xec8] sm:$0xff]  }
 0x4be   :  { %11450 = vmatprep.subr.bf16.mxu1 %v12792_v45  ;;  %v12814_v45 = vld [vmem:[%s16002_s5 + $0xe80] sm:$0xff]  }
 0x4c0   :  { %11011 = vmatpush3.bf16.msra.mxu0 %v12793_v57  ;;  %v4435_v57 = vpack.c.b16 %v14328_v58, %v14328_v58  ;;  %v12817_v58 = vld [vmem:[%s16002_s5 + $0x408] sm:$0xff]  }
 0x4c1   :  { %11451 = vmatpush3.bf16.msra.mxu1 %v12794_v63  ;;  %11012 = vmatprep.subr.bf16.mxu0 %v12795_v46  ;;  %v12815_v63 = vld [vmem:[%s16002_s5 + $0x448] sm:$0xff]   ;;  %v4246_v46 = vpack.c.b16 %v14311_v9, %v14311_v9  ;;  %v12819_v9 = vld [vmem:[%s16002_s5 + $0x450] sm:$0xff]  }
 0x4c2   :  { %11452 = vmatprep.subr.bf16.mxu1 %v12796_v52  ;;  %v4460_v52 = vpack.c.b16 %v14334_v29, %v14334_v29  ;;  %v12820_v29 = vld [vmem:[%s16002_s5 + $0xed0] sm:$0xff]  }
 0x4c4   :  { %11013 = vmatpush3.bf16.msra.mxu0 %v12797_v5  ;;  %v12818_v5 = vld [vmem:[%s16002_s5 + $0xe88] sm:$0xff]  }
 0x4c5   :  { %11453 = vmatpush3.bf16.msra.mxu1 %v12798_v20  ;;  %11014 = vmatprep.subr.bf16.mxu0 %v12799_v6  ;;  %v12821_v20 = vld [vmem:[%s16002_s5 + $0x410] sm:$0xff]  }
 0x4c6   :  { %v10866_v23 = vpop.f32.mrb[64].mxu0  ;;  %v11152_v26 = vpop.f32.mrb[16].mxu1  ;;  %11454 = vmatprep.subr.bf16.mxu1 %v12800_v8  ;;  %v12822_v6 = vld [vmem:[%s16002_s5 + $0xe90] sm:$0xff]   ;;  %v12823_v8 = vld [vmem:[%s16002_s5 + $0x458] sm:$0xff]  }
 0x4c7   :  { %v10867_v30 = vpop.f32.mrb[65].mxu0  ;;  %v11153_v62 = vpop.f32.mrb[17].mxu1 }
 0x4c8   :  { %v15102_v47 = vadd.f32 %v10867_v30, %v10866_v23  ;;  %11015 = vmatpush3.bf16.msra.mxu0 %v12801_v13  ;;  %v15104_v38 = vadd.f32 %v11153_v62, %v11152_v26  ;;  %v10869_v32 = vpop.f32.mrb[66].mxu0  ;;  %v11155_v3 = vpop.f32.mrb[18].mxu1  ;;  %v12824_v13 = vld [vmem:[%s16002_s5 + $0xed8] sm:$0xff]   ;;  %v12827_v23 = vld [vmem:[%s16002_s5 + $0x460] sm:$0xff]   ;;  %v12831_v62 = vld [vmem:[%s16002_s5 + $0x468] sm:$0xff]  }
 0x4c9   :  { %11455 = vmatpush3.bf16.msra.mxu1 %v12802_v17  ;;  %v10870_v7 = vpop.f32.mrb[67].mxu0  ;;  %v11156_v56 = vpop.f32.mrb[19].mxu1  ;;  %11016 = vmatprep.subr.bf16.mxu0 %v12803_v22  ;;  %v12825_v17 = vld [vmem:[%s16002_s5 + $0x418] sm:$0xff]   ;;  %v12828_v26 = vld [vmem:[%s16002_s5 + $0xee0] sm:$0xff]   ;;  %v12832_v32 = vld [vmem:[%s16002_s5 + $0xee8] sm:$0xff]  }
 0x4ca   :  { %11456 = vmatprep.subr.bf16.mxu1 %v12804_v36  ;;  %v12826_v22 = vld [vmem:[%s16002_s5 + $0xe98] sm:$0xff]   ;;  %v12829_v36 = vld [vmem:[%s16002_s5 + $0x420] sm:$0xff]   ;;  %v12833_v3 = vld [vmem:[%s16002_s5 + $0x428] sm:$0xff]  }
 0x4cb   :  { %v12830_v30 = vld [vmem:[%s16002_s5 + $0xea0] sm:$0xff]   ;;  %v12834_v7 = vld [vmem:[%s16002_s5 + $0xea8] sm:$0xff]   ;;  %v12835_v56 = vld [vmem:[%s16002_s5 + $0x470] sm:$0xff]  }
 0x4cc   :  { %11017 = vmatpush3.bf16.msra.mxu0 %v12805_v33  ;;  %v10041_v33 = vld [vmem:[%s16004_s6] ss:$0 sm:$0xff] }
 0x4cd   :  { %11457 = vmatpush3.bf16.msra.mxu1 %v12806_v48  ;;  %11018 = vmatprep.subr.bf16.mxu0 %v12807_v60 }
 0x4ce   :  { %11458 = vmatprep.subr.bf16.mxu1 %v12808_v42  ;;  %v12836_v42 = vld [vmem:[%s16002_s5 + $0xef0] sm:$0xff]  }
 0x4d0   :  { %11019 = vmatpush3.bf16.msra.mxu0 %v12809_v4 }
 0x4d1   :  { %11459 = vmatpush3.bf16.msra.mxu1 %v12810_v21  ;;  %11026 = vmatprep.subr.bf16.mxu0 %v12811_v50  ;;  %v8620_v50 = vadd.f32 %v15102_v47, %v10041_v33  ;;  %v12839_v47 = vld [vmem:[%s16002_s5 + $0x478] sm:$0xff]  }
 0x4d2   :  { %11488 = vmatprep.subr.bf16.mxu1 %v12812_v41  ;;  %v12857_v33 = vld [vmem:[%s16002_s5 + $0x498] sm:$0xff]  }
 0x4d3   :  { %8898 = vmatmul.mubr.bf16.vlgmr.msra.gmra.mrb[92].mxu0 %v4229_v28 }
 0x4d4   :  { %9698 = vmatmul.mubr.bf16.vlgmr.msra.gmra.mrb[44].mxu1 %v4435_v57  ;;  %11027 = vmatpush3.bf16.msra.mxu0 %v12813_v27  ;;  %v12837_v57 = vld [vmem:[%s16002_s5 + $0x430] sm:$0xff]  }
 0x4d5   :  { %8937 = vmatprep.mubr.bf16.mxu0 %v4246_v46  ;;  %11489 = vmatpush3.bf16.msra.mxu1 %v12814_v45 }
 0x4d6   :  { %9777 = vmatprep.mubr.bf16.mxu1 %v4460_v52  ;;  %11028 = vmatprep.subr.bf16.mxu0 %v12815_v63 }
 0x4d7   :  { %11490 = vmatprep.subr.bf16.mxu1 %v12816_v18  ;;  %v12838_v18 = vld [vmem:[%s16002_s5 + $0xeb0] sm:$0xff]  }
 0x4d8   :  { %11029 = vmatpush3.bf16.msra.mxu0 %v12817_v58  ;;  %v12840_v58 = vld [vmem:[%s16002_s5 + $0xef8] sm:$0xff]  }
 0x4d9   :  { %11491 = vmatpush3.bf16.msra.mxu1 %v12818_v5  ;;  %11030 = vmatprep.subr.bf16.mxu0 %v12819_v9  ;;  %v12841_v5 = vld [vmem:[%s16002_s5 + $0x438] sm:$0xff]  }
 0x4da   :  { %11492 = vmatprep.subr.bf16.mxu1 %v12820_v29  ;;  %v12842_v9 = vld [vmem:[%s16002_s5 + $0xeb8] sm:$0xff]   ;;  %v12843_v29 = vld [vmem:[%s16002_s5 + $0x4c0] sm:$0xff]  }
 0x4dc   :  { %11031 = vmatpush3.bf16.msra.mxu0 %v12821_v20  ;;  %v12844_v20 = vld [vmem:[%s16002_s5 + $0xfc0] sm:$0xff]  }
 0x4dd   :  { %11493 = vmatpush3.bf16.msra.mxu1 %v12822_v6  ;;  %11032 = vmatprep.subr.bf16.mxu0 %v12823_v8  ;;  %v12845_v6 = vld [vmem:[%s16002_s5 + $0x480] sm:$0xff]   ;;  %v4242_v8 = vpack.c.b16 %v14354_v10, %v14354_v10  ;;  %v12848_v10 = vld [vmem:[%s16002_s5 + $0xfc8] sm:$0xff]  }
 0x4de   :  { %11494 = vmatprep.subr.bf16.mxu1 %v12824_v13  ;;  %v12846_v13 = vld [vmem:[%s16002_s5 + $0xf80] sm:$0xff]  }
 0x4e0   :  { %11033 = vmatpush3.bf16.msra.mxu0 %v12825_v17  ;;  %v4455_v17 = vpack.c.b16 %v14357_v54, %v14357_v54  ;;  %v12849_v54 = vld [vmem:[%s16002_s5 + $0x488] sm:$0xff]  }
 0x4e1   :  { %11495 = vmatpush3.bf16.msra.mxu1 %v12826_v22  ;;  %11034 = vmatprep.subr.bf16.mxu0 %v12827_v23  ;;  %v12847_v22 = vld [vmem:[%s16002_s5 + $0x4c8] sm:$0xff]   ;;  %v4256_v23 = vpack.c.b16 %v14362_v53, %v14362_v53  ;;  %v12851_v53 = vld [vmem:[%s16002_s5 + $0x4d0] sm:$0xff]  }
 0x4e2   :  { %11496 = vmatprep.subr.bf16.mxu1 %v12828_v26  ;;  %v4480_v26 = vpack.c.b16 %v14365_v61, %v14365_v61  ;;  %v12852_v61 = vld [vmem:[%s16002_s5 + $0xfd0] sm:$0xff]  }
 0x4e4   :  { %11035 = vmatpush3.bf16.msra.mxu0 %v12829_v36  ;;  %v12850_v36 = vld [vmem:[%s16002_s5 + $0xf88] sm:$0xff]  }
 0x4e5   :  { %11497 = vmatpush3.bf16.msra.mxu1 %v12830_v30  ;;  %11036 = vmatprep.subr.bf16.mxu0 %v12831_v62  ;;  %v12853_v30 = vld [vmem:[%s16002_s5 + $0x490] sm:$0xff]  }
 0x4e6   :  { %v10888_v48 = vpop.f32.mrb[68].mxu0  ;;  %v11196_v60 = vpop.f32.mrb[20].mxu1  ;;  %11498 = vmatprep.subr.bf16.mxu1 %v12832_v32  ;;  %v12854_v62 = vld [vmem:[%s16002_s5 + $0xf90] sm:$0xff]   ;;  %v12855_v32 = vld [vmem:[%s16002_s5 + $0x4d8] sm:$0xff]  }
 0x4e7   :  { %v10889_v4 = vpop.f32.mrb[69].mxu0  ;;  %v11197_v21 = vpop.f32.mrb[21].mxu1 }
 0x4e8   :  { %v10890_v41 = vadd.f32 %v10889_v4, %v10888_v48  ;;  %v15214_v27 = vadd.f32 %v11197_v21, %v11196_v60  ;;  %v10891_v28 = vpop.f32.mrb[70].mxu0  ;;  %11037 = vmatpush3.bf16.msra.mxu0 %v12833_v3  ;;  %v11199_v45 = vpop.f32.mrb[22].mxu1  ;;  %v12856_v3 = vld [vmem:[%s16002_s5 + $0xfd8] sm:$0xff]   ;;  %v12860_v48 = vld [vmem:[%s16002_s5 + $0xfe0] sm:$0xff]   ;;  %v12863_v4 = vld [vmem:[%s16002_s5 + $0x4e8] sm:$0xff]  }
 0x4e9   :  { %11499 = vmatpush3.bf16.msra.mxu1 %v12834_v7  ;;  %v10892_v63 = vpop.f32.mrb[71].mxu0  ;;  %v11200_v46 = vpop.f32.mrb[23].mxu1  ;;  %11038 = vmatprep.subr.bf16.mxu0 %v12835_v56  ;;  %v12858_v7 = vld [vmem:[%s16002_s5 + $0xf98] sm:$0xff]   ;;  %v12859_v56 = vld [vmem:[%s16002_s5 + $0x4e0] sm:$0xff]   ;;  %v12864_v21 = vld [vmem:[%s16002_s5 + $0xfe8] sm:$0xff]  }
 0x4ea   :  { %v15225_v52 = vadd.f32 %v10890_v41, %v8620_v50  ;;  %11500 = vmatprep.subr.bf16.mxu1 %v12836_v42  ;;  %v12861_v60 = vld [vmem:[%s16002_s5 + $0x4a0] sm:$0xff]   ;;  %v12865_v50 = vld [vmem:[%s16002_s5 + $0x4a8] sm:$0xff]   ;;  %v12867_v28 = vld [vmem:[%s16002_s5 + $0x4f0] sm:$0xff]  }
 0x4eb   :  { %v12862_v42 = vld [vmem:[%s16002_s5 + $0xfa0] sm:$0xff]   ;;  %v12866_v41 = vld [vmem:[%s16002_s5 + $0xfa8] sm:$0xff]  }
 0x4ec   :  { %11039 = vmatpush3.bf16.msra.mxu0 %v12837_v57  ;;  %v12868_v57 = vld [vmem:[%s16002_s5 + $0xff0] sm:$0xff]  }
 0x4ed   :  { %11501 = vmatpush3.bf16.msra.mxu1 %v12838_v18  ;;  %11040 = vmatprep.subr.bf16.mxu0 %v12839_v47 }
 0x4ee   :  { %11502 = vmatprep.subr.bf16.mxu1 %v12840_v58 }
 0x4f0   :  { %11041 = vmatpush3.bf16.msra.mxu0 %v12841_v5  ;;  %v12869_v5 = vld [vmem:[%s16002_s5 + $0x4b0] sm:$0xff]  }
 0x4f1   :  { %11503 = vmatpush3.bf16.msra.mxu1 %v12842_v9  ;;  %11048 = vmatprep.subr.bf16.mxu0 %v12843_v29 }
 0x4f2   :  { %11532 = vmatprep.subr.bf16.mxu1 %v12844_v20 }
 0x4f3   :  { %8938 = vmatmul.mubr.bf16.vlgmr.msra.gmra.mrb[96].mxu0 %v4242_v8  ;;  %v12871_v8 = vld [vmem:[%s16002_s5 + $0x4f8] sm:$0xff]  }
 0x4f4   :  { %9778 = vmatmul.mubr.bf16.vlgmr.msra.gmra.mrb[48].mxu1 %v4455_v17  ;;  %11049 = vmatpush3.bf16.msra.mxu0 %v12845_v6  ;;  %v12870_v6 = vld [vmem:[%s16002_s5 + $0xfb0] sm:$0xff]  }
 0x4f5   :  { %8977 = vmatprep.mubr.bf16.mxu0 %v4256_v23  ;;  %11533 = vmatpush3.bf16.msra.mxu1 %v12846_v13  ;;  %v12873_v23 = vld [vmem:[%s16002_s5 + $0x4b8] sm:$0xff]  }
 0x4f6   :  { %9857 = vmatprep.mubr.bf16.mxu1 %v4480_v26  ;;  %11050 = vmatprep.subr.bf16.mxu0 %v12847_v22  ;;  %v12872_v22 = vld [vmem:[%s16002_s5 + $0xff8] sm:$0xff]   ;;  %v12876_v26 = vld [vmem:[%s16002_s5 + $0x500] sm:$0xff]  }
 0x4f7   :  { %11534 = vmatprep.subr.bf16.mxu1 %v12848_v10  ;;  %v12874_v10 = vld [vmem:[%s16002_s5 + $0xfb8] sm:$0xff]  }
 0x4f8   :  { %11051 = vmatpush3.bf16.msra.mxu0 %v12849_v54  ;;  %v4251_v54 = vpack.c.b16 %v14371_v12, %v14371_v12  ;;  %v12879_v12 = vld [vmem:[%s16002_s5 + $0x550] sm:$0xff]  }
 0x4f9   :  { %11535 = vmatpush3.bf16.msra.mxu1 %v12850_v36  ;;  %11052 = vmatprep.subr.bf16.mxu0 %v12851_v53  ;;  %v12877_v36 = vld [vmem:[%s16002_s5 + $0x548] sm:$0xff]   ;;  %v16009_v53 = vld [vmem:[#allocation3_spill] sm:$0xff] }
 0x4fa   :  { %11536 = vmatprep.subr.bf16.mxu1 %v12852_v61  ;;  %v4475_v61 = vpack.c.b16 %v16009_v53, %v16009_v53 }
 0x4fc   :  { %11053 = vmatpush3.bf16.msra.mxu0 %v12853_v30  ;;  %v4266_v30 = vpack.c.b16 %v14397_v37, %v14397_v37  ;;  %v12881_v37 = vld [vmem:[%s16002_s5 + $0x558] sm:$0xff]  }
 0x4fd   :  { %11537 = vmatpush3.bf16.msra.mxu1 %v12854_v62  ;;  %11054 = vmatprep.subr.bf16.mxu0 %v12855_v32  ;;  %v12878_v62 = vld [vmem:[%s16002_s5 + $0x508] sm:$0xff]   ;;  %v12880_v32 = vld [vmem:[%s16002_s5 + $0x510] sm:$0xff]  }
 0x4fe   :  { %11538 = vmatprep.subr.bf16.mxu1 %v12856_v3  ;;  %v12882_v3 = vld [vmem:[%s16002_s5 + $0x518] sm:$0xff]  }
 0x500   :  { %11055 = vmatpush3.bf16.msra.mxu0 %v12857_v33  ;;  %v12883_v33 = vld [vmem:[%s16002_s5 + $0x560] sm:$0xff]  }
 0x501   :  { %11539 = vmatpush3.bf16.msra.mxu1 %v12858_v7  ;;  %11056 = vmatprep.subr.bf16.mxu0 %v12859_v56  ;;  %v12884_v7 = vld [vmem:[%s16002_s5 + $0x520] sm:$0xff]   ;;  %v12885_v56 = vld [vmem:[%s16002_s5 + $0x568] sm:$0xff]  }
 0x502   :  { %11540 = vmatprep.subr.bf16.mxu1 %v12860_v48  ;;  %v12886_v48 = vld [vmem:[%s16002_s5 + $0x528] sm:$0xff]  }
 0x504   :  { %11057 = vmatpush3.bf16.msra.mxu0 %v12861_v60  ;;  %v12887_v60 = vld [vmem:[%s16002_s5 + $0x570] sm:$0xff]  }
 0x505   :  { %11541 = vmatpush3.bf16.msra.mxu1 %v12862_v42  ;;  %11058 = vmatprep.subr.bf16.mxu0 %v12863_v4 }
 0x506   :  { %v10910_v45 = vpop.f32.mrb[72].mxu0  ;;  %11542 = vmatprep.subr.bf16.mxu1 %v12864_v21 }
 0x507   :  { %v11240_v63 = vpop.f32.mrb[24].mxu1  ;;  %v10911_v46 = vpop.f32.mrb[73].mxu0 }
 0x508   :  { %v10912_v18 = vadd.f32 %v10911_v46, %v10910_v45  ;;  %v11241_v47 = vpop.f32.mrb[25].mxu1  ;;  %v10913_v58 = vpop.f32.mrb[74].mxu0  ;;  %11059 = vmatpush3.bf16.msra.mxu0 %v12865_v50  ;;  %v12888_v45 = vld [vmem:[%s16002_s5 + $0x530] sm:$0xff]  }
 0x509   :  { %v15325_v9 = vadd.f32 %v11241_v47, %v11240_v63  ;;  %v11243_v29 = vpop.f32.mrb[26].mxu1  ;;  %11543 = vmatpush3.bf16.msra.mxu1 %v12866_v41  ;;  %v10914_v20 = vpop.f32.mrb[75].mxu0  ;;  %11060 = vmatprep.subr.bf16.mxu0 %v12867_v28 }
 0x50a   :  { %v8700_v13 = vadd.f32 %v10912_v18, %v15225_v52  ;;  %v11244_v17 = vpop.f32.mrb[27].mxu1  ;;  %11544 = vmatprep.subr.bf16.mxu1 %v12868_v57  ;;  %v12875_v52 = vld [vmem:[%s16002_s5 + $0x540] sm:$0xff]   ;;  %v12889_v18 = vld [vmem:[%s16002_s5 + $0x578] sm:$0xff]  }
 0x50b   :  { %v12891_v29 = vld [vmem:[%s16002_s5 + $0x5c0] sm:$0xff]   ;;  %v12894_v17 = vld [vmem:[%s16002_s5 + $0x588] sm:$0xff]  }
 0x50c   :  { %11061 = vmatpush3.bf16.msra.mxu0 %v12869_v5  ;;  %v12890_v5 = vld [vmem:[%s16002_s5 + $0x538] sm:$0xff]   ;;  %v12892_v20 = vld [vmem:[%s16002_s5 + $0x580] sm:$0xff]  }
 0x50d   :  { %11545 = vmatpush3.bf16.msra.mxu1 %v12870_v6  ;;  %11062 = vmatprep.subr.bf16.mxu0 %v12871_v8  ;;  %v4261_v6 = vpack.c.b16 %v14405_v59, %v14405_v59  ;;  %v12893_v8 = vld [vmem:[%s16002_s5 + $0x5c8] sm:$0xff]   ;;  %v12895_v59 = vld [vmem:[%s16002_s5 + $0x5d0] sm:$0xff]  }
 0x50e   :  { %11546 = vmatprep.subr.bf16.mxu1 %v12872_v22  ;;  %v12896_v22 = vld [vmem:[%s16002_s5 + $0x590] sm:$0xff]  }
 0x510   :  { %11063 = vmatpush3.bf16.msra.mxu0 %v12873_v23  ;;  %v12898_v23 = vld [vmem:[%s16002_s5 + $0x598] sm:$0xff]  }
 0x511   :  { %11547 = vmatpush3.bf16.msra.mxu1 %v12874_v10  ;;  %11070 = vmatprep.subr.bf16.mxu0 %v12875_v52  ;;  %v12899_v10 = vld [vmem:[%s16002_s5 + $0x5e0] sm:$0xff]  }
 0x512   :  { %v12900_v52 = vld [vmem:[%s16002_s5 + $0x5a0] sm:$0xff]  }
 0x513   :  { %8978 = vmatmul.mubr.bf16.vlgmr.msra.gmra.mrb[100].mxu0 %v4251_v54  ;;  %v12902_v54 = vld [vmem:[%s16002_s5 + $0x5a8] sm:$0xff]  }
 0x514   :  { %9858 = vmatmul.mubr.bf16.vlgmr.msra.gmra.mrb[52].mxu1 %v4475_v61  ;;  %11071 = vmatpush3.bf16.msra.mxu0 %v12876_v26  ;;  %v12901_v26 = vld [vmem:[%s16002_s5 + $0x5e8] sm:$0xff]  }
 0x515   :  { %9017 = vmatprep.mubr.bf16.mxu0 %v4266_v30  ;;  %11072 = vmatprep.subr.bf16.mxu0 %v12877_v36  ;;  %v12903_v36 = vld [vmem:[%s16002_s5 + $0x5f0] sm:$0xff]  }
 0x518   :  { %11073 = vmatpush3.bf16.msra.mxu0 %v12878_v62 }
 0x519   :  { %11074 = vmatprep.subr.bf16.mxu0 %v12879_v12 }
 0x51c   :  { %11075 = vmatpush3.bf16.msra.mxu0 %v12880_v32 }
 0x51d   :  { %11076 = vmatprep.subr.bf16.mxu0 %v12881_v37  ;;  %v12904_v37 = vld [vmem:[%s16002_s5 + $0x5b0] sm:$0xff]  }
 0x520   :  { %11077 = vmatpush3.bf16.msra.mxu0 %v12882_v3 }
 0x521   :  { %11078 = vmatprep.subr.bf16.mxu0 %v12883_v33 }
 0x524   :  { %11079 = vmatpush3.bf16.msra.mxu0 %v12884_v7 }
 0x525   :  { %11080 = vmatprep.subr.bf16.mxu0 %v12885_v56  ;;  %v12905_v56 = vld [vmem:[%s16002_s5 + $0x5f8] sm:$0xff]  }
 0x526   :  { %v10932_v42 = vpop.f32.mrb[76].mxu0 }
 0x527   :  { %v11284_v4 = vpop.f32.mrb[28].mxu1  ;;  %v10933_v21 = vpop.f32.mrb[77].mxu0 }
 0x528   :  { %v10934_v50 = vadd.f32 %v10933_v21, %v10932_v42  ;;  %v11285_v41 = vpop.f32.mrb[29].mxu1  ;;  %v10935_v28 = vpop.f32.mrb[78].mxu0  ;;  %11081 = vmatpush3.bf16.msra.mxu0 %v12886_v48  ;;  %v12906_v42 = vld [vmem:[%s16002_s5 + $0x5b8] sm:$0xff]   ;;  %v12908_v21 = vld [vmem:[%s16002_s5 + $0x600] sm:$0xff]  }
 0x529   :  { %v15391_v57 = vadd.f32 %v11285_v41, %v11284_v4  ;;  %v11287_v63 = vpop.f32.mrb[30].mxu1  ;;  %v10936_v46 = vpop.f32.mrb[79].mxu0  ;;  %11082 = vmatprep.subr.bf16.mxu0 %v12887_v60  ;;  %v12907_v4 = vld [vmem:[%s16002_s5 + $0x640] sm:$0xff]   ;;  %v12909_v41 = vld [vmem:[%s16002_s5 + $0x648] sm:$0xff]   ;;  %v4286_v28 = vpack.c.b16 %v14424_v2, %v14424_v2  ;;  %v12913_v2 = vld [vmem:[%s16002_s5 + $0x658] sm:$0xff]  }
 0x52a   :  { %v8740_v47 = vadd.f32 %v10934_v50, %v8700_v13  ;;  %v11288_v58 = vpop.f32.mrb[31].mxu1  ;;  %v4276_v13 = vpack.c.b16 %v14408_v35, %v14408_v35  ;;  %v12897_v35 = vld [vmem:[%s16002_s5 + $0x5d8] sm:$0xff]   ;;  %v4271_v50 = vpack.c.b16 %v14420_v1, %v14420_v1  ;;  %v12911_v1 = vld [vmem:[%s16002_s5 + $0x650] sm:$0xff]  }
 0x52b   :  { %v12912_v63 = vld [vmem:[%s16002_s5 + $0x610] sm:$0xff]   ;;  %v12914_v46 = vld [vmem:[%s16002_s5 + $0x618] sm:$0xff]   ;;  %v12917_v58 = vld [vmem:[%s16002_s5 + $0x668] sm:$0xff]  }
 0x52c   :  { %11083 = vmatpush3.bf16.msra.mxu0 %v12888_v45  ;;  %v12910_v45 = vld [vmem:[%s16002_s5 + $0x608] sm:$0xff]  }
 0x52d   :  { %11084 = vmatprep.subr.bf16.mxu0 %v12889_v18  ;;  %v12915_v18 = vld [vmem:[%s16002_s5 + $0x660] sm:$0xff]  }
 0x530   :  { %11085 = vmatpush3.bf16.msra.mxu0 %v12890_v5  ;;  %v12918_v5 = vld [vmem:[%s16002_s5 + $0x628] sm:$0xff]  }
 0x531   :  { %11092 = vmatprep.subr.bf16.mxu0 %v12891_v29  ;;  %v12919_v29 = vld [vmem:[%s16002_s5 + $0x670] sm:$0xff]  }
 0x533   :  { %9018 = vmatmul.mubr.bf16.vlgmr.msra.gmra.mrb[104].mxu0 %v4261_v6 }
 0x534   :  { %11093 = vmatpush3.bf16.msra.mxu0 %v12892_v20  ;;  %9057 = vmatprep.mubr.bf16.mxu0 %v4276_v13 }
 0x535   :  { %11094 = vmatprep.subr.bf16.mxu0 %v12893_v8 }
 0x538   :  { %11095 = vmatpush3.bf16.msra.mxu0 %v12894_v17 }
 0x539   :  { %11096 = vmatprep.subr.bf16.mxu0 %v12895_v59 }
 0x53c   :  { %11097 = vmatpush3.bf16.msra.mxu0 %v12896_v22  ;;  %v12920_v22 = vld [vmem:[%s16002_s5 + $0x630] sm:$0xff]  }
 0x53d   :  { %11098 = vmatprep.subr.bf16.mxu0 %v12897_v35 }
 0x540   :  { %11099 = vmatpush3.bf16.msra.mxu0 %v12898_v23 }
 0x541   :  { %11100 = vmatprep.subr.bf16.mxu0 %v12899_v10 }
 0x544   :  { %11101 = vmatpush3.bf16.msra.mxu0 %v12900_v52  ;;  %v12921_v52 = vld [vmem:[%s16002_s5 + $0x678] sm:$0xff]  }
 0x545   :  { %11102 = vmatprep.subr.bf16.mxu0 %v12901_v26 }
 0x546   :  { %v10954_v53 = vpop.f32.mrb[80].mxu0 }
 0x547   :  { %v11328_v61 = vpop.f32.mrb[32].mxu1  ;;  %v10955_v30 = vpop.f32.mrb[81].mxu0 }
 0x548   :  { %v10956_v62 = vadd.f32 %v10955_v30, %v10954_v53  ;;  %v11329_v12 = vpop.f32.mrb[33].mxu1  ;;  %v10957_v32 = vpop.f32.mrb[82].mxu0  ;;  %11103 = vmatpush3.bf16.msra.mxu0 %v12902_v54  ;;  %v12923_v53 = vld [vmem:[%s16002_s5 + $0x740] sm:$0xff]   ;;  %v4282_v30 = vpack.c.b16 %v14428_v0, %v14428_v0  ;;  %v12927_v0 = vld [vmem:[%s16002_s5 + $0x750] sm:$0xff]  }
 0x549   :  { %v15445_v3 = vadd.f32 %v11329_v12, %v11328_v61  ;;  %v11331_v33 = vpop.f32.mrb[34].mxu1  ;;  %v10958_v7 = vpop.f32.mrb[83].mxu0  ;;  %11104 = vmatprep.subr.bf16.mxu0 %v12903_v36  ;;  %v12922_v36 = vld [vmem:[%s16002_s5 + $0x638] sm:$0xff]   ;;  %v12924_v61 = vld [vmem:[%s16002_s5 + $0x700] sm:$0xff]   ;;  %v4306_v12 = vpack.c.b16 %v14440_v49, %v14440_v49  ;;  %v12926_v32 = vld [vmem:[%s16002_s5 + $0x708] sm:$0xff]  }
 0x54a   :  { %v8780_v48 = vadd.f32 %v10956_v62, %v8740_v47  ;;  %v11332_v60 = vpop.f32.mrb[35].mxu1  ;;  %v12916_v47 = vld [vmem:[%s16002_s5 + $0x620] sm:$0xff]   ;;  %v12925_v62 = vld [vmem:[%s16002_s5 + $0x748] sm:$0xff]   ;;  %v12929_v49 = vld [vmem:[%s16002_s5 + $0x758] sm:$0xff]  }
 0x54b   :  { %v12930_v33 = vld [vmem:[%s16002_s5 + $0x718] sm:$0xff]   ;;  %v12931_v7 = vld [vmem:[%s16002_s5 + $0x760] sm:$0xff]   ;;  %v12934_v60 = vld [vmem:[%s16002_s5 + $0x728] sm:$0xff]  }
 0x54c   :  { %11105 = vmatpush3.bf16.msra.mxu0 %v12904_v37  ;;  %v12928_v37 = vld [vmem:[%s16002_s5 + $0x710] sm:$0xff]  }
 0x54d   :  { %11106 = vmatprep.subr.bf16.mxu0 %v12905_v56  ;;  %v12932_v56 = vld [vmem:[%s16002_s5 + $0x720] sm:$0xff]  }
 0x550   :  { %11107 = vmatpush3.bf16.msra.mxu0 %v12906_v42  ;;  %v12935_v42 = vld [vmem:[%s16002_s5 + $0x770] sm:$0xff]  }
 0x551   :  { %11114 = vmatprep.subr.bf16.mxu0 %v12907_v4 }
 0x553   :  { %9058 = vmatmul.mubr.bf16.vlgmr.msra.gmra.mrb[108].mxu0 %v4271_v50 }
 0x554   :  { %11115 = vmatpush3.bf16.msra.mxu0 %v12908_v21  ;;  %9097 = vmatprep.mubr.bf16.mxu0 %v4286_v28 }
 0x555   :  { %11116 = vmatprep.subr.bf16.mxu0 %v12909_v41 }
 0x558   :  { %11117 = vmatpush3.bf16.msra.mxu0 %v12910_v45 }
 0x559   :  { %11118 = vmatprep.subr.bf16.mxu0 %v12911_v1  ;;  %v12936_v1 = vld [vmem:[%s16002_s5 + $0x730] sm:$0xff]  }
 0x55c   :  { %11119 = vmatpush3.bf16.msra.mxu0 %v12912_v63 }
 0x55d   :  { %11120 = vmatprep.subr.bf16.mxu0 %v12913_v2 }
 0x560   :  { %11121 = vmatpush3.bf16.msra.mxu0 %v12914_v46 }
 0x561   :  { %11122 = vmatprep.subr.bf16.mxu0 %v12915_v18  ;;  %v12937_v18 = vld [vmem:[%s16002_s5 + $0x778] sm:$0xff]  }
 0x564   :  { %11123 = vmatpush3.bf16.msra.mxu0 %v12916_v47 }
 0x565   :  { %11124 = vmatprep.subr.bf16.mxu0 %v12917_v58 }
 0x566   :  { %v10976_v20 = vpop.f32.mrb[84].mxu0 }
 0x567   :  { %v11372_v6 = vpop.f32.mrb[36].mxu1  ;;  %v10977_v8 = vpop.f32.mrb[85].mxu0 }
 0x568   :  { %v10978_v13 = vadd.f32 %v10977_v8, %v10976_v20  ;;  %v11373_v17 = vpop.f32.mrb[37].mxu1  ;;  %v10979_v59 = vpop.f32.mrb[86].mxu0  ;;  %11125 = vmatpush3.bf16.msra.mxu0 %v12918_v5  ;;  %v12938_v5 = vld [vmem:[%s16002_s5 + $0x738] sm:$0xff]   ;;  %v12940_v20 = vld [vmem:[%s16002_s5 + $0x800] sm:$0xff]   ;;  %v12941_v8 = vld [vmem:[%s16002_s5 + $0x848] sm:$0xff]  }
 0x569   :  { %v15499_v35 = vadd.f32 %v11373_v17, %v11372_v6  ;;  %v11375_v23 = vpop.f32.mrb[38].mxu1  ;;  %v10980_v10 = vpop.f32.mrb[87].mxu0  ;;  %11126 = vmatprep.subr.bf16.mxu0 %v12919_v29  ;;  %v12939_v29 = vld [vmem:[%s16002_s5 + $0x840] sm:$0xff]   ;;  %v4301_v6 = vpack.c.b16 %v14451_v25, %v14451_v25  ;;  %v12942_v17 = vld [vmem:[%s16002_s5 + $0x808] sm:$0xff]   ;;  %v12943_v25 = vld [vmem:[%s16002_s5 + $0x850] sm:$0xff]  }
 0x56a   :  { %v8820_v26 = vadd.f32 %v10978_v13, %v8780_v48  ;;  %v11376_v54 = vpop.f32.mrb[39].mxu1  ;;  %v12933_v48 = vld [vmem:[%s16002_s5 + $0x768] sm:$0xff]   ;;  %v4328_v13 = vpack.c.b16 %v14460_v43, %v14460_v43  ;;  %v12944_v59 = vld [vmem:[%s16002_s5 + $0x810] sm:$0xff]   ;;  %v12945_v43 = vld [vmem:[%s16002_s5 + $0x858] sm:$0xff]  }
 0x56b   :  { %v12947_v23 = vld [vmem:[%s16002_s5 + $0x860] sm:$0xff]   ;;  %v12951_v54 = vld [vmem:[%s16002_s5 + $0x870] sm:$0xff]  }
 0x56c   :  { %11127 = vmatpush3.bf16.msra.mxu0 %v12920_v22  ;;  %v12946_v22 = vld [vmem:[%s16002_s5 + $0x818] sm:$0xff]   ;;  %v12948_v10 = vld [vmem:[%s16002_s5 + $0x820] sm:$0xff]  }
 0x56d   :  { %11128 = vmatprep.subr.bf16.mxu0 %v12921_v52  ;;  %v12949_v52 = vld [vmem:[%s16002_s5 + $0x868] sm:$0xff]  }
 0x570   :  { %11129 = vmatpush3.bf16.msra.mxu0 %v12922_v36 }
 0x571   :  { %11158 = vmatprep.subr.bf16.mxu0 %v12923_v53 }
 0x573   :  { %9098 = vmatmul.mubr.bf16.vlgmr.msra.gmra.mrb[112].mxu0 %v4282_v30 }
 0x574   :  { %11159 = vmatpush3.bf16.msra.mxu0 %v12924_v61  ;;  %9177 = vmatprep.mubr.bf16.mxu0 %v4306_v12 }
 0x575   :  { %11160 = vmatprep.subr.bf16.mxu0 %v12925_v62 }
 0x578   :  { %11161 = vmatpush3.bf16.msra.mxu0 %v12926_v32  ;;  %v12952_v32 = vld [vmem:[%s16002_s5 + $0x830] sm:$0xff]  }
 0x579   :  { %11162 = vmatprep.subr.bf16.mxu0 %v12927_v0 }
 0x57c   :  { %11163 = vmatpush3.bf16.msra.mxu0 %v12928_v37 }
 0x57d   :  { %11164 = vmatprep.subr.bf16.mxu0 %v12929_v49 }
 0x580   :  { %11165 = vmatpush3.bf16.msra.mxu0 %v12930_v33  ;;  %v12953_v33 = vld [vmem:[%s16002_s5 + $0x878] sm:$0xff]  }
 0x581   :  { %11166 = vmatprep.subr.bf16.mxu0 %v12931_v7 }
 0x584   :  { %11167 = vmatpush3.bf16.msra.mxu0 %v12932_v56 }
 0x585   :  { %11168 = vmatprep.subr.bf16.mxu0 %v12933_v48  ;;  %v12954_v48 = vld [vmem:[%s16002_s5 + $0x838] sm:$0xff]  }
 0x586   :  { %v10998_v4 = vpop.f32.mrb[88].mxu0 }
 0x587   :  { %v11416_v21 = vpop.f32.mrb[40].mxu1  ;;  %v10999_v50 = vpop.f32.mrb[89].mxu0 }
 0x588   :  { %v11000_v41 = vadd.f32 %v10999_v50, %v10998_v4  ;;  %v11417_v28 = vpop.f32.mrb[41].mxu1  ;;  %v11001_v45 = vpop.f32.mrb[90].mxu0  ;;  %11169 = vmatpush3.bf16.msra.mxu0 %v12934_v60  ;;  %v12955_v60 = vld [vmem:[%s16002_s5 + $0x940] sm:$0xff]   ;;  %v4324_v4 = vpack.c.b16 %v14464_v11, %v14464_v11  ;;  %v4348_v50 = vpack.c.b16 %v14469_v16, %v14469_v16  ;;  %v12959_v11 = vld [vmem:[%s16002_s5 + $0x950] sm:$0xff]   ;;  %v12961_v16 = vld [vmem:[%s16002_s5 + $0x958] sm:$0xff]  }
 0x589   :  { %v15553_v63 = vadd.f32 %v11417_v28, %v11416_v21  ;;  %v11419_v2 = vpop.f32.mrb[42].mxu1  ;;  %v11002_v46 = vpop.f32.mrb[91].mxu0  ;;  %11170 = vmatprep.subr.bf16.mxu0 %v12935_v42  ;;  %v12956_v42 = vld [vmem:[%s16002_s5 + $0x900] sm:$0xff]   ;;  %v12957_v21 = vld [vmem:[%s16002_s5 + $0x948] sm:$0xff]   ;;  %v12960_v28 = vld [vmem:[%s16002_s5 + $0x910] sm:$0xff]  }
 0x58a   :  { %v8860_v47 = vadd.f32 %v11000_v41, %v8820_v26  ;;  %v11420_v58 = vpop.f32.mrb[43].mxu1  ;;  %v12950_v26 = vld [vmem:[%s16002_s5 + $0x828] sm:$0xff]   ;;  %v12962_v45 = vld [vmem:[%s16002_s5 + $0x918] sm:$0xff]   ;;  %v12964_v2 = vld [vmem:[%s16002_s5 + $0x920] sm:$0xff]  }
 0x58b   :  { %v12958_v41 = vld [vmem:[%s16002_s5 + $0x908] sm:$0xff]  }
 0x58c   :  { %11171 = vmatpush3.bf16.msra.mxu0 %v12936_v1  ;;  %v12963_v1 = vld [vmem:[%s16002_s5 + $0x960] sm:$0xff]   ;;  %v12965_v46 = vld [vmem:[%s16002_s5 + $0x968] sm:$0xff]  }
 0x58d   :  { %11172 = vmatprep.subr.bf16.mxu0 %v12937_v18  ;;  %v12966_v18 = vld [vmem:[%s16002_s5 + $0x928] sm:$0xff]  }
 0x590   :  { %11173 = vmatpush3.bf16.msra.mxu0 %v12938_v5 }
 0x591   :  { %11202 = vmatprep.subr.bf16.mxu0 %v12939_v29 }
 0x593   :  { %9178 = vmatmul.mubr.bf16.vlgmr.msra.gmra.mrb[116].mxu0 %v4301_v6 }
 0x594   :  { %11203 = vmatpush3.bf16.msra.mxu0 %v12940_v20  ;;  %9257 = vmatprep.mubr.bf16.mxu0 %v4328_v13  ;;  %v12968_v13 = vld [vmem:[%s16002_s5 + $0x930] sm:$0xff]  }
 0x595   :  { %11204 = vmatprep.subr.bf16.mxu0 %v12941_v8 }
 0x598   :  { %11205 = vmatpush3.bf16.msra.mxu0 %v12942_v17 }
 0x599   :  { %11206 = vmatprep.subr.bf16.mxu0 %v12943_v25 }
 0x59c   :  { %11207 = vmatpush3.bf16.msra.mxu0 %v12944_v59 }
 0x59d   :  { %11208 = vmatprep.subr.bf16.mxu0 %v12945_v43  ;;  %v12969_v43 = vld [vmem:[%s16002_s5 + $0x978] sm:$0xff]  }
 0x5a0   :  { %11209 = vmatpush3.bf16.msra.mxu0 %v12946_v22 }
 0x5a1   :  { %11210 = vmatprep.subr.bf16.mxu0 %v12947_v23 }
 0x5a4   :  { %11211 = vmatpush3.bf16.msra.mxu0 %v12948_v10  ;;  %v12970_v10 = vld [vmem:[%s16002_s5 + $0x938] sm:$0xff]  }
 0x5a5   :  { %11212 = vmatprep.subr.bf16.mxu0 %v12949_v52  ;;  %v12971_v52 = vld [vmem:[%s16002_s5 + $0xa40] sm:$0xff]  }
 0x5a6   :  { %v11020_v36 = vpop.f32.mrb[92].mxu0 }
 0x5a7   :  { %v11460_v53 = vpop.f32.mrb[44].mxu1  ;;  %v11021_v61 = vpop.f32.mrb[93].mxu0 }
 0x5a8   :  { %v11022_v30 = vadd.f32 %v11021_v61, %v11020_v36  ;;  %v11461_v62 = vpop.f32.mrb[45].mxu1  ;;  %v11023_v12 = vpop.f32.mrb[94].mxu0  ;;  %11213 = vmatpush3.bf16.msra.mxu0 %v12950_v26  ;;  %v12972_v26 = vld [vmem:[%s16002_s5 + $0xa00] sm:$0xff]   ;;  %v12973_v36 = vld [vmem:[%s16002_s5 + $0xa48] sm:$0xff]  }
 0x5a9   :  { %v15607_v0 = vadd.f32 %v11461_v62, %v11460_v53  ;;  %v11463_v37 = vpop.f32.mrb[46].mxu1  ;;  %v11024_v49 = vpop.f32.mrb[95].mxu0  ;;  %11214 = vmatprep.subr.bf16.mxu0 %v12951_v54  ;;  %v4343_v54 = vpack.c.b16 %v14479_v19, %v14479_v19  ;;  %v4368_v53 = vpack.c.b16 %v14490_v44, %v14490_v44  ;;  %v12974_v61 = vld [vmem:[%s16002_s5 + $0xa08] sm:$0xff]   ;;  %v12975_v19 = vld [vmem:[%s16002_s5 + $0xa50] sm:$0xff]   ;;  %v12977_v44 = vld [vmem:[%s16002_s5 + $0xa58] sm:$0xff]  }
 0x5aa   :  { %v8900_v7 = vadd.f32 %v11022_v30, %v8860_v47  ;;  %v11464_v56 = vpop.f32.mrb[47].mxu1  ;;  %v12967_v47 = vld [vmem:[%s16002_s5 + $0x970] sm:$0xff]   ;;  %v12978_v62 = vld [vmem:[%s16002_s5 + $0xa18] sm:$0xff]   ;;  %v12979_v12 = vld [vmem:[%s16002_s5 + $0xa60] sm:$0xff]  }
 0x5ab   :  { %v12976_v30 = vld [vmem:[%s16002_s5 + $0xa10] sm:$0xff]   ;;  %v12981_v37 = vld [vmem:[%s16002_s5 + $0xa68] sm:$0xff]  }
 0x5ac   :  { %11215 = vmatpush3.bf16.msra.mxu0 %v12952_v32  ;;  %v12980_v32 = vld [vmem:[%s16002_s5 + $0xa20] sm:$0xff]   ;;  %v12982_v49 = vld [vmem:[%s16002_s5 + $0xa28] sm:$0xff]  }
 0x5ad   :  { %11216 = vmatprep.subr.bf16.mxu0 %v12953_v33  ;;  %v12983_v33 = vld [vmem:[%s16002_s5 + $0xa70] sm:$0xff]  }
 0x5b0   :  { %11217 = vmatpush3.bf16.msra.mxu0 %v12954_v48 }
 0x5b1   :  { %11246 = vmatprep.subr.bf16.mxu0 %v12955_v60 }
 0x5b3   :  { %9258 = vmatmul.mubr.bf16.vlgmr.msra.gmra.mrb[120].mxu0 %v4324_v4 }
 0x5b4   :  { %11247 = vmatpush3.bf16.msra.mxu0 %v12956_v42  ;;  %9337 = vmatprep.mubr.bf16.mxu0 %v4348_v50 }
 0x5b5   :  { %11248 = vmatprep.subr.bf16.mxu0 %v12957_v21  ;;  %v12984_v21 = vld [vmem:[%s16002_s5 + $0xa30] sm:$0xff]  }
 0x5b8   :  { %11249 = vmatpush3.bf16.msra.mxu0 %v12958_v41 }
 0x5b9   :  { %11250 = vmatprep.subr.bf16.mxu0 %v12959_v11 }
 0x5bc   :  { %11251 = vmatpush3.bf16.msra.mxu0 %v12960_v28  ;;  %v12985_v28 = vld [vmem:[%s16002_s5 + $0xa78] sm:$0xff]  }
 0x5bd   :  { %11252 = vmatprep.subr.bf16.mxu0 %v12961_v16 }
 0x5c0   :  { %11253 = vmatpush3.bf16.msra.mxu0 %v12962_v45 }
 0x5c1   :  { %11254 = vmatprep.subr.bf16.mxu0 %v12963_v1  ;;  %v12986_v1 = vld [vmem:[%s16002_s5 + $0xa38] sm:$0xff]  }
 0x5c4   :  { %11255 = vmatpush3.bf16.msra.mxu0 %v12964_v2  ;;  %v12987_v2 = vld [vmem:[%s16002_s5 + $0xb40] sm:$0xff]  }
 0x5c5   :  { %11256 = vmatprep.subr.bf16.mxu0 %v12965_v46  ;;  %v12988_v46 = vld [vmem:[%s16002_s5 + $0xb00] sm:$0xff]  }
 0x5c6   :  { %v11042_v58 = vpop.f32.mrb[96].mxu0 }
 0x5c7   :  { %v11504_v5 = vpop.f32.mrb[48].mxu1  ;;  %v11043_v29 = vpop.f32.mrb[97].mxu0 }
 0x5c8   :  { %v11044_v20 = vadd.f32 %v11043_v29, %v11042_v58  ;;  %v11505_v6 = vpop.f32.mrb[49].mxu1  ;;  %v11045_v8 = vpop.f32.mrb[98].mxu0  ;;  %11257 = vmatpush3.bf16.msra.mxu0 %v12966_v18  ;;  %v4364_v18 = vpack.c.b16 %v14499_v14, %v14499_v14  ;;  %v4388_v58 = vpack.c.b16 %v14505_v51, %v14505_v51  ;;  %v12991_v14 = vld [vmem:[%s16002_s5 + $0xb50] sm:$0xff]   ;;  %v12993_v51 = vld [vmem:[%s16002_s5 + $0xb58] sm:$0xff]  }
 0x5c9   :  { %v15661_v17 = vadd.f32 %v11505_v6, %v11504_v5  ;;  %v11507_v25 = vpop.f32.mrb[50].mxu1  ;;  %v11046_v59 = vpop.f32.mrb[99].mxu0  ;;  %11258 = vmatprep.subr.bf16.mxu0 %v12967_v47  ;;  %v12989_v47 = vld [vmem:[%s16002_s5 + $0xb48] sm:$0xff]   ;;  %v12992_v29 = vld [vmem:[%s16002_s5 + $0xb10] sm:$0xff]   ;;  %v12995_v6 = vld [vmem:[%s16002_s5 + $0xb60] sm:$0xff]  }
 0x5ca   :  { %v8940_v22 = vadd.f32 %v11044_v20, %v8900_v7  ;;  %v11508_v23 = vpop.f32.mrb[51].mxu1  ;;  %v12990_v5 = vld [vmem:[%s16002_s5 + $0xb08] sm:$0xff]   ;;  %v12994_v20 = vld [vmem:[%s16002_s5 + $0xb18] sm:$0xff]   ;;  %v12996_v8 = vld [vmem:[%s16002_s5 + $0xb20] sm:$0xff]  }
 0x5cb   :  { %v12998_v25 = vld [vmem:[%s16002_s5 + $0xb28] sm:$0xff]   ;;  %v12999_v59 = vld [vmem:[%s16002_s5 + $0xb70] sm:$0xff]  }
 0x5cc   :  { %11259 = vmatpush3.bf16.msra.mxu0 %v12968_v13  ;;  %v12997_v13 = vld [vmem:[%s16002_s5 + $0xb68] sm:$0xff]  }
 0x5cd   :  { %11260 = vmatprep.subr.bf16.mxu0 %v12969_v43 }
 0x5d0   :  { %11261 = vmatpush3.bf16.msra.mxu0 %v12970_v10 }
 0x5d1   :  { %11290 = vmatprep.subr.bf16.mxu0 %v12971_v52  ;;  %v13000_v52 = vld [vmem:[%s16002_s5 + $0xb30] sm:$0xff]  }
 0x5d3   :  { %9338 = vmatmul.mubr.bf16.vlgmr.msra.gmra.mrb[124].mxu0 %v4343_v54  ;;  %v13001_v54 = vld [vmem:[%s16002_s5 + $0xb78] sm:$0xff]  }
 0x5d4   :  { %11291 = vmatpush3.bf16.msra.mxu0 %v12972_v26  ;;  %9417 = vmatprep.mubr.bf16.mxu0 %v4368_v53  ;;  %v13002_v53 = vld [vmem:[%s16002_s5 + $0xb38] sm:$0xff]  }
 0x5d5   :  { %11292 = vmatprep.subr.bf16.mxu0 %v12973_v36 }
 0x5d8   :  { %11293 = vmatpush3.bf16.msra.mxu0 %v12974_v61  ;;  %v13003_v61 = vld [vmem:[%s16002_s5 + $0xc40] sm:$0xff]  }
 0x5d9   :  { %11294 = vmatprep.subr.bf16.mxu0 %v12975_v19  ;;  %v13004_v19 = vld [vmem:[%s16002_s5 + $0xc00] sm:$0xff]  }
 0x5dc   :  { %11295 = vmatpush3.bf16.msra.mxu0 %v12976_v30  ;;  %v4383_v30 = vpack.c.b16 %v14511_v24, %v14511_v24  ;;  %v13007_v24 = vld [vmem:[%s16002_s5 + $0xc50] sm:$0xff]  }
 0x5dd   :  { %11296 = vmatprep.subr.bf16.mxu0 %v12977_v44  ;;  %v13005_v44 = vld [vmem:[%s16002_s5 + $0xc48] sm:$0xff]  }
 0x5e0   :  { %11297 = vmatpush3.bf16.msra.mxu0 %v12978_v62  ;;  %v4410_v62 = vpack.c.b16 %v14515_v15, %v14515_v15  ;;  %v13009_v15 = vld [vmem:[%s16002_s5 + $0xc58] sm:$0xff]  }
 0x5e1   :  { %11298 = vmatprep.subr.bf16.mxu0 %v12979_v12  ;;  %v13006_v12 = vld [vmem:[%s16002_s5 + $0xc08] sm:$0xff]  }
 0x5e4   :  { %11299 = vmatpush3.bf16.msra.mxu0 %v12980_v32  ;;  %v13008_v32 = vld [vmem:[%s16002_s5 + $0xc10] sm:$0xff]  }
 0x5e5   :  { %11300 = vmatprep.subr.bf16.mxu0 %v12981_v37  ;;  %v13010_v37 = vld [vmem:[%s16002_s5 + $0xc18] sm:$0xff]  }
 0x5e6   :  { %v11064_v7 = vpop.f32.mrb[100].mxu0 }
 0x5e7   :  { %v11548_v56 = vpop.f32.mrb[52].mxu1  ;;  %v11065_v48 = vpop.f32.mrb[101].mxu0 }
 0x5e8   :  { %v11066_v60 = vadd.f32 %v11065_v48, %v11064_v7  ;;  %v11549_v42 = vpop.f32.mrb[53].mxu1  ;;  %v11067_v4 = vpop.f32.mrb[102].mxu0  ;;  %11301 = vmatpush3.bf16.msra.mxu0 %v12982_v49  ;;  %v13011_v49 = vld [vmem:[%s16002_s5 + $0xc60] sm:$0xff]   ;;  %v13013_v7 = vld [vmem:[%s16002_s5 + $0xc68] sm:$0xff]   ;;  %v13015_v48 = vld [vmem:[%s16002_s5 + $0xc70] sm:$0xff]  }
 0x5e9   :  { %v15715_v50 = vadd.f32 %v11549_v42, %v11548_v56  ;;  %v11551_v41 = vpop.f32.mrb[54].mxu1  ;;  %v11068_v11 = vpop.f32.mrb[103].mxu0  ;;  %11302 = vmatprep.subr.bf16.mxu0 %v12983_v33  ;;  %v13012_v33 = vld [vmem:[%s16002_s5 + $0xc20] sm:$0xff]   ;;  %v13014_v56 = vld [vmem:[%s16002_s5 + $0xc28] sm:$0xff]  }
 0x5ea   :  { %v8980_v16 = vadd.f32 %v11066_v60, %v8940_v22  ;;  %v11552_v45 = vpop.f32.mrb[55].mxu1  ;;  %v13016_v41 = vld [vmem:[%s16002_s5 + $0xc30] sm:$0xff]  }
 0x5eb   :  { %v13018_v45 = vld [vmem:[%s16002_s5 + $0xc38] sm:$0xff]  }
 0x5ec   :  { %11303 = vmatpush3.bf16.msra.mxu0 %v12984_v21 }
 0x5ed   :  { %11304 = vmatprep.subr.bf16.mxu0 %v12985_v28  ;;  %v13017_v28 = vld [vmem:[%s16002_s5 + $0xc78] sm:$0xff]  }
 0x5f0   :  { %11305 = vmatpush3.bf16.msra.mxu0 %v12986_v1  ;;  %v13019_v1 = vld [vmem:[%s16002_s5 + $0xd40] sm:$0xff]  }
 0x5f1   :  { %11334 = vmatprep.subr.bf16.mxu0 %v12987_v2  ;;  %v13020_v2 = vld [vmem:[%s16002_s5 + $0xd00] sm:$0xff]  }
 0x5f3   :  { %9418 = vmatmul.mubr.bf16.vlgmr.msra.gmra.mrb[128].mxu0 %v4364_v18 }
 0x5f4   :  { %11335 = vmatpush3.bf16.msra.mxu0 %v12988_v46  ;;  %9497 = vmatprep.mubr.bf16.mxu0 %v4388_v58  ;;  %v16010_v46 = vld [vmem:[#allocation4_spill] sm:$0xff]  ;;  %v4430_v58 = vpack.c.b16 %v14537_v55, %v14537_v55  ;;  %v13025_v55 = vld [vmem:[%s16002_s5 + $0xd58] sm:$0xff]  }
 0x5f5   :  { %11336 = vmatprep.subr.bf16.mxu0 %v12989_v47  ;;  %v4406_v18 = vpack.c.b16 %v16010_v46, %v16010_v46  ;;  %v13021_v47 = vld [vmem:[%s16002_s5 + $0xd48] sm:$0xff]  }
 0x5f6   :  { %v13053_v46 = vld [vmem:[%s16002_s5 + $0xf48] sm:$0xff]  }
 0x5f8   :  { %11337 = vmatpush3.bf16.msra.mxu0 %v12990_v5  ;;  %v13022_v5 = vld [vmem:[%s16002_s5 + $0xd08] sm:$0xff]  }
 0x5f9   :  { %11338 = vmatprep.subr.bf16.mxu0 %v12991_v14  ;;  %v13023_v14 = vld [vmem:[%s16002_s5 + $0xd50] sm:$0xff]  }
 0x5fc   :  { %11339 = vmatpush3.bf16.msra.mxu0 %v12992_v29  ;;  %v13024_v29 = vld [vmem:[%s16002_s5 + $0xd10] sm:$0xff]  }
 0x5fd   :  { %11340 = vmatprep.subr.bf16.mxu0 %v12993_v51  ;;  %v13026_v51 = vld [vmem:[%s16002_s5 + $0xd18] sm:$0xff]  }
 0x600   :  { %11341 = vmatpush3.bf16.msra.mxu0 %v12994_v20  ;;  %v13027_v20 = vld [vmem:[%s16002_s5 + $0xd60] sm:$0xff]  }
 0x601   :  { %11342 = vmatprep.subr.bf16.mxu0 %v12995_v6  ;;  %v13028_v6 = vld [vmem:[%s16002_s5 + $0xd20] sm:$0xff]  }
 0x604   :  { %11343 = vmatpush3.bf16.msra.mxu0 %v12996_v8  ;;  %v13029_v8 = vld [vmem:[%s16002_s5 + $0xd68] sm:$0xff]  }
 0x605   :  { %11344 = vmatprep.subr.bf16.mxu0 %v12997_v13  ;;  %v13030_v13 = vld [vmem:[%s16002_s5 + $0xd28] sm:$0xff]  }
 0x606   :  { %v11086_v43 = vpop.f32.mrb[104].mxu0 }
 0x607   :  { %v11087_v22 = vpop.f32.mrb[105].mxu0 }
 0x608   :  { %v11088_v23 = vadd.f32 %v11087_v22, %v11086_v43  ;;  %v11089_v10 = vpop.f32.mrb[106].mxu0  ;;  %11345 = vmatpush3.bf16.msra.mxu0 %v12998_v25  ;;  %v13031_v25 = vld [vmem:[%s16002_s5 + $0xd70] sm:$0xff]  }
 0x609   :  { %v11090_v26 = vpop.f32.mrb[107].mxu0  ;;  %11346 = vmatprep.subr.bf16.mxu0 %v12999_v59  ;;  %v13032_v10 = vld [vmem:[%s16002_s5 + $0xd30] sm:$0xff]  }
 0x60a   :  { %v9020_v36 = vadd.f32 %v11088_v23, %v8980_v16  ;;  %v13033_v26 = vld [vmem:[%s16002_s5 + $0xd78] sm:$0xff]  }
 0x60c   :  { %11347 = vmatpush3.bf16.msra.mxu0 %v13000_v52 }
 0x60d   :  { %11348 = vmatprep.subr.bf16.mxu0 %v13001_v54 }
 0x610   :  { %11349 = vmatpush3.bf16.msra.mxu0 %v13002_v53 }
 0x611   :  { %11378 = vmatprep.subr.bf16.mxu0 %v13003_v61  ;;  %v13035_v61 = vld [vmem:[%s16002_s5 + $0xe40] sm:$0xff]  }
 0x613   :  { %9498 = vmatmul.mubr.bf16.vlgmr.msra.gmra.mrb[132].mxu0 %v4383_v30  ;;  %v4425_v30 = vpack.c.b16 %v14553_v34, %v14553_v34  ;;  %v13039_v34 = vld [vmem:[%s16002_s5 + $0xe50] sm:$0xff]  }
 0x614   :  { %11379 = vmatpush3.bf16.msra.mxu0 %v13004_v19  ;;  %9577 = vmatprep.mubr.bf16.mxu0 %v4410_v62  ;;  %v13036_v19 = vld [vmem:[%s16002_s5 + $0xe00] sm:$0xff]   ;;  %v13038_v62 = vld [vmem:[%s16002_s5 + $0xe08] sm:$0xff]  }
 0x615   :  { %11380 = vmatprep.subr.bf16.mxu0 %v13005_v44  ;;  %v13037_v44 = vld [vmem:[%s16002_s5 + $0xe48] sm:$0xff]  }
 0x618   :  { %11381 = vmatpush3.bf16.msra.mxu0 %v13006_v12  ;;  %v13040_v12 = vld [vmem:[%s16002_s5 + $0xe10] sm:$0xff]  }
 0x619   :  { %11382 = vmatprep.subr.bf16.mxu0 %v13007_v24  ;;  %v13042_v24 = vld [vmem:[%s16002_s5 + $0xe18] sm:$0xff]  }
 0x61c   :  { %11383 = vmatpush3.bf16.msra.mxu0 %v13008_v32  ;;  %v13043_v32 = vld [vmem:[%s16002_s5 + $0xe60] sm:$0xff]  }
 0x61d   :  { %11384 = vmatprep.subr.bf16.mxu0 %v13009_v15  ;;  %v13044_v15 = vld [vmem:[%s16002_s5 + $0xe20] sm:$0xff]  }
 0x620   :  { %11385 = vmatpush3.bf16.msra.mxu0 %v13010_v37  ;;  %v13045_v37 = vld [vmem:[%s16002_s5 + $0xe68] sm:$0xff]  }
 0x621   :  { %11386 = vmatprep.subr.bf16.mxu0 %v13011_v49  ;;  %v13046_v49 = vld [vmem:[%s16002_s5 + $0xe28] sm:$0xff]  }
 0x624   :  { %11387 = vmatpush3.bf16.msra.mxu0 %v13012_v33  ;;  %v13047_v33 = vld [vmem:[%s16002_s5 + $0xe70] sm:$0xff]  }
 0x625   :  { %11388 = vmatprep.subr.bf16.mxu0 %v13013_v7 }
 0x626   :  { %v11108_v60 = vpop.f32.mrb[108].mxu0 }
 0x627   :  { %v11109_v42 = vpop.f32.mrb[109].mxu0 }
 0x628   :  { %v11110_v4 = vadd.f32 %v11109_v42, %v11108_v60  ;;  %v11111_v21 = vpop.f32.mrb[110].mxu0  ;;  %11389 = vmatpush3.bf16.msra.mxu0 %v13014_v56  ;;  %v13048_v42 = vld [vmem:[%s16002_s5 + $0xe30] sm:$0xff]  }
 0x629   :  { %v11112_v11 = vpop.f32.mrb[111].mxu0  ;;  %11390 = vmatprep.subr.bf16.mxu0 %v13015_v48  ;;  %v13049_v21 = vld [vmem:[%s16002_s5 + $0xe78] sm:$0xff]  }
 0x62a   :  { %v9060_v16 = vadd.f32 %v11110_v4, %v9020_v36  ;;  %v13034_v36 = vld [vmem:[%s16002_s5 + $0xd38] sm:$0xff]  }
 0x62b   :  { %v13050_v11 = vld [vmem:[%s16002_s5 + $0xe38] sm:$0xff]  }
 0x62c   :  { %11391 = vmatpush3.bf16.msra.mxu0 %v13016_v41 }
 0x62d   :  { %11392 = vmatprep.subr.bf16.mxu0 %v13017_v28 }
 0x630   :  { %11393 = vmatpush3.bf16.msra.mxu0 %v13018_v45  ;;  %v13052_v45 = vld [vmem:[%s16002_s5 + $0xf00] sm:$0xff]  }
 0x631   :  { %11422 = vmatprep.subr.bf16.mxu0 %v13019_v1  ;;  %v16011_v1 = vld [vmem:[#allocation5_spill] sm:$0xff] }
 0x633   :  { %9578 = vmatmul.mubr.bf16.vlgmr.msra.gmra.mrb[136].mxu0 %v4406_v18  ;;  %v13054_v18 = vld [vmem:[%s16002_s5 + $0xf08] sm:$0xff]  }
 0x634   :  { %11423 = vmatpush3.bf16.msra.mxu0 %v13020_v2  ;;  %9657 = vmatprep.mubr.bf16.mxu0 %v4430_v58  ;;  %v4446_v2 = vpack.c.b16 %v16011_v1, %v16011_v1  ;;  %v13056_v58 = vld [vmem:[%s16002_s5 + $0xf10] sm:$0xff]  }
 0x635   :  { %11424 = vmatprep.subr.bf16.mxu0 %v13021_v47  ;;  %v13055_v47 = vld [vmem:[%s16002_s5 + $0xf50] sm:$0xff]  }
 0x638   :  { %11425 = vmatpush3.bf16.msra.mxu0 %v13022_v5  ;;  %v13058_v5 = vld [vmem:[%s16002_s5 + $0xf18] sm:$0xff]  }
 0x639   :  { %11426 = vmatprep.subr.bf16.mxu0 %v13023_v14  ;;  %v13059_v14 = vld [vmem:[%s16002_s5 + $0xf60] sm:$0xff]  }
 0x63c   :  { %11427 = vmatpush3.bf16.msra.mxu0 %v13024_v29  ;;  %v13060_v29 = vld [vmem:[%s16002_s5 + $0xf20] sm:$0xff]  }
 0x63d   :  { %11428 = vmatprep.subr.bf16.mxu0 %v13025_v55  ;;  %v13061_v55 = vld [vmem:[%s16002_s5 + $0xf68] sm:$0xff]  }
 0x640   :  { %11429 = vmatpush3.bf16.msra.mxu0 %v13026_v51  ;;  %v13062_v51 = vld [vmem:[%s16002_s5 + $0xf28] sm:$0xff]  }
 0x641   :  { %11430 = vmatprep.subr.bf16.mxu0 %v13027_v20  ;;  %v13063_v20 = vld [vmem:[%s16002_s5 + $0xf70] sm:$0xff]  }
 0x644   :  { %11431 = vmatpush3.bf16.msra.mxu0 %v13028_v6 }
 0x645   :  { %11432 = vmatprep.subr.bf16.mxu0 %v13029_v8 }
 0x646   :  { %v11130_v59 = vpop.f32.mrb[112].mxu0 }
 0x647   :  { %v11131_v43 = vpop.f32.mrb[113].mxu0 }
 0x648   :  { %v11132_v22 = vadd.f32 %v11131_v43, %v11130_v59  ;;  %v11133_v23 = vpop.f32.mrb[114].mxu0  ;;  %11433 = vmatpush3.bf16.msra.mxu0 %v13030_v13  ;;  %v13064_v59 = vld [vmem:[%s16002_s5 + $0xf30] sm:$0xff]  }
 0x649   :  { %v11134_v52 = vpop.f32.mrb[115].mxu0  ;;  %11434 = vmatprep.subr.bf16.mxu0 %v13031_v25 }
 0x64a   :  { %v9100_v54 = vadd.f32 %v11132_v22, %v9060_v16  ;;  %v13051_v16 = vld [vmem:[%s16002_s5 + $0xf40] sm:$0xff]   ;;  %v13065_v22 = vld [vmem:[%s16002_s5 + $0xf78] sm:$0xff]  }
 0x64c   :  { %11435 = vmatpush3.bf16.msra.mxu0 %v13032_v10  ;;  %v9140_v53 = vadd.f32 %v15104_v38, %v9100_v54  ;;  %v4450_v38 = vpack.c.b16 %v14560_v31, %v14560_v31  ;;  %v13041_v31 = vld [vmem:[%s16002_s5 + $0xe58] sm:$0xff]  }
 0x64d   :  { %11436 = vmatprep.subr.bf16.mxu0 %v13033_v26  ;;  %v13066_v10 = vld [vmem:[%s16002_s5 + $0xf38] sm:$0xff]   ;;  %v4465_v26 = vpack.c.b16 %v14583_v39, %v14583_v39 }
 0x650   :  { %11437 = vmatpush3.bf16.msra.mxu0 %v13034_v36 }
 0x651   :  { %11466 = vmatprep.subr.bf16.mxu0 %v13035_v61 }
 0x653   :  { %9658 = vmatmul.mubr.bf16.vlgmr.msra.gmra.mrb[140].mxu0 %v4425_v30 }
 0x654   :  { %11467 = vmatpush3.bf16.msra.mxu0 %v13036_v19  ;;  %9737 = vmatprep.mubr.bf16.mxu0 %v4450_v38 }
 0x655   :  { %11468 = vmatprep.subr.bf16.mxu0 %v13037_v44 }
 0x658   :  { %11469 = vmatpush3.bf16.msra.mxu0 %v13038_v62 }
 0x659   :  { %11470 = vmatprep.subr.bf16.mxu0 %v13039_v34 }
 0x65c   :  { %11471 = vmatpush3.bf16.msra.mxu0 %v13040_v12 }
 0x65d   :  { %11472 = vmatprep.subr.bf16.mxu0 %v13041_v31 }
 0x660   :  { %11473 = vmatpush3.bf16.msra.mxu0 %v13042_v24 }
 0x661   :  { %11474 = vmatprep.subr.bf16.mxu0 %v13043_v32 }
 0x664   :  { %11475 = vmatpush3.bf16.msra.mxu0 %v13044_v15 }
 0x665   :  { %11476 = vmatprep.subr.bf16.mxu0 %v13045_v37 }
 0x666   :  { %v11174_v7 = vpop.f32.mrb[116].mxu0 }
 0x667   :  { %v11175_v56 = vpop.f32.mrb[117].mxu0 }
 0x668   :  { %v11176_v48 = vadd.f32 %v11175_v56, %v11174_v7  ;;  %v11177_v60 = vpop.f32.mrb[118].mxu0  ;;  %11477 = vmatpush3.bf16.msra.mxu0 %v13046_v49 }
 0x669   :  { %v11178_v4 = vpop.f32.mrb[119].mxu0  ;;  %11478 = vmatprep.subr.bf16.mxu0 %v13047_v33 }
 0x66a   :  { %v9180_v41 = vadd.f32 %v11176_v48, %v9140_v53 }
 0x66c   :  { %11479 = vmatpush3.bf16.msra.mxu0 %v13048_v42  ;;  %v9220_v28 = vadd.f32 %v15214_v27, %v9180_v41  ;;  %v4470_v27 = vpack.c.b16 %v14580_v40, %v14580_v40  ;;  %v13057_v40 = vld [vmem:[%s16002_s5 + $0xf58] sm:$0xff]  }
 0x66d   :  { %11480 = vmatprep.subr.bf16.mxu0 %v13049_v21 }
 0x670   :  { %11481 = vmatpush3.bf16.msra.mxu0 %v13050_v11 }
 0x671   :  { %11510 = vmatprep.subr.bf16.mxu0 %v13051_v16 }
 0x673   :  { %9738 = vmatmul.mubr.bf16.vlgmr.msra.gmra.mrb[144].mxu0 %v4446_v2 }
 0x674   :  { %11511 = vmatpush3.bf16.msra.mxu0 %v13052_v45  ;;  %9817 = vmatprep.mubr.bf16.mxu0 %v4470_v27 }
 0x675   :  { %11512 = vmatprep.subr.bf16.mxu0 %v13053_v46 }
 0x678   :  { %11513 = vmatpush3.bf16.msra.mxu0 %v13054_v18 }
 0x679   :  { %11514 = vmatprep.subr.bf16.mxu0 %v13055_v47 }
 0x67c   :  { %11515 = vmatpush3.bf16.msra.mxu0 %v13056_v58 }
 0x67d   :  { %11516 = vmatprep.subr.bf16.mxu0 %v13057_v40 }
 0x680   :  { %11517 = vmatpush3.bf16.msra.mxu0 %v13058_v5 }
 0x681   :  { %11518 = vmatprep.subr.bf16.mxu0 %v13059_v14 }
 0x684   :  { %11519 = vmatpush3.bf16.msra.mxu0 %v13060_v29 }
 0x685   :  { %11520 = vmatprep.subr.bf16.mxu0 %v13061_v55 }
 0x686   :  { %v11218_v6 = vpop.f32.mrb[120].mxu0 }
 0x687   :  { %v11219_v8 = vpop.f32.mrb[121].mxu0 }
 0x688   :  { %v11220_v13 = vadd.f32 %v11219_v8, %v11218_v6  ;;  %v11221_v25 = vpop.f32.mrb[122].mxu0  ;;  %11521 = vmatpush3.bf16.msra.mxu0 %v13062_v51 }
 0x689   :  { %v11222_v43 = vpop.f32.mrb[123].mxu0  ;;  %11522 = vmatprep.subr.bf16.mxu0 %v13063_v20 }
 0x68a   :  { %v9260_v23 = vadd.f32 %v11220_v13, %v9220_v28 }
 0x68c   :  { %11523 = vmatpush3.bf16.msra.mxu0 %v13064_v59  ;;  %v9300_v52 = vadd.f32 %v15325_v9, %v9260_v23 }
 0x68d   :  { %11524 = vmatprep.subr.bf16.mxu0 %v13065_v22 }
 0x690   :  { %11525 = vmatpush3.bf16.msra.mxu0 %v13066_v10 }
 0x693   :  { %9818 = vmatmul.mubr.bf16.vlgmr.msra.gmra.mrb[148].mxu0 %v4465_v26 }
 0x6a6   :  { %v11262_v54 = vpop.f32.mrb[124].mxu0 }
 0x6a7   :  { %v11263_v36 = vpop.f32.mrb[125].mxu0 }
 0x6a8   :  { %v11264_v53 = vadd.f32 %v11263_v36, %v11262_v54  ;;  %v11265_v61 = vpop.f32.mrb[126].mxu0 }
 0x6a9   :  { %v11266_v19 = vpop.f32.mrb[127].mxu0 }
 0x6aa   :  { %v9340_v30 = vadd.f32 %v11264_v53, %v9300_v52 }
 0x6ac   :  { %v9380_v44 = vadd.f32 %v15391_v57, %v9340_v30 }
 0x6c6   :  { %v11306_v38 = vpop.f32.mrb[128].mxu0 }
 0x6c7   :  { %v11307_v62 = vpop.f32.mrb[129].mxu0 }
 0x6c8   :  { %v11308_v34 = vadd.f32 %v11307_v62, %v11306_v38  ;;  %v11309_v12 = vpop.f32.mrb[130].mxu0 }
 0x6c9   :  { %v11310_v31 = vpop.f32.mrb[131].mxu0 }
 0x6ca   :  { %v9420_v9 = vadd.f32 %v11308_v34, %v9380_v44 }
 0x6cc   :  { %v9460_v24 = vadd.f32 %v15445_v3, %v9420_v9 }
 0x6e6   :  { %v11350_v32 = vpop.f32.mrb[132].mxu0 }
 0x6e7   :  { %v11351_v15 = vpop.f32.mrb[133].mxu0 }
 0x6e8   :  { %v11352_v39 = vadd.f32 %v11351_v15, %v11350_v32  ;;  %v11353_v37 = vpop.f32.mrb[134].mxu0 }
 0x6e9   :  { %v11354_v49 = vpop.f32.mrb[135].mxu0 }
 0x6ea   :  { %v9500_v33 = vadd.f32 %v11352_v39, %v9460_v24 }
 0x6ec   :  { %v9540_v7 = vadd.f32 %v15499_v35, %v9500_v33 }
 0x706   :  { %v11394_v56 = vpop.f32.mrb[136].mxu0 }
 0x707   :  { %v11395_v48 = vpop.f32.mrb[137].mxu0 }
 0x708   :  { %v11396_v60 = vadd.f32 %v11395_v48, %v11394_v56  ;;  %v11397_v57 = vpop.f32.mrb[138].mxu0 }
 0x709   :  { %v11398_v42 = vpop.f32.mrb[139].mxu0 }
 0x70a   :  { %v9580_v4 = vadd.f32 %v11396_v60, %v9540_v7 }
 0x70c   :  { %v9620_v21 = vadd.f32 %v15553_v63, %v9580_v4 }
 0x726   :  { %v11438_v41 = vpop.f32.mrb[140].mxu0 }
 0x727   :  { %v11439_v11 = vpop.f32.mrb[141].mxu0 }
 0x728   :  { %v11440_v28 = vadd.f32 %v11439_v11, %v11438_v41  ;;  %v11441_v3 = vpop.f32.mrb[142].mxu0 }
 0x729   :  { %v11442_v16 = vpop.f32.mrb[143].mxu0 }
 0x72a   :  { %v9660_v45 = vadd.f32 %v11440_v28, %v9620_v21 }
 0x72c   :  { %v9700_v1 = vadd.f32 %v15607_v0, %v9660_v45 }
 0x746   :  { %v11482_v2 = vpop.f32.mrb[144].mxu0 }
 0x747   :  { %v11483_v46 = vpop.f32.mrb[145].mxu0 }
 0x748   :  { %v11484_v27 = vadd.f32 %v11483_v46, %v11482_v2  ;;  %v11485_v35 = vpop.f32.mrb[146].mxu0 }
 0x749   :  { %v11486_v18 = vpop.f32.mrb[147].mxu0 }
 0x74a   :  { %v9740_v47 = vadd.f32 %v11484_v27, %v9700_v1 }
 0x74c   :  { %v9780_v58 = vadd.f32 %v15661_v17, %v9740_v47 }
 0x766   :  { %v11526_v40 = vpop.f32.mrb[148].mxu0 }
 0x767   :  { %v11527_v5 = vpop.f32.mrb[149].mxu0 }
 0x768   :  { %v11528_v14 = vadd.f32 %v11527_v5, %v11526_v40  ;;  %v11529_v63 = vpop.f32.mrb[150].mxu0 }
 0x769   :  { %v11530_v29 = vpop.f32.mrb[151].mxu0 }
 0x76a   :  { %v9820_v55 = vadd.f32 %v11528_v14, %v9780_v58 }
 0x76c   :  { %v9860_v51 = vadd.f32 %v15715_v50, %v9820_v55 }
 0x76e   :  { %9866 = vst.msk [vmem:[%s16005_s7] sm:$0x3] %vm9865_vm1, %v9860_v51 }

</bundles_post_ra>
